<compile_context>
chip_gen: v7x
topology: tpu7x:2x2x1
jax: 0.10.0
libtpu: 0.0.40
codegen_flags: <defaults>
</compile_context>

<pallas_src>
import functools

import jax
import jax.numpy as jnp
from jax.experimental import pallas as pl
from jax.experimental.pallas import tpu as pltpu

_TM_DEFAULT = 256        # row tile for the generic matmul kernel (v5e/v7x safe)


def _round_up(x, m):
    return (x + m - 1) // m * m


@functools.lru_cache(maxsize=None)
def _vmem_limit_bytes():
    """Per-generation VMEM budget: ~96 MiB on 128-MiB parts, tighter on v7x."""
    default = 48 * 1024 * 1024
    get_info = getattr(pltpu, "get_tpu_info", None)
    if get_info is None:
        return default
    try:
        cap = int(get_info().vmem_capacity_bytes)
    except Exception:
        return default
    if cap >= 100 * 1024 * 1024:          # v5e / v6e: 128 MiB per core
        return 96 * 1024 * 1024
    return min(default, int(cap * 0.7))   # v7x: 64 MiB per core


def _cout_tile(cp):
    """Lane-dense Cout tile: full width if small, else 256/128 blocks."""
    if cp <= 256:
        return cp
    return 256 if cp % 256 == 0 else 128


def _row_tile(h, w_out, tn):
    """Largest divisor of H whose (TH*W, tn) f32 accumulator stays ~256 KiB."""
    target_rows = 512 if tn <= 128 else 256
    for th in range(h, 0, -1):
        if h % th:
            continue
        rows = th * w_out
        if rows <= target_rows and (rows % 8 == 0 or th == h):
            return th
    return h   # fall back to whole image (always a legal block shape)


# ----------------------------- Pallas kernels ------------------------------

def _matmul_bias_kernel(x_ref, w_ref, b_ref, o_ref, *, relu):
    """(x @ w) + bias [+ ReLU]; bf16 (or f32) operands, f32 accumulate."""
    acc = jnp.dot(x_ref[...], w_ref[...], preferred_element_type=jnp.float32)
    out = acc + b_ref[...]
    if relu:
        out = jnp.maximum(out, 0.0)
    o_ref[...] = out.astype(o_ref.dtype)


def _stage_kw_shifts(x_ref, xs_ref):
    """Stage three kw-shifted, zero-padded copies of one image into VMEM.

    x_ref  : (1, H, W, Cin) unpadded NHWC image block
    xs_ref : (3, H+2, W, Cin) scratch; xs[kw][r, c, :] == xpad[r, c + kw, :]
             where xpad is the (H+2, W+2, Cin) zero-padded image.
    """
    h, w = x_ref.shape[1], x_ref.shape[2]
    xs_ref[...] = jnp.zeros_like(xs_ref)
    xs_ref[1, 1:h + 1, :, :] = x_ref[0]                      # kw = 1 (centre)
    xs_ref[0, 1:h + 1, 1:w, :] = x_ref[0, :, :w - 1, :]      # kw = 0 (left)
    xs_ref[2, 1:h + 1, :w - 1, :] = x_ref[0, :, 1:, :]       # kw = 2 (right)


def _conv3x3_row_taps(xs_ref, w_ref, row0, th):
    """Nine accumulated MXU matmuls producing TH output rows of a 3x3/s1 conv."""
    w_out, cin = xs_ref.shape[2], xs_ref.shape[3]
    tn = w_ref.shape[-1]
    acc = jnp.zeros((th * w_out, tn), jnp.float32)
    for kh in range(3):
        for kw in range(3):
            # Contiguous leading-dim slab of the staged kw-shifted copy.
            tap = xs_ref[kw, pl.ds(row0 + kh, th), :, :]
            tap = tap.reshape(th * w_out, cin)
            acc = acc + jnp.dot(tap, w_ref[kh * 3 + kw],
                                preferred_element_type=jnp.float32)
    return acc


def _conv3x3_kernel(x_ref, w_ref, b_ref, o_ref, xs_ref, *, th, relu):
    r = pl.program_id(2)

    @pl.when(r == 0)                    # fresh image block -> re-stage shifts
    def _():
        _stage_kw_shifts(x_ref, xs_ref)

    row0 = pl.multiple_of(r * th, th)
    out = _conv3x3_row_taps(xs_ref, w_ref, row0, th) + b_ref[...]
    if relu:
        out = jnp.maximum(out, 0.0)
    o_ref[0] = out.astype(o_ref.dtype)


def _conv3x3_add_relu_kernel(x_ref, w_ref, b_ref, res_ref, o_ref, xs_ref, *,
                             th):
    r = pl.program_id(2)

    @pl.when(r == 0)
    def _():
        _stage_kw_shifts(x_ref, xs_ref)

    row0 = pl.multiple_of(r * th, th)
    out = (_conv3x3_row_taps(xs_ref, w_ref, row0, th) + b_ref[...]
           + res_ref[0].astype(jnp.float32))
    o_ref[0] = jnp.maximum(out, 0.0).astype(o_ref.dtype)


# --------------------------- pallas_call wrappers ---------------------------

def _fused_matmul(x, w, bias, *, relu, out_dtype, tm=_TM_DEFAULT):
    """Tiled (x @ w) + bias [+ReLU] with lane-dense (tm, tn) output blocks."""
    m, k = x.shape
    cp = w.shape[1]
    tn = _cout_tile(cp)
    tm = min(tm, _round_up(m, 8))
    mp = _round_up(m, tm)                         # pad rows instead of assert
    if mp != m:
        x = jnp.pad(x, ((0, mp - m), (0, 0)))
    grid = (mp // tm, cp // tn)

    out = pl.pallas_call(
        functools.partial(_matmul_bias_kernel, relu=relu),
        out_shape=jax.ShapeDtypeStruct((mp, cp), out_dtype),
        grid_spec=pltpu.PrefetchScalarGridSpec(
            num_scalar_prefetch=0,
            grid=grid,
            in_specs=[
                pl.BlockSpec((tm, k), lambda i, j: (i, 0)),
                pl.BlockSpec((k, tn), lambda i, j: (0, j)),
                pl.BlockSpec((1, tn), lambda i, j: (0, j)),
            ],
            out_specs=pl.BlockSpec((tm, tn), lambda i, j: (i, j)),
        ),
        compiler_params=pltpu.CompilerParams(
            dimension_semantics=("parallel", "parallel"),
            vmem_limit_bytes=_vmem_limit_bytes()),
    )(x, w, bias)
    return out[:m] if mp != m else out


def _fused_conv3x3_s1(x, w9, bias, residual=None, *, relu=True, out_dtype):
    """3x3 / stride-1 / pad-1 conv + BN bias (+ residual) (+ ReLU), row-tiled.

    x        : (N, H, W, Cin) **unpadded** NHWC (halo padding done in-kernel)
    w9       : (9, Cin, Cp) weights (BN scale folded), Cp multiple of 128
    bias     : (1, Cp) f32
    residual : optional (N, H*W, Cp)
    returns  : (N, H*W, Cp)
    """
    n, h, w, cin = x.shape
    cp = w9.shape[-1]
    tn = _cout_tile(cp)
    th = _row_tile(h, w, tn)
    # Weights on the outermost axis stay VMEM-resident across images/row tiles.
    grid = (cp // tn, n, h // th)

    in_specs = [
        pl.BlockSpec((1, h, w, cin), lambda j, i, r: (i, 0, 0, 0)),
        pl.BlockSpec((9, cin, tn), lambda j, i, r: (0, 0, j)),
        pl.BlockSpec((1, tn), lambda j, i, r: (0, j)),
    ]
    args = [x, w9, bias]
    if residual is not None:
        in_specs.append(
            pl.BlockSpec((1, th * w, tn), lambda j, i, r: (i, r, j)))
        args.append(residual)
        kernel = functools.partial(_conv3x3_add_relu_kernel, th=th)
    else:
        kernel = functools.partial(_conv3x3_kernel, th=th, relu=relu)

    return pl.pallas_call(
        kernel,
        out_shape=jax.ShapeDtypeStruct((n, h * w, cp), out_dtype),
        grid_spec=pltpu.PrefetchScalarGridSpec(
            num_scalar_prefetch=0,
            grid=grid,
            in_specs=in_specs,
            out_specs=pl.BlockSpec((1, th * w, tn), lambda j, i, r: (i, r, j)),
            scratch_shapes=[pltpu.VMEM((3, h + 2, w, cin), x.dtype)],
        ),
        compiler_params=pltpu.CompilerParams(
            # Row axis is "arbitrary": row tiles of one image reuse the staged
            # kw-shift scratch written at r == 0 and must stay on one core.
            dimension_semantics=("parallel", "parallel", "arbitrary"),
            vmem_limit_bytes=_vmem_limit_bytes()),
    )(*args)


# ------------------------------ JAX glue ------------------------------------

def _bn_fold(gamma, beta, mean, var, eps=1e-5):
    scale = gamma / jnp.sqrt(var + eps)
    bias = beta - mean * scale
    return scale, bias


def _prep_w3x3(w_oihw, scale, cin_pad, cout_pad, dtype):
    """(O,I,3,3) torch weight -> (9, cin_pad, cout_pad), BN scale folded."""
    o, i, kh, kw = w_oihw.shape
    wk = jnp.transpose(w_oihw, (2, 3, 1, 0)).reshape(kh * kw, i, o)
    wk = wk * scale[None, None, :]
    wk = jnp.pad(wk, ((0, 0), (0, cin_pad - i), (0, cout_pad - o)))
    return wk.astype(dtype)


def _prep_w3x3_flat(w_oihw, scale, cout_pad, dtype):
    """(O,I,3,3) -> (9*I, cout_pad), matching _im2col_3x3 column order."""
    o, i, kh, kw = w_oihw.shape
    wk = jnp.transpose(w_oihw, (2, 3, 1, 0)).reshape(kh * kw * i, o)
    wk = wk * scale[None, :]
    wk = jnp.pad(wk, ((0, 0), (0, cout_pad - o)))
    return wk.astype(dtype)


def _prep_w1x1(w_oihw, scale, cout_pad, dtype):
    o, i, _, _ = w_oihw.shape
    wk = jnp.transpose(w_oihw, (2, 3, 1, 0)).reshape(i, o) * scale[None, :]
    wk = jnp.pad(wk, ((0, 0), (0, cout_pad - o)))
    return wk.astype(dtype)


def _pad_bias(bias, cout_pad):
    return jnp.pad(bias, (0, cout_pad - bias.shape[0])) \
              .reshape(1, cout_pad).astype(jnp.float32)


def _conv_out_size(size, stride):
    # k=3, pad=1 conv: PyTorch gives floor((size - 1) / stride) + 1.
    return (size - 1) // stride + 1


def _im2col_3x3(x_nhwc, stride):
    """3x3 / pad=1 patch extraction -> (N*Ho*Wo, 9*C). Used only for stride>1."""
    n, h, w, c = x_nhwc.shape
    ho, wo = _conv_out_size(h, stride), _conv_out_size(w, stride)
    xp = jnp.pad(x_nhwc, ((0, 0), (1, 1), (1, 1), (0, 0)))
    cols = []
    for kh in range(3):
        for kw in range(3):
            sl = xp[:, kh:kh + stride * (ho - 1) + 1:stride,
                       kw:kw + stride * (wo - 1) + 1:stride, :]
            cols.append(sl)
    patches = jnp.concatenate(cols, axis=-1)          # (N, Ho, Wo, 9*C)
    return patches.reshape(n * ho * wo, 9 * c), ho, wo


def basic_block_forward(x_nchw, params, stride, compute_dtype=jnp.bfloat16):
    """BasicBlock forward (eval-mode BN). Input/output NCHW float32."""
    x = jnp.transpose(x_nchw, (0, 2, 3, 1)).astype(compute_dtype)   # -> NHWC
    n, h, w, cin = x.shape
    planes = params["w1"].shape[0]
    cp = _round_up(planes, 128)              # lane-dense padded Cout
    ho, wo = _conv_out_size(h, stride), _conv_out_size(w, stride)

    s1, b1 = _bn_fold(params["g1"], params["b1"], params["m1"], params["v1"])
    s2, b2 = _bn_fold(params["g2"], params["b2"], params["m2"], params["v2"])
    b1p, b2p = _pad_bias(b1, cp), _pad_bias(b2, cp)

    # ---- conv1 (3x3, stride) + bn1 + relu ----
    if stride == 1:
        # Lane-dense Cin (pad to a 128 multiple) when it is large enough to
        # pay off; the toy Cin=4/8 cases keep the exact width.
        cin_use = _round_up(cin, 128) if cin >= 64 else cin
        x_used = x if cin_use == cin else \
            jnp.pad(x, ((0, 0), (0, 0), (0, 0), (0, cin_use - cin)))
        w1 = _prep_w3x3(params["w1"], s1, cin_use, cp, compute_dtype)
        out1 = _fused_conv3x3_s1(x_used, w1, b1p, relu=True,
                                 out_dtype=compute_dtype)     # (N, H*W, Cp)
    else:
        x_used, cin_use = x, cin
        w1 = _prep_w3x3_flat(params["w1"], s1, cp, compute_dtype)
        p1, ho, wo = _im2col_3x3(x, stride)
        out1 = _fused_matmul(p1, w1, b1p, relu=True, out_dtype=compute_dtype)
        out1 = out1.reshape(n, ho * wo, cp)

    # ---- shortcut: 1x1 conv + bn when shape changes, else identity ----
    if stride != 1 or cin != planes:
        ss, bs = _bn_fold(params["gs"], params["bs"],
                          params["ms"], params["vs"])
        ws = _prep_w1x1(params["ws"], ss, cp, compute_dtype)
        bsp = _pad_bias(bs, cp)
        x_s = x[:, ::stride, ::stride, :].reshape(n * ho * wo, cin)
        res = _fused_matmul(x_s, ws, bsp, relu=False, out_dtype=compute_dtype)
        res = res.reshape(n, ho * wo, cp)
    else:
        res = x_used if cin_use == cp else \
            jnp.pad(x_used, ((0, 0), (0, 0), (0, 0), (0, cp - cin_use)))
        res = res.reshape(n, ho * wo, cp)

    # ---- conv2 (3x3, stride 1) + bn2 + residual add + relu, fully fused ----
    w2 = _prep_w3x3(params["w2"], s2, cp, cp, compute_dtype)
    out = _fused_conv3x3_s1(out1.reshape(n, ho, wo, cp), w2, b2p,
                            residual=res, out_dtype=compute_dtype)

    out = out.reshape(n, ho, wo, cp)[..., :planes]
    return jnp.transpose(out, (0, 3, 1, 2)).astype(jnp.float32)  # -> NCHW


# --------------------------- pure-JAX reference ------------------------------

def _ref_forward(x, params, stride):
    def conv(x, w, s, pad):
        return jax.lax.conv_general_dilated(
            x, w, (s, s), ((pad, pad), (pad, pad)),
            dimension_numbers=("NCHW", "OIHW", "NCHW"))

    def bn(x, g, b, m, v, eps=1e-5):
        g, b, m, v = (t[None, :, None, None] for t in (g, b, m, v))
        return (x - m) / jnp.sqrt(v + eps) * g + b

    out = jax.nn.relu(bn(conv(x, params["w1"], stride, 1),
                         params["g1"], params["b1"],
                         params["m1"], params["v1"]))
    out = bn(conv(out, params["w2"], 1, 1),
             params["g2"], params["b2"], params["m2"], params["v2"])
    if stride != 1 or x.shape[1] != params["w1"].shape[0]:
        sc = bn(conv(x, params["ws"], stride, 0),
                params["gs"], params["bs"], params["ms"], params["vs"])
    else:
        sc = x
    return jax.nn.relu(out + sc)


# ------------------------------- main ----------------------------------------

def _init_params(key, in_planes, planes):
    ks = jax.random.split(key, 4)
    return {
        "w1": 0.1 * jax.random.normal(ks[0], (planes, in_planes, 3, 3),
                                      jnp.float32),
        "w2": 0.1 * jax.random.normal(ks[1], (planes, planes, 3, 3),
                                      jnp.float32),
        "g1": 1.0 + 0.1 * jax.random.normal(ks[2], (planes,), jnp.float32),
        "b1": 0.05 * jnp.arange(planes, dtype=jnp.float32),
        "m1": 0.01 * jnp.arange(planes, dtype=jnp.float32),
        "v1": 1.0 + 0.02 * jnp.arange(planes, dtype=jnp.float32),
        "g2": 1.0 - 0.03 * jnp.arange(planes, dtype=jnp.float32),
        "b2": -0.02 * jnp.arange(planes, dtype=jnp.float32),
        "m2": 0.02 * jnp.arange(planes, dtype=jnp.float32),
        "v2": 1.0 + 0.01 * jnp.arange(planes, dtype=jnp.float32),
        # shortcut (1x1 conv + BN); unused when identity shortcut applies
        "ws": 0.1 * jax.random.normal(ks[3], (planes, in_planes, 1, 1),
                                      jnp.float32),
        "gs": 1.0 + 0.05 * jnp.arange(planes, dtype=jnp.float32),
        "bs": 0.01 * jnp.arange(planes, dtype=jnp.float32),
        "ms": -0.01 * jnp.arange(planes, dtype=jnp.float32),
        "vs": 1.0 + 0.03 * jnp.arange(planes, dtype=jnp.float32),
    }


if __name__ == "__main__":
    key = jax.random.PRNGKey(0)
    fwd = jax.jit(basic_block_forward,
                  static_argnames=("stride", "compute_dtype"))

    configs = [
        # (N, in_planes, planes, H, W, stride)
        (2, 4, 8, 32, 32, 2),   # downsampling block: 1x1-conv shortcut
        (2, 8, 8, 16, 16, 1),   # stride-1 block: identity shortcut
    ]
    for n, in_planes, planes, h, w, stride in configs:
        key, kx, kp = jax.random.split(key, 3)
        x = jax.random.normal(kx, (n, in_planes, h, w), jnp.float32)  # NCHW
        params = _init_params(kp, in_planes, planes)

        ref = jax.block_until_ready(_ref_forward(x, params, stride))
        oh, ow = _conv_out_size(h, stride), _conv_out_size(w, stride)

        # f32 operand path: tight check of the kernel indexing / math.
        out32 = jax.block_until_ready(
            fwd(x, params, stride=stride, compute_dtype=jnp.float32))
        assert out32.shape == ref.shape == (n, planes, oh, ow)
        assert jnp.allclose(out32, ref, rtol=5e-4, atol=5e-4), \
            float(jnp.max(jnp.abs(out32 - ref)))

        # bf16 operand path (the optimized configuration): f32 accumulation
        # inside the kernels, looser tolerance for bf16 operand rounding.
        out16 = jax.block_until_ready(
            fwd(x, params, stride=stride, compute_dtype=jnp.bfloat16))
        assert out16.shape == ref.shape
        assert jnp.allclose(out16, ref, rtol=5e-2, atol=5e-2), \
            float(jnp.max(jnp.abs(out16 - ref)))

    print("KERNEL_OK")
</pallas_src>

<mosaic_0001>
module attributes {stable_mosaic.version = 11 : i64} {
  func.func @_matmul_bias_kernel(%arg0: i32, %arg1: i32, %arg2: memref<256x4xf32, #tpu.memory_space<vmem>>, %arg3: memref<4x128xf32, #tpu.memory_space<vmem>>, %arg4: memref<1x128xf32, #tpu.memory_space<vmem>>, %arg5: memref<256x128xf32, #tpu.memory_space<vmem>>) attributes {dimension_semantics = [#tpu.dimension_semantics<parallel>, #tpu.dimension_semantics<parallel>], iteration_bounds = array<i64: 2, 1>, scalar_prefetch = 0 : i64, scratch_operands = 0 : i64, tpu.core_type = #tpu.core_type<tc>, window_params = [{transform_indices = @transform_0, window_bounds = array<i64: 256, 4>}, {transform_indices = @transform_1, window_bounds = array<i64: 4, 128>}, {transform_indices = @transform_2, window_bounds = array<i64: 1, 128>}, {transform_indices = @transform_3, window_bounds = array<i64: 256, 128>}]} {
    %c0 = arith.constant 0 : index
    %c0_0 = arith.constant 0 : index
    %0 = vector.load %arg2[%c0, %c0_0] : memref<256x4xf32, #tpu.memory_space<vmem>>, vector<256x4xf32>
    %c0_1 = arith.constant 0 : index
    %c0_2 = arith.constant 0 : index
    %1 = vector.load %arg3[%c0_1, %c0_2] : memref<4x128xf32, #tpu.memory_space<vmem>>, vector<4x128xf32>
    %cst = arith.constant dense<0.000000e+00> : vector<256x128xf32>
    %2 = tpu.matmul %0, %1, %cst {dimension_numbers = #tpu.dot_dimension_numbers<[1], [0], [0], [1], [0, 0, 1, 1], [], []>} : vector<256x4xf32>, vector<4x128xf32>, vector<256x128xf32> -> vector<256x128xf32>
    %c0_3 = arith.constant 0 : index
    %c0_4 = arith.constant 0 : index
    %3 = vector.load %arg4[%c0_3, %c0_4] : memref<1x128xf32, #tpu.memory_space<vmem>>, vector<1x128xf32>
    %4 = vector.broadcast %3 : vector<1x128xf32> to vector<256x128xf32>
    %5 = arith.addf %2, %4 : vector<256x128xf32>
    %c0_5 = arith.constant 0 : index
    %c0_6 = arith.constant 0 : index
    %6 = vector.load %arg5[%c0_5, %c0_6] : memref<256x128xf32, #tpu.memory_space<vmem>>, vector<256x128xf32>
    tpu.vector_store %arg5[%c0_5, %c0_6], %5 {strides = array<i32>} : memref<256x128xf32, #tpu.memory_space<vmem>>, vector<256x128xf32>,
    return
  }
  func.func @transform_0(%arg0: i32, %arg1: i32) -> (i32, i32) {
    %c0_i32 = arith.constant 0 : i32
    %c0_i32_0 = arith.constant 0 : i32
    return %arg0, %c0_i32 : i32, i32
  }
  func.func @transform_1(%arg0: i32, %arg1: i32) -> (i32, i32) {
    %c0_i32 = arith.constant 0 : i32
    %c0_i32_0 = arith.constant 0 : i32
    return %c0_i32, %arg1 : i32, i32
  }
  func.func @transform_2(%arg0: i32, %arg1: i32) -> (i32, i32) {
    %c0_i32 = arith.constant 0 : i32
    %c0_i32_0 = arith.constant 0 : i32
    return %c0_i32, %arg1 : i32, i32
  }
  func.func @transform_3(%arg0: i32, %arg1: i32) -> (i32, i32) {
    %c0_i32 = arith.constant 0 : i32
    return %arg0, %arg1 : i32, i32
  }
}

module attributes {stable_mosaic.version = 11 : i64} {
  func.func @_matmul_bias_kernel(%arg0: i32, %arg1: i32, %arg2: memref<256x36xf32, #tpu.memory_space<vmem>>, %arg3: memref<36x128xf32, #tpu.memory_space<vmem>>, %arg4: memref<1x128xf32, #tpu.memory_space<vmem>>, %arg5: memref<256x128xf32, #tpu.memory_space<vmem>>) attributes {dimension_semantics = [#tpu.dimension_semantics<parallel>, #tpu.dimension_semantics<parallel>], iteration_bounds = array<i64: 2, 1>, scalar_prefetch = 0 : i64, scratch_operands = 0 : i64, tpu.core_type = #tpu.core_type<tc>, window_params = [{transform_indices = @transform_0, window_bounds = array<i64: 256, 36>}, {transform_indices = @transform_1, window_bounds = array<i64: 36, 128>}, {transform_indices = @transform_2, window_bounds = array<i64: 1, 128>}, {transform_indices = @transform_3, window_bounds = array<i64: 256, 128>}]} {
    %c0 = arith.constant 0 : index
    %c0_0 = arith.constant 0 : index
    %0 = vector.load %arg2[%c0, %c0_0] : memref<256x36xf32, #tpu.memory_space<vmem>>, vector<256x36xf32>
    %c0_1 = arith.constant 0 : index
    %c0_2 = arith.constant 0 : index
    %1 = vector.load %arg3[%c0_1, %c0_2] : memref<36x128xf32, #tpu.memory_space<vmem>>, vector<36x128xf32>
    %cst = arith.constant dense<0.000000e+00> : vector<256x128xf32>
    %2 = tpu.matmul %0, %1, %cst {dimension_numbers = #tpu.dot_dimension_numbers<[1], [0], [0], [1], [0, 0, 1, 1], [], []>} : vector<256x36xf32>, vector<36x128xf32>, vector<256x128xf32> -> vector<256x128xf32>
    %c0_3 = arith.constant 0 : index
    %c0_4 = arith.constant 0 : index
    %3 = vector.load %arg4[%c0_3, %c0_4] : memref<1x128xf32, #tpu.memory_space<vmem>>, vector<1x128xf32>
    %4 = vector.broadcast %3 : vector<1x128xf32> to vector<256x128xf32>
    %5 = arith.addf %2, %4 : vector<256x128xf32>
    %cst_5 = arith.constant 0.000000e+00 : f32
    %6 = vector.broadcast %cst_5 : f32 to vector<256x128xf32>
    %7 = arith.maximumf %5, %6 : vector<256x128xf32>
    %c0_6 = arith.constant 0 : index
    %c0_7 = arith.constant 0 : index
    %8 = vector.load %arg5[%c0_6, %c0_7] : memref<256x128xf32, #tpu.memory_space<vmem>>, vector<256x128xf32>
    tpu.vector_store %arg5[%c0_6, %c0_7], %7 {strides = array<i32>} : memref<256x128xf32, #tpu.memory_space<vmem>>, vector<256x128xf32>,
    return
  }
  func.func @transform_0(%arg0: i32, %arg1: i32) -> (i32, i32) {
    %c0_i32 = arith.constant 0 : i32
    %c0_i32_0 = arith.constant 0 : i32
    return %arg0, %c0_i32 : i32, i32
  }
  func.func @transform_1(%arg0: i32, %arg1: i32) -> (i32, i32) {
    %c0_i32 = arith.constant 0 : i32
    %c0_i32_0 = arith.constant 0 : i32
    return %c0_i32, %arg1 : i32, i32
  }
  func.func @transform_2(%arg0: i32, %arg1: i32) -> (i32, i32) {
    %c0_i32 = arith.constant 0 : i32
    %c0_i32_0 = arith.constant 0 : i32
    return %c0_i32, %arg1 : i32, i32
  }
  func.func @transform_3(%arg0: i32, %arg1: i32) -> (i32, i32) {
    %c0_i32 = arith.constant 0 : i32
    return %arg0, %arg1 : i32, i32
  }
}

module attributes {stable_mosaic.version = 11 : i64} {
  func.func @_conv3x3_add_relu_kernel(%arg0: i32, %arg1: i32, %arg2: i32, %arg3: memref<1x16x16x128xf32, #tpu.memory_space<vmem>>, %arg4: memref<9x128x128xf32, #tpu.memory_space<vmem>>, %arg5: memref<1x128xf32, #tpu.memory_space<vmem>>, %arg6: memref<1x256x128xf32, #tpu.memory_space<vmem>>, %arg7: memref<1x256x128xf32, #tpu.memory_space<vmem>>, %arg8: memref<3x18x16x128xf32, #tpu.memory_space<vmem>>) attributes {dimension_semantics = [#tpu.dimension_semantics<parallel>, #tpu.dimension_semantics<parallel>, #tpu.dimension_semantics<arbitrary>], iteration_bounds = array<i64: 1, 2, 1>, scalar_prefetch = 0 : i64, scratch_operands = 1 : i64, tpu.core_type = #tpu.core_type<tc>, window_params = [{transform_indices = @transform_0, window_bounds = array<i64: 1, 16, 16, 128>}, {transform_indices = @transform_1, window_bounds = array<i64: 9, 128, 128>}, {transform_indices = @transform_2, window_bounds = array<i64: 1, 128>}, {transform_indices = @transform_3, window_bounds = array<i64: 1, 256, 128>}, {transform_indices = @transform_4, window_bounds = array<i64: 1, 256, 128>}]} {
    %c0_i32 = arith.constant 0 : i32
    %0 = arith.cmpi eq, %arg2, %c0_i32 : i32
    %1 = arith.extui %0 : i1 to i32
    %c0_i32_0 = arith.constant 0 : i32
    %2 = arith.cmpi ne, %1, %c0_i32_0 : i32
    scf.if %2 {
      %cst_71 = arith.constant 0.000000e+00 : f32
      %98 = vector.broadcast %cst_71 : f32 to vector<3x18x16x128xf32>
      %c0_72 = arith.constant 0 : index
      %c0_73 = arith.constant 0 : index
      %c0_74 = arith.constant 0 : index
      %c0_75 = arith.constant 0 : index
      %99 = vector.load %arg8[%c0_72, %c0_73, %c0_74, %c0_75] : memref<3x18x16x128xf32, #tpu.memory_space<vmem>>, vector<3x18x16x128xf32>
      tpu.vector_store %arg8[%c0_72, %c0_73, %c0_74, %c0_75], %98 {strides = array<i32>} : memref<3x18x16x128xf32, #tpu.memory_space<vmem>>, vector<3x18x16x128xf32>,
      %c0_76 = arith.constant 0 : index
      %c0_77 = arith.constant 0 : index
      %c0_78 = arith.constant 0 : index
      %c0_79 = arith.constant 0 : index
      %100 = vector.load %arg3[%c0_76, %c0_77, %c0_78, %c0_79] : memref<1x16x16x128xf32, #tpu.memory_space<vmem>>, vector<1x16x16x128xf32>
      %101 = vector.shape_cast %100 : vector<1x16x16x128xf32> to vector<16x16x128xf32>
      %c1_80 = arith.constant 1 : index
      %c1_81 = arith.constant 1 : index
      %c0_82 = arith.constant 0 : index
      %c0_83 = arith.constant 0 : index
      %102 = vector.load %arg8[%c1_80, %c1_81, %c0_82, %c0_83] : memref<3x18x16x128xf32, #tpu.memory_space<vmem>>, vector<1x16x16x128xf32>
      %103 = vector.shape_cast %102 : vector<1x16x16x128xf32> to vector<16x16x128xf32>
      %104 = vector.shape_cast %101 : vector<16x16x128xf32> to vector<1x16x16x128xf32>
      tpu.vector_store %arg8[%c1_80, %c1_81, %c0_82, %c0_83], %104 {strides = array<i32>} : memref<3x18x16x128xf32, #tpu.memory_space<vmem>>, vector<1x16x16x128xf32>,
      %c0_84 = arith.constant 0 : index
      %c0_85 = arith.constant 0 : index
      %c0_86 = arith.constant 0 : index
      %c0_87 = arith.constant 0 : index
      %105 = vector.load %arg3[%c0_84, %c0_85, %c0_86, %c0_87] : memref<1x16x16x128xf32, #tpu.memory_space<vmem>>, vector<1x16x15x128xf32>
      %106 = vector.shape_cast %105 : vector<1x16x15x128xf32> to vector<16x15x128xf32>
      %c0_88 = arith.constant 0 : index
      %c1_89 = arith.constant 1 : index
      %c1_90 = arith.constant 1 : index
      %c0_91 = arith.constant 0 : index
      %107 = vector.load %arg8[%c0_88, %c1_89, %c1_90, %c0_91] : memref<3x18x16x128xf32, #tpu.memory_space<vmem>>, vector<1x16x15x128xf32>
      %108 = vector.shape_cast %107 : vector<1x16x15x128xf32> to vector<16x15x128xf32>
      %109 = vector.shape_cast %106 : vector<16x15x128xf32> to vector<1x16x15x128xf32>
      tpu.vector_store %arg8[%c0_88, %c1_89, %c1_90, %c0_91], %109 {strides = array<i32>} : memref<3x18x16x128xf32, #tpu.memory_space<vmem>>, vector<1x16x15x128xf32>,
      %c0_92 = arith.constant 0 : index
      %c0_93 = arith.constant 0 : index
      %c1_94 = arith.constant 1 : index
      %c0_95 = arith.constant 0 : index
      %110 = vector.load %arg3[%c0_92, %c0_93, %c1_94, %c0_95] : memref<1x16x16x128xf32, #tpu.memory_space<vmem>>, vector<1x16x15x128xf32>
      %111 = vector.shape_cast %110 : vector<1x16x15x128xf32> to vector<16x15x128xf32>
      %c2_96 = arith.constant 2 : index
      %c1_97 = arith.constant 1 : index
      %c0_98 = arith.constant 0 : index
      %c0_99 = arith.constant 0 : index
      %112 = vector.load %arg8[%c2_96, %c1_97, %c0_98, %c0_99] : memref<3x18x16x128xf32, #tpu.memory_space<vmem>>, vector<1x16x15x128xf32>
      %113 = vector.shape_cast %112 : vector<1x16x15x128xf32> to vector<16x15x128xf32>
      %114 = vector.shape_cast %111 : vector<16x15x128xf32> to vector<1x16x15x128xf32>
      tpu.vector_store %arg8[%c2_96, %c1_97, %c0_98, %c0_99], %114 {strides = array<i32>} : memref<3x18x16x128xf32, #tpu.memory_space<vmem>>, vector<1x16x15x128xf32>,
    } else {
    }
    %c16_i32 = arith.constant 16 : i32
    %3 = arith.muli %arg2, %c16_i32 : i32
    %4 = tpu.assume_multiple %3, 16 : i32
    %cst = arith.constant 0.000000e+00 : f32
    %5 = vector.broadcast %cst : f32 to vector<256x128xf32>
    %c0_i32_1 = arith.constant 0 : i32
    %6 = arith.addi %4, %c0_i32_1 : i32
    %c0 = arith.constant 0 : index
    %7 = arith.index_cast %6 : i32 to index
    %c0_2 = arith.constant 0 : index
    %c0_3 = arith.constant 0 : index
    %8 = vector.load %arg8[%c0, %7, %c0_2, %c0_3] : memref<3x18x16x128xf32, #tpu.memory_space<vmem>>, vector<1x16x16x128xf32>
    %9 = vector.shape_cast %8 : vector<1x16x16x128xf32> to vector<16x16x128xf32>
    %10 = vector.shape_cast %9 : vector<16x16x128xf32> to vector<256x128xf32>
    %c0_4 = arith.constant 0 : index
    %c0_5 = arith.constant 0 : index
    %c0_6 = arith.constant 0 : index
    %11 = vector.load %arg4[%c0_4, %c0_5, %c0_6] : memref<9x128x128xf32, #tpu.memory_space<vmem>>, vector<1x128x128xf32>
    %12 = vector.shape_cast %11 : vector<1x128x128xf32> to vector<128x128xf32>
    %cst_7 = arith.constant dense<0.000000e+00> : vector<256x128xf32>
    %13 = tpu.matmul %10, %12, %cst_7 {dimension_numbers = #tpu.dot_dimension_numbers<[1], [0], [0], [1], [0, 0, 1, 1], [], []>} : vector<256x128xf32>, vector<128x128xf32>, vector<256x128xf32> -> vector<256x128xf32>
    %14 = arith.addf %5, %13 : vector<256x128xf32>
    %c0_i32_8 = arith.constant 0 : i32
    %15 = arith.addi %4, %c0_i32_8 : i32
    %c1 = arith.constant 1 : index
    %16 = arith.index_cast %15 : i32 to index
    %c0_9 = arith.constant 0 : index
    %c0_10 = arith.constant 0 : index
    %17 = vector.load %arg8[%c1, %16, %c0_9, %c0_10] : memref<3x18x16x128xf32, #tpu.memory_space<vmem>>, vector<1x16x16x128xf32>
    %18 = vector.shape_cast %17 : vector<1x16x16x128xf32> to vector<16x16x128xf32>
    %19 = vector.shape_cast %18 : vector<16x16x128xf32> to vector<256x128xf32>
    %c1_11 = arith.constant 1 : index
    %c0_12 = arith.constant 0 : index
    %c0_13 = arith.constant 0 : index
    %20 = vector.load %arg4[%c1_11, %c0_12, %c0_13] : memref<9x128x128xf32, #tpu.memory_space<vmem>>, vector<1x128x128xf32>
    %21 = vector.shape_cast %20 : vector<1x128x128xf32> to vector<128x128xf32>
    %cst_14 = arith.constant dense<0.000000e+00> : vector<256x128xf32>
    %22 = tpu.matmul %19, %21, %cst_14 {dimension_numbers = #tpu.dot_dimension_numbers<[1], [0], [0], [1], [0, 0, 1, 1], [], []>} : vector<256x128xf32>, vector<128x128xf32>, vector<256x128xf32> -> vector<256x128xf32>
    %23 = arith.addf %14, %22 : vector<256x128xf32>
    %c0_i32_15 = arith.constant 0 : i32
    %24 = arith.addi %4, %c0_i32_15 : i32
    %c2 = arith.constant 2 : index
    %25 = arith.index_cast %24 : i32 to index
    %c0_16 = arith.constant 0 : index
    %c0_17 = arith.constant 0 : index
    %26 = vector.load %arg8[%c2, %25, %c0_16, %c0_17] : memref<3x18x16x128xf32, #tpu.memory_space<vmem>>, vector<1x16x16x128xf32>
    %27 = vector.shape_cast %26 : vector<1x16x16x128xf32> to vector<16x16x128xf32>
    %28 = vector.shape_cast %27 : vector<16x16x128xf32> to vector<256x128xf32>
    %c2_18 = arith.constant 2 : index
    %c0_19 = arith.constant 0 : index
    %c0_20 = arith.constant 0 : index
    %29 = vector.load %arg4[%c2_18, %c0_19, %c0_20] : memref<9x128x128xf32, #tpu.memory_space<vmem>>, vector<1x128x128xf32>
    %30 = vector.shape_cast %29 : vector<1x128x128xf32> to vector<128x128xf32>
    %cst_21 = arith.constant dense<0.000000e+00> : vector<256x128xf32>
    %31 = tpu.matmul %28, %30, %cst_21 {dimension_numbers = #tpu.dot_dimension_numbers<[1], [0], [0], [1], [0, 0, 1, 1], [], []>} : vector<256x128xf32>, vector<128x128xf32>, vector<256x128xf32> -> vector<256x128xf32>
    %32 = arith.addf %23, %31 : vector<256x128xf32>
    %c1_i32 = arith.constant 1 : i32
    %33 = arith.addi %4, %c1_i32 : i32
    %c0_22 = arith.constant 0 : index
    %34 = arith.index_cast %33 : i32 to index
    %c0_23 = arith.constant 0 : index
    %c0_24 = arith.constant 0 : index
    %35 = vector.load %arg8[%c0_22, %34, %c0_23, %c0_24] : memref<3x18x16x128xf32, #tpu.memory_space<vmem>>, vector<1x16x16x128xf32>
    %36 = vector.shape_cast %35 : vector<1x16x16x128xf32> to vector<16x16x128xf32>
    %37 = vector.shape_cast %36 : vector<16x16x128xf32> to vector<256x128xf32>
    %c3 = arith.constant 3 : index
    %c0_25 = arith.constant 0 : index
    %c0_26 = arith.constant 0 : index
    %38 = vector.load %arg4[%c3, %c0_25, %c0_26] : memref<9x128x128xf32, #tpu.memory_space<vmem>>, vector<1x128x128xf32>
    %39 = vector.shape_cast %38 : vector<1x128x128xf32> to vector<128x128xf32>
    %cst_27 = arith.constant dense<0.000000e+00> : vector<256x128xf32>
    %40 = tpu.matmul %37, %39, %cst_27 {dimension_numbers = #tpu.dot_dimension_numbers<[1], [0], [0], [1], [0, 0, 1, 1], [], []>} : vector<256x128xf32>, vector<128x128xf32>, vector<256x128xf32> -> vector<256x128xf32>
    %41 = arith.addf %32, %40 : vector<256x128xf32>
    %c1_i32_28 = arith.constant 1 : i32
    %42 = arith.addi %4, %c1_i32_28 : i32
    %c1_29 = arith.constant 1 : index
    %43 = arith.index_cast %42 : i32 to index
    %c0_30 = arith.constant 0 : index
    %c0_31 = arith.constant 0 : index
    %44 = vector.load %arg8[%c1_29, %43, %c0_30, %c0_31] : memref<3x18x16x128xf32, #tpu.memory_space<vmem>>, vector<1x16x16x128xf32>
    %45 = vector.shape_cast %44 : vector<1x16x16x128xf32> to vector<16x16x128xf32>
    %46 = vector.shape_cast %45 : vector<16x16x128xf32> to vector<256x128xf32>
    %c4 = arith.constant 4 : index
    %c0_32 = arith.constant 0 : index
    %c0_33 = arith.constant 0 : index
    %47 = vector.load %arg4[%c4, %c0_32, %c0_33] : memref<9x128x128xf32, #tpu.memory_space<vmem>>, vector<1x128x128xf32>
    %48 = vector.shape_cast %47 : vector<1x128x128xf32> to vector<128x128xf32>
    %cst_34 = arith.constant dense<0.000000e+00> : vector<256x128xf32>
    %49 = tpu.matmul %46, %48, %cst_34 {dimension_numbers = #tpu.dot_dimension_numbers<[1], [0], [0], [1], [0, 0, 1, 1], [], []>} : vector<256x128xf32>, vector<128x128xf32>, vector<256x128xf32> -> vector<256x128xf32>
    %50 = arith.addf %41, %49 : vector<256x128xf32>
    %c1_i32_35 = arith.constant 1 : i32
    %51 = arith.addi %4, %c1_i32_35 : i32
    %c2_36 = arith.constant 2 : index
    %52 = arith.index_cast %51 : i32 to index
    %c0_37 = arith.constant 0 : index
    %c0_38 = arith.constant 0 : index
    %53 = vector.load %arg8[%c2_36, %52, %c0_37, %c0_38] : memref<3x18x16x128xf32, #tpu.memory_space<vmem>>, vector<1x16x16x128xf32>
    %54 = vector.shape_cast %53 : vector<1x16x16x128xf32> to vector<16x16x128xf32>
    %55 = vector.shape_cast %54 : vector<16x16x128xf32> to vector<256x128xf32>
    %c5 = arith.constant 5 : index
    %c0_39 = arith.constant 0 : index
    %c0_40 = arith.constant 0 : index
    %56 = vector.load %arg4[%c5, %c0_39, %c0_40] : memref<9x128x128xf32, #tpu.memory_space<vmem>>, vector<1x128x128xf32>
    %57 = vector.shape_cast %56 : vector<1x128x128xf32> to vector<128x128xf32>
    %cst_41 = arith.constant dense<0.000000e+00> : vector<256x128xf32>
    %58 = tpu.matmul %55, %57, %cst_41 {dimension_numbers = #tpu.dot_dimension_numbers<[1], [0], [0], [1], [0, 0, 1, 1], [], []>} : vector<256x128xf32>, vector<128x128xf32>, vector<256x128xf32> -> vector<256x128xf32>
    %59 = arith.addf %50, %58 : vector<256x128xf32>
    %c2_i32 = arith.constant 2 : i32
    %60 = arith.addi %4, %c2_i32 : i32
    %c0_42 = arith.constant 0 : index
    %61 = arith.index_cast %60 : i32 to index
    %c0_43 = arith.constant 0 : index
    %c0_44 = arith.constant 0 : index
    %62 = vector.load %arg8[%c0_42, %61, %c0_43, %c0_44] : memref<3x18x16x128xf32, #tpu.memory_space<vmem>>, vector<1x16x16x128xf32>
    %63 = vector.shape_cast %62 : vector<1x16x16x128xf32> to vector<16x16x128xf32>
    %64 = vector.shape_cast %63 : vector<16x16x128xf32> to vector<256x128xf32>
    %c6 = arith.constant 6 : index
    %c0_45 = arith.constant 0 : index
    %c0_46 = arith.constant 0 : index
    %65 = vector.load %arg4[%c6, %c0_45, %c0_46] : memref<9x128x128xf32, #tpu.memory_space<vmem>>, vector<1x128x128xf32>
    %66 = vector.shape_cast %65 : vector<1x128x128xf32> to vector<128x128xf32>
    %cst_47 = arith.constant dense<0.000000e+00> : vector<256x128xf32>
    %67 = tpu.matmul %64, %66, %cst_47 {dimension_numbers = #tpu.dot_dimension_numbers<[1], [0], [0], [1], [0, 0, 1, 1], [], []>} : vector<256x128xf32>, vector<128x128xf32>, vector<256x128xf32> -> vector<256x128xf32>
    %68 = arith.addf %59, %67 : vector<256x128xf32>
    %c2_i32_48 = arith.constant 2 : i32
    %69 = arith.addi %4, %c2_i32_48 : i32
    %c1_49 = arith.constant 1 : index
    %70 = arith.index_cast %69 : i32 to index
    %c0_50 = arith.constant 0 : index
    %c0_51 = arith.constant 0 : index
    %71 = vector.load %arg8[%c1_49, %70, %c0_50, %c0_51] : memref<3x18x16x128xf32, #tpu.memory_space<vmem>>, vector<1x16x16x128xf32>
    %72 = vector.shape_cast %71 : vector<1x16x16x128xf32> to vector<16x16x128xf32>
    %73 = vector.shape_cast %72 : vector<16x16x128xf32> to vector<256x128xf32>
    %c7 = arith.constant 7 : index
    %c0_52 = arith.constant 0 : index
    %c0_53 = arith.constant 0 : index
    %74 = vector.load %arg4[%c7, %c0_52, %c0_53] : memref<9x128x128xf32, #tpu.memory_space<vmem>>, vector<1x128x128xf32>
    %75 = vector.shape_cast %74 : vector<1x128x128xf32> to vector<128x128xf32>
    %cst_54 = arith.constant dense<0.000000e+00> : vector<256x128xf32>
    %76 = tpu.matmul %73, %75, %cst_54 {dimension_numbers = #tpu.dot_dimension_numbers<[1], [0], [0], [1], [0, 0, 1, 1], [], []>} : vector<256x128xf32>, vector<128x128xf32>, vector<256x128xf32> -> vector<256x128xf32>
    %77 = arith.addf %68, %76 : vector<256x128xf32>
    %c2_i32_55 = arith.constant 2 : i32
    %78 = arith.addi %4, %c2_i32_55 : i32
    %c2_56 = arith.constant 2 : index
    %79 = arith.index_cast %78 : i32 to index
    %c0_57 = arith.constant 0 : index
    %c0_58 = arith.constant 0 : index
    %80 = vector.load %arg8[%c2_56, %79, %c0_57, %c0_58] : memref<3x18x16x128xf32, #tpu.memory_space<vmem>>, vector<1x16x16x128xf32>
    %81 = vector.shape_cast %80 : vector<1x16x16x128xf32> to vector<16x16x128xf32>
    %82 = vector.shape_cast %81 : vector<16x16x128xf32> to vector<256x128xf32>
    %c8 = arith.constant 8 : index
    %c0_59 = arith.constant 0 : index
    %c0_60 = arith.constant 0 : index
    %83 = vector.load %arg4[%c8, %c0_59, %c0_60] : memref<9x128x128xf32, #tpu.memory_space<vmem>>, vector<1x128x128xf32>
    %84 = vector.shape_cast %83 : vector<1x128x128xf32> to vector<128x128xf32>
    %cst_61 = arith.constant dense<0.000000e+00> : vector<256x128xf32>
    %85 = tpu.matmul %82, %84, %cst_61 {dimension_numbers = #tpu.dot_dimension_numbers<[1], [0], [0], [1], [0, 0, 1, 1], [], []>} : vector<256x128xf32>, vector<128x128xf32>, vector<256x128xf32> -> vector<256x128xf32>
    %86 = arith.addf %77, %85 : vector<256x128xf32>
    %c0_62 = arith.constant 0 : index
    %c0_63 = arith.constant 0 : index
    %87 = vector.load %arg5[%c0_62, %c0_63] : memref<1x128xf32, #tpu.memory_space<vmem>>, vector<1x128xf32>
    %88 = vector.broadcast %87 : vector<1x128xf32> to vector<256x128xf32>
    %89 = arith.addf %86, %88 : vector<256x128xf32>
    %c0_64 = arith.constant 0 : index
    %c0_65 = arith.constant 0 : index
    %c0_66 = arith.constant 0 : index
    %90 = vector.load %arg6[%c0_64, %c0_65, %c0_66] : memref<1x256x128xf32, #tpu.memory_space<vmem>>, vector<1x256x128xf32>
    %91 = vector.shape_cast %90 : vector<1x256x128xf32> to vector<256x128xf32>
    %92 = arith.addf %89, %91 : vector<256x128xf32>
    %cst_67 = arith.constant 0.000000e+00 : f32
    %93 = vector.broadcast %cst_67 : f32 to vector<256x128xf32>
    %94 = arith.maximumf %92, %93 : vector<256x128xf32>
    %c0_68 = arith.constant 0 : index
    %c0_69 = arith.constant 0 : index
    %c0_70 = arith.constant 0 : index
    %95 = vector.load %arg7[%c0_68, %c0_69, %c0_70] : memref<1x256x128xf32, #tpu.memory_space<vmem>>, vector<1x256x128xf32>
    %96 = vector.shape_cast %95 : vector<1x256x128xf32> to vector<256x128xf32>
    %97 = vector.shape_cast %94 : vector<256x128xf32> to vector<1x256x128xf32>
    tpu.vector_store %arg7[%c0_68, %c0_69, %c0_70], %97 {strides = array<i32>} : memref<1x256x128xf32, #tpu.memory_space<vmem>>, vector<1x256x128xf32>,
    return
  }
  func.func @transform_0(%arg0: i32, %arg1: i32, %arg2: i32) -> (i32, i32, i32, i32) {
    %c0_i32 = arith.constant 0 : i32
    %c0_i32_0 = arith.constant 0 : i32
    %c0_i32_1 = arith.constant 0 : i32
    %c0_i32_2 = arith.constant 0 : i32
    return %arg1, %c0_i32, %c0_i32_0, %c0_i32_1 : i32, i32, i32, i32
  }
  func.func @transform_1(%arg0: i32, %arg1: i32, %arg2: i32) -> (i32, i32, i32) {
    %c0_i32 = arith.constant 0 : i32
    %c0_i32_0 = arith.constant 0 : i32
    %c0_i32_1 = arith.constant 0 : i32
    return %c0_i32, %c0_i32_0, %arg0 : i32, i32, i32
  }
  func.func @transform_2(%arg0: i32, %arg1: i32, %arg2: i32) -> (i32, i32) {
    %c0_i32 = arith.constant 0 : i32
    %c0_i32_0 = arith.constant 0 : i32
    return %c0_i32, %arg0 : i32, i32
  }
  func.func @transform_3(%arg0: i32, %arg1: i32, %arg2: i32) -> (i32, i32, i32) {
    %c0_i32 = arith.constant 0 : i32
    return %arg1, %arg2, %arg0 : i32, i32, i32
  }
  func.func @transform_4(%arg0: i32, %arg1: i32, %arg2: i32) -> (i32, i32, i32) {
    %c0_i32 = arith.constant 0 : i32
    return %arg1, %arg2, %arg0 : i32, i32, i32
  }
}

</mosaic_0001>

<bundles_post_ra>
// kernel: basic_block_forward.4
= control target key start
LH: loop header
LB: loop body
LE: loop exit
PB: predicated region body
PF: predicated region fallthrough
CT: control target
= control target key end

     0   :  { %s925_s12 = smov 0   ;;  %s927_s13 = smov 0   ;;  %s1105_s0 = inlined_call_operand.vmem [shape: f32[512,4], index: 0, kind: input, shape index: {}]   ;;  %s1106_s1 = inlined_call_operand.vmem [shape: f32[4,128], index: 1, kind: input, shape index: {}]   ;;  %s1107_s2 = inlined_call_operand.vmem [shape: f32[1,128], index: 2, kind: input, shape index: {}]   ;;  %s1108_s3 = inlined_call_operand.vmem [shape: f32[512,128], index: 3, kind: output, shape index: {}]  }
   0x1   :  { %s929_s14 = smov 0  }
   0x2 LB: > { %s25_s15 = sadd.s32 1, %s899_s13  ;;  %p731_p0 = scmp.ge.s32.totalorder %s903_s14, 1  ;;  %s903_s14 = sphi %s929_s14, %s13_s14   ;;  %s899_s13 = sphi %s927_s13, %s1110_s13   ;;  %s895_s12 = sphi %s925_s12, %s1109_s12  }
   0x3   : > { %p27_p1 = scmp.ge.s32.totalorder %s25_s15, 2  ;;  %p169_p2 = scmp.lt.s32.totalorder %s903_s14, 3 }
   0x5   : > { %s1112_s15 = smov (%p27_p1, %s25_s15), 0  ;;  %p170_p3 = pnand %p731_p0, %p169_p2 }
   0x6   : > { %v257_v0 = vld [vmem:[%s1106_s1] sm:$0xf] (!%p170_p3)  ;;  %vm362_vm0 = vcmask (!%p170_p3), 1043456   ;;  %s732_s18 = sshll.u32 (!%p170_p3), %s895_s12, 5  ;;  %vm265_vm1 = vcmask (!%p170_p3), 31744  }
   0x7   : > { %173 = sbr.rel (%p170_p3) target bundleno = 264 (0x108), region = 32  ;;  %805 = vmatprep.subr.msk.mxu0 (!%p170_p3), %vm362_vm0, %v257_v0  ;;  %855 = vmatprep.subr.msk.mxu1 (!%p170_p3), %vm362_vm0, %v257_v0  ;;  %p204_p4 = scmp.lt.s32.totalorder (!%p170_p3), %s732_s18, 63  ;;  %v1023_v33 = vld [vmem:[%s1107_s2] ss:$0 sm:$0xff] (!%p170_p3) }
   0x8   : > { %806 = vmatpush3.msk.msra.mxu0 (!%p170_p3), %vm362_vm0, %v257_v0  ;;  %856 = vmatpush3.msk.msra.mxu1 (!%p170_p3), %vm362_vm0, %v257_v0 }
   0xe   : > { %s1114_s18 = smov (!%p204_p4, %s732_s18), 63 }
   0xf   : > { %s733_s19 = sshll.u32 %s1114_s18, 3 }
  0x10   : > { %s954_s22 = scalar_lea.vmem %s1105_s0, %s733_s19  ;;  %s1030_s27 = scalar_lea.vmem %s1108_s3, %s733_s19 }
  0x11   : > { %v225_v1 = vld [vmem:[%s954_s22] sm:$0xff]  ;;  %v226_v3 = vld [vmem:[%s954_s22 + $0x8] sm:$0xff]  ;;  %v227_v5 = vld [vmem:[%s954_s22 + $0x10] sm:$0xff] }
  0x12   : > { %v241_v2 = vld [vmem:[%s954_s22 + $0x80] sm:$0xff]  ;;  %807 = vmatprep.mubr.msk.f32.mxu0 %vm265_vm1, %v225_v1  ;;  %v242_v4 = vld [vmem:[%s954_s22 + $0x88] sm:$0xff]  ;;  %v243_v6 = vld [vmem:[%s954_s22 + $0x90] sm:$0xff] }
  0x13   : > { %831 = vmatprep.mubr.msk.f32.mxu1 %vm265_vm1, %v241_v2  ;;  %808 = vmatmul.mubr.msk.f32.vlgmr.msra.gmra.mrb[0].mxu0 %vm265_vm1, %v226_v3  ;;  %v228_v7 = vld [vmem:[%s954_s22 + $0x18] sm:$0xff]  ;;  %v229_v9 = vld [vmem:[%s954_s22 + $0x20] sm:$0xff]  ;;  %v230_v11 = vld [vmem:[%s954_s22 + $0x28] sm:$0xff] }
  0x14   : > { %832 = vmatmul.mubr.msk.f32.vlgmr.msra.gmra.mrb[0].mxu1 %vm265_vm1, %v242_v4  ;;  %810 = vmatprep.mubr.msk.f32.mxu0 %vm265_vm1, %v227_v5  ;;  %v244_v8 = vld [vmem:[%s954_s22 + $0x98] sm:$0xff]  ;;  %v245_v10 = vld [vmem:[%s954_s22 + $0xa0] sm:$0xff]  ;;  %v246_v12 = vld [vmem:[%s954_s22 + $0xa8] sm:$0xff] }
  0x15   : > { %834 = vmatprep.mubr.msk.f32.mxu1 %vm265_vm1, %v243_v6  ;;  %v231_v13 = vld [vmem:[%s954_s22 + $0x30] sm:$0xff]  ;;  %v232_v15 = vld [vmem:[%s954_s22 + $0x38] sm:$0xff]  ;;  %v233_v17 = vld [vmem:[%s954_s22 + $0x40] sm:$0xff] }
  0x16   : > { %v247_v14 = vld [vmem:[%s954_s22 + $0xb0] sm:$0xff]  ;;  %v248_v16 = vld [vmem:[%s954_s22 + $0xb8] sm:$0xff]  ;;  %v249_v18 = vld [vmem:[%s954_s22 + $0xc0] sm:$0xff] }
  0x17   : > { %811 = vmatmul.mubr.msk.f32.gmra.mrb[2].mxu0 %vm265_vm1, %v228_v7  ;;  %v234_v19 = vld [vmem:[%s954_s22 + $0x48] sm:$0xff]  ;;  %v235_v21 = vld [vmem:[%s954_s22 + $0x50] sm:$0xff]  ;;  %v236_v23 = vld [vmem:[%s954_s22 + $0x58] sm:$0xff] }
  0x18   : > { %835 = vmatmul.mubr.msk.f32.gmra.mrb[2].mxu1 %vm265_vm1, %v244_v8  ;;  %813 = vmatprep.mubr.msk.f32.mxu0 %vm265_vm1, %v229_v9  ;;  %v250_v20 = vld [vmem:[%s954_s22 + $0xc8] sm:$0xff]  ;;  %v251_v22 = vld [vmem:[%s954_s22 + $0xd0] sm:$0xff]  ;;  %v252_v24 = vld [vmem:[%s954_s22 + $0xd8] sm:$0xff] }
  0x19   : > { %837 = vmatprep.mubr.msk.f32.mxu1 %vm265_vm1, %v245_v10  ;;  %v237_v25 = vld [vmem:[%s954_s22 + $0x60] sm:$0xff]  ;;  %v238_v27 = vld [vmem:[%s954_s22 + $0x68] sm:$0xff]  ;;  %v239_v29 = vld [vmem:[%s954_s22 + $0x70] sm:$0xff] }
  0x1a   : > { %v253_v26 = vld [vmem:[%s954_s22 + $0xe0] sm:$0xff]  ;;  %v254_v28 = vld [vmem:[%s954_s22 + $0xe8] sm:$0xff]  ;;  %v255_v30 = vld [vmem:[%s954_s22 + $0xf0] sm:$0xff] }
  0x1b   : > { %814 = vmatmul.mubr.msk.f32.gmra.mrb[4].mxu0 %vm265_vm1, %v230_v11  ;;  %v240_v31 = vld [vmem:[%s954_s22 + $0x78] sm:$0xff] }
  0x1c   : > { %838 = vmatmul.mubr.msk.f32.gmra.mrb[4].mxu1 %vm265_vm1, %v246_v12  ;;  %816 = vmatprep.mubr.msk.f32.mxu0 %vm265_vm1, %v231_v13  ;;  %v256_v32 = vld [vmem:[%s954_s22 + $0xf8] sm:$0xff] }
  0x1d   : > { %840 = vmatprep.mubr.msk.f32.mxu1 %vm265_vm1, %v247_v14 }
  0x1f   : > { %817 = vmatmul.mubr.msk.f32.gmra.mrb[6].mxu0 %vm265_vm1, %v232_v15 }
  0x20   : > { %841 = vmatmul.mubr.msk.f32.gmra.mrb[6].mxu1 %vm265_vm1, %v248_v16  ;;  %819 = vmatprep.mubr.msk.f32.mxu0 %vm265_vm1, %v233_v17 }
  0x21   : > { %843 = vmatprep.mubr.msk.f32.mxu1 %vm265_vm1, %v249_v18 }
  0x23   : > { %820 = vmatmul.mubr.msk.f32.gmra.mrb[8].mxu0 %vm265_vm1, %v234_v19 }
  0x24   : > { %844 = vmatmul.mubr.msk.f32.gmra.mrb[8].mxu1 %vm265_vm1, %v250_v20  ;;  %822 = vmatprep.mubr.msk.f32.mxu0 %vm265_vm1, %v235_v21 }
  0x25   : > { %846 = vmatprep.mubr.msk.f32.mxu1 %vm265_vm1, %v251_v22 }
  0x27   : > { %823 = vmatmul.mubr.msk.f32.gmra.mrb[10].mxu0 %vm265_vm1, %v236_v23 }
  0x28   : > { %847 = vmatmul.mubr.msk.f32.gmra.mrb[10].mxu1 %vm265_vm1, %v252_v24  ;;  %825 = vmatprep.mubr.msk.f32.mxu0 %vm265_vm1, %v237_v25 }
  0x29   : > { %849 = vmatprep.mubr.msk.f32.mxu1 %vm265_vm1, %v253_v26 }
  0x2b   : > { %826 = vmatmul.mubr.msk.f32.gmra.mrb[12].mxu0 %vm265_vm1, %v238_v27 }
  0x2c   : > { %850 = vmatmul.mubr.msk.f32.gmra.mrb[12].mxu1 %vm265_vm1, %v254_v28  ;;  %828 = vmatprep.mubr.msk.f32.mxu0 %vm265_vm1, %v239_v29 }
  0x2d   : > { %852 = vmatprep.mubr.msk.f32.mxu1 %vm265_vm1, %v255_v30 }
  0x2f   : > { %829 = vmatmul.mubr.msk.f32.gmra.mrb[14].mxu0 %vm265_vm1, %v240_v31 }
  0x30   : > { %853 = vmatmul.mubr.msk.f32.gmra.mrb[14].mxu1 %vm265_vm1, %v256_v32 }
  0xe6   : > { %v809_v34 = vpop.f32.mrb[0].mxu0 }
  0xe7   : > { %v833_v35 = vpop.f32.mrb[0].mxu1  ;;  %v438_v36 = vadd.f32 %v809_v34, %v1023_v33  ;;  %v432_v38 = vpop.f32.mrb[1].mxu0 }
  0xe8   : > { %v518_v37 = vadd.f32 %v833_v35, %v1023_v33  ;;  %v512_v39 = vpop.f32.mrb[1].mxu1  ;;  %v433_v40 = vadd.f32 %v1023_v33, %v432_v38 }
  0xe9   : > { %v513_v41 = vadd.f32 %v1023_v33, %v512_v39  ;;  %592 = vst [vmem:[%s1030_s27 + $0x8] sm:$0xff] %v438_v36 }
  0xea   : > { %608 = vst [vmem:[%s1030_s27 + $0x88] sm:$0xff] %v518_v37  ;;  %591 = vst [vmem:[%s1030_s27] sm:$0xff] %v433_v40  ;;  %v812_v42 = vpop.f32.mrb[2].mxu0 }
  0xeb   : > { %607 = vst [vmem:[%s1030_s27 + $0x80] sm:$0xff] %v513_v41  ;;  %v836_v43 = vpop.f32.mrb[2].mxu1  ;;  %v448_v44 = vadd.f32 %v812_v42, %v1023_v33  ;;  %v442_v46 = vpop.f32.mrb[3].mxu0 }
  0xec   : > { %v528_v45 = vadd.f32 %v836_v43, %v1023_v33  ;;  %v522_v47 = vpop.f32.mrb[3].mxu1  ;;  %v443_v48 = vadd.f32 %v1023_v33, %v442_v46 }
  0xed   : > { %v523_v49 = vadd.f32 %v1023_v33, %v522_v47  ;;  %594 = vst [vmem:[%s1030_s27 + $0x18] sm:$0xff] %v448_v44 }
  0xee   : > { %610 = vst [vmem:[%s1030_s27 + $0x98] sm:$0xff] %v528_v45  ;;  %593 = vst [vmem:[%s1030_s27 + $0x10] sm:$0xff] %v443_v48  ;;  %v815_v50 = vpop.f32.mrb[4].mxu0 }
  0xef   : > { %609 = vst [vmem:[%s1030_s27 + $0x90] sm:$0xff] %v523_v49  ;;  %v839_v51 = vpop.f32.mrb[4].mxu1  ;;  %v458_v52 = vadd.f32 %v815_v50, %v1023_v33  ;;  %v452_v54 = vpop.f32.mrb[5].mxu0 }
  0xf0   : > { %v538_v53 = vadd.f32 %v839_v51, %v1023_v33  ;;  %v532_v55 = vpop.f32.mrb[5].mxu1  ;;  %v453_v56 = vadd.f32 %v1023_v33, %v452_v54 }
  0xf1   : > { %v533_v57 = vadd.f32 %v1023_v33, %v532_v55  ;;  %596 = vst [vmem:[%s1030_s27 + $0x28] sm:$0xff] %v458_v52 }
  0xf2   : > { %612 = vst [vmem:[%s1030_s27 + $0xa8] sm:$0xff] %v538_v53  ;;  %595 = vst [vmem:[%s1030_s27 + $0x20] sm:$0xff] %v453_v56  ;;  %v818_v58 = vpop.f32.mrb[6].mxu0 }
  0xf3   : > { %611 = vst [vmem:[%s1030_s27 + $0xa0] sm:$0xff] %v533_v57  ;;  %v842_v59 = vpop.f32.mrb[6].mxu1  ;;  %v468_v60 = vadd.f32 %v818_v58, %v1023_v33  ;;  %v462_v62 = vpop.f32.mrb[7].mxu0 }
  0xf4   : > { %v548_v61 = vadd.f32 %v842_v59, %v1023_v33  ;;  %v542_v63 = vpop.f32.mrb[7].mxu1  ;;  %v463_v0 = vadd.f32 %v1023_v33, %v462_v62 }
  0xf5   : > { %v543_v1 = vadd.f32 %v1023_v33, %v542_v63  ;;  %598 = vst [vmem:[%s1030_s27 + $0x38] sm:$0xff] %v468_v60 }
  0xf6   : > { %614 = vst [vmem:[%s1030_s27 + $0xb8] sm:$0xff] %v548_v61  ;;  %597 = vst [vmem:[%s1030_s27 + $0x30] sm:$0xff] %v463_v0  ;;  %v821_v2 = vpop.f32.mrb[8].mxu0 }
  0xf7   : > { %613 = vst [vmem:[%s1030_s27 + $0xb0] sm:$0xff] %v543_v1  ;;  %v845_v3 = vpop.f32.mrb[8].mxu1  ;;  %v478_v4 = vadd.f32 %v821_v2, %v1023_v33  ;;  %v472_v6 = vpop.f32.mrb[9].mxu0 }
  0xf8   : > { %v558_v5 = vadd.f32 %v845_v3, %v1023_v33  ;;  %v552_v7 = vpop.f32.mrb[9].mxu1  ;;  %v473_v8 = vadd.f32 %v1023_v33, %v472_v6 }
  0xf9   : > { %v553_v9 = vadd.f32 %v1023_v33, %v552_v7  ;;  %600 = vst [vmem:[%s1030_s27 + $0x48] sm:$0xff] %v478_v4 }
  0xfa   : > { %616 = vst [vmem:[%s1030_s27 + $0xc8] sm:$0xff] %v558_v5  ;;  %599 = vst [vmem:[%s1030_s27 + $0x40] sm:$0xff] %v473_v8  ;;  %v824_v10 = vpop.f32.mrb[10].mxu0 }
  0xfb   : > { %615 = vst [vmem:[%s1030_s27 + $0xc0] sm:$0xff] %v553_v9  ;;  %v848_v11 = vpop.f32.mrb[10].mxu1  ;;  %v488_v12 = vadd.f32 %v824_v10, %v1023_v33  ;;  %v482_v14 = vpop.f32.mrb[11].mxu0 }
  0xfc   : > { %v568_v13 = vadd.f32 %v848_v11, %v1023_v33  ;;  %v562_v15 = vpop.f32.mrb[11].mxu1  ;;  %v483_v16 = vadd.f32 %v1023_v33, %v482_v14 }
  0xfd   : > { %v563_v17 = vadd.f32 %v1023_v33, %v562_v15  ;;  %602 = vst [vmem:[%s1030_s27 + $0x58] sm:$0xff] %v488_v12 }
  0xfe   : > { %618 = vst [vmem:[%s1030_s27 + $0xd8] sm:$0xff] %v568_v13  ;;  %601 = vst [vmem:[%s1030_s27 + $0x50] sm:$0xff] %v483_v16  ;;  %v827_v18 = vpop.f32.mrb[12].mxu0 }
  0xff   : > { %617 = vst [vmem:[%s1030_s27 + $0xd0] sm:$0xff] %v563_v17  ;;  %v851_v19 = vpop.f32.mrb[12].mxu1  ;;  %v498_v20 = vadd.f32 %v827_v18, %v1023_v33  ;;  %v492_v22 = vpop.f32.mrb[13].mxu0 }
 0x100   : > { %v578_v21 = vadd.f32 %v851_v19, %v1023_v33  ;;  %v572_v23 = vpop.f32.mrb[13].mxu1  ;;  %v493_v24 = vadd.f32 %v1023_v33, %v492_v22 }
 0x101   : > { %v573_v25 = vadd.f32 %v1023_v33, %v572_v23  ;;  %604 = vst [vmem:[%s1030_s27 + $0x68] sm:$0xff] %v498_v20 }
 0x102   : > { %620 = vst [vmem:[%s1030_s27 + $0xe8] sm:$0xff] %v578_v21  ;;  %603 = vst [vmem:[%s1030_s27 + $0x60] sm:$0xff] %v493_v24  ;;  %v830_v26 = vpop.f32.mrb[14].mxu0 }
 0x103   : > { %619 = vst [vmem:[%s1030_s27 + $0xe0] sm:$0xff] %v573_v25  ;;  %v854_v27 = vpop.f32.mrb[14].mxu1  ;;  %v508_v28 = vadd.f32 %v830_v26, %v1023_v33  ;;  %v502_v30 = vpop.f32.mrb[15].mxu0 }
 0x104   : > { %v588_v29 = vadd.f32 %v854_v27, %v1023_v33  ;;  %v582_v31 = vpop.f32.mrb[15].mxu1  ;;  %v503_v32 = vadd.f32 %v1023_v33, %v502_v30 }
 0x105   : > { %v583_v34 = vadd.f32 %v1023_v33, %v582_v31  ;;  %606 = vst [vmem:[%s1030_s27 + $0x78] sm:$0xff] %v508_v28 }
 0x106   : > { %622 = vst [vmem:[%s1030_s27 + $0xf8] sm:$0xff] %v588_v29  ;;  %605 = vst [vmem:[%s1030_s27 + $0x70] sm:$0xff] %v503_v32 }
 0x107   : > { %621 = vst [vmem:[%s1030_s27 + $0xf0] sm:$0xff] %v583_v34 }
 0x108 PF: > { %s13_s14 = sadd.s32 1, %s903_s14   ;;  %s1109_s12 = smov %s899_s13 }
 0x109   : > { %p10_p5 = scmp.ge.s32.totalorder %s13_s14, 4   ;;  %s1110_s13 = smov %s1112_s15 }
 0x10b   :  { %12 = sbr.rel (!%p10_p5) target bundleno = 2 (0x2), region = 68 }

// kernel: basic_block_forward.3
= control target key start
LH: loop header
LB: loop body
LE: loop exit
PB: predicated region body
PF: predicated region fallthrough
CT: control target
= control target key end

     0   :  { %s985_s12 = smov 0   ;;  %s987_s13 = smov 0   ;;  %s1181_s0 = inlined_call_operand.vmem [shape: f32[512,36], index: 0, kind: input, shape index: {}]   ;;  %s1182_s1 = inlined_call_operand.vmem [shape: f32[36,128], index: 1, kind: input, shape index: {}]   ;;  %s1183_s2 = inlined_call_operand.vmem [shape: f32[1,128], index: 2, kind: input, shape index: {}]   ;;  %s1184_s3 = inlined_call_operand.vmem [shape: f32[512,128], index: 3, kind: output, shape index: {}]  }
   0x1   :  { %s989_s14 = smov 0  }
   0x2 LB: > { %s25_s15 = sadd.s32 1, %s959_s13  ;;  %p767_p0 = scmp.ge.s32.totalorder %s963_s14, 1  ;;  %s963_s14 = sphi %s989_s14, %s13_s14   ;;  %s959_s13 = sphi %s987_s13, %s1186_s13   ;;  %s955_s12 = sphi %s985_s12, %s1185_s12  }
   0x3   : > { %p27_p1 = scmp.ge.s32.totalorder %s25_s15, 2  ;;  %p169_p2 = scmp.lt.s32.totalorder %s963_s14, 3 }
   0x5   : > { %s1188_s15 = smov (%p27_p1, %s25_s15), 0  ;;  %p170_p3 = pnand %p767_p0, %p169_p2 }
   0x6   : > { %v257_v0 = vld [vmem:[%s1182_s1] sm:$0xff] (!%p170_p3)  ;;  %v258_v1 = vld [vmem:[%s1182_s1 + $0x8] sm:$0xff] (!%p170_p3)  ;;  %v259_v2 = vld [vmem:[%s1182_s1 + $0x10] sm:$0xff] (!%p170_p3)  ;;  %s768_s22 = sshll.u32 (!%p170_p3), %s955_s12, 5  ;;  %vm366_vm0 = vcmask (!%p170_p3), 1043456   ;;  %vm269_vm1 = vcmask (!%p170_p3), 293888  }
   0x7   : > { %173 = sbr.rel (%p170_p3) target bundleno = 266 (0x10a), region = 32  ;;  %v903_v3 = vpack.c.bf16 (!%p170_p3), %v258_v1, %v257_v0  ;;  %v260_v4 = vld [vmem:[%s1182_s1 + $0x18] sm:$0xff] (!%p170_p3)  ;;  %p204_p4 = scmp.lt.s32.totalorder (!%p170_p3), %s768_s22, 63  ;;  %v261_v6 = vld [vmem:[%s1182_s1 + $0x20] sm:$0xf] (!%p170_p3) }
   0x8   : > { %v907_v5 = vpack.c.bf16 (!%p170_p3), %v260_v4, %v259_v2  ;;  %v1099_v39 = vld [vmem:[%s1183_s2] ss:$0 sm:$0xff] (!%p170_p3) }
   0x9   : > { %904 = vmatprep.subr.bf16.mxu0 (!%p170_p3), %v903_v3  ;;  %911 = vmatprep.subr.bf16.mxu1 (!%p170_p3), %v903_v3 }
   0xa   : > { %906 = vmatpush3.bf16.msra.mxu0 (!%p170_p3), %v903_v3  ;;  %914 = vmatpush3.bf16.msra.mxu1 (!%p170_p3), %v903_v3 }
   0xb   : > { %908 = vmatprep.subr.bf16.mxu0 (!%p170_p3), %v907_v5  ;;  %912 = vmatprep.subr.bf16.mxu1 (!%p170_p3), %v907_v5 }
   0xe   : > { %s1190_s22 = smov (!%p204_p4, %s768_s22), 63  ;;  %910 = vmatpush3.bf16.msra.mxu0 %v907_v5  ;;  %915 = vmatpush3.bf16.msra.mxu1 %v907_v5 }
   0xf   : > { %s769_s25 = sshll.u32 %s1190_s22, 3  ;;  %853 = vmatprep.subr.msk.mxu0 %vm366_vm0, %v261_v6  ;;  %913 = vmatprep.subr.msk.mxu1 %vm366_vm0, %v261_v6 }
  0x10   : > { %s1026_s30 = scalar_lea.vmem %s1181_s0, %s769_s25  ;;  %s1108_s8 = scalar_lea.vmem %s1184_s3, %s769_s25 }
  0x11   : > { %v225_v7 = vld [vmem:[%s1026_s30] sm:$0xff]  ;;  %v226_v9 = vld [vmem:[%s1026_s30 + $0x8] sm:$0xff]  ;;  %v227_v11 = vld [vmem:[%s1026_s30 + $0x10] sm:$0xff] }
  0x12   : > { %v241_v8 = vld [vmem:[%s1026_s30 + $0x80] sm:$0xff]  ;;  %855 = vmatprep.mubr.msk.f32.mxu0 %vm269_vm1, %v225_v7  ;;  %v242_v10 = vld [vmem:[%s1026_s30 + $0x88] sm:$0xff]  ;;  %v243_v12 = vld [vmem:[%s1026_s30 + $0x90] sm:$0xff]  ;;  %854 = vmatpush3.msk.msra.mxu0 %vm366_vm0, %v261_v6 }
  0x13   : > { %879 = vmatprep.mubr.msk.f32.mxu1 %vm269_vm1, %v241_v8  ;;  %916 = vmatpush3.msk.msra.mxu1 %vm366_vm0, %v261_v6  ;;  %v228_v13 = vld [vmem:[%s1026_s30 + $0x18] sm:$0xff]  ;;  %v229_v15 = vld [vmem:[%s1026_s30 + $0x20] sm:$0xff]  ;;  %v230_v17 = vld [vmem:[%s1026_s30 + $0x28] sm:$0xff] }
  0x14   : > { %856 = vmatmul.mubr.msk.f32.vlgmr.msra.gmra.mrb[0].mxu0 %vm269_vm1, %v226_v9  ;;  %880 = vmatmul.mubr.msk.f32.vlgmr.msra.gmra.mrb[0].mxu1 %vm269_vm1, %v242_v10  ;;  %v244_v14 = vld [vmem:[%s1026_s30 + $0x98] sm:$0xff]  ;;  %v245_v16 = vld [vmem:[%s1026_s30 + $0xa0] sm:$0xff]  ;;  %v246_v18 = vld [vmem:[%s1026_s30 + $0xa8] sm:$0xff] }
  0x15   : > { %858 = vmatprep.mubr.msk.f32.mxu0 %vm269_vm1, %v227_v11  ;;  %882 = vmatprep.mubr.msk.f32.mxu1 %vm269_vm1, %v243_v12  ;;  %v231_v19 = vld [vmem:[%s1026_s30 + $0x30] sm:$0xff]  ;;  %v232_v21 = vld [vmem:[%s1026_s30 + $0x38] sm:$0xff]  ;;  %v233_v23 = vld [vmem:[%s1026_s30 + $0x40] sm:$0xff] }
  0x16   : > { %v247_v20 = vld [vmem:[%s1026_s30 + $0xb0] sm:$0xff]  ;;  %v248_v22 = vld [vmem:[%s1026_s30 + $0xb8] sm:$0xff]  ;;  %v249_v24 = vld [vmem:[%s1026_s30 + $0xc0] sm:$0xff] }
  0x17   : > { %v234_v25 = vld [vmem:[%s1026_s30 + $0x48] sm:$0xff]  ;;  %v235_v27 = vld [vmem:[%s1026_s30 + $0x50] sm:$0xff]  ;;  %v236_v29 = vld [vmem:[%s1026_s30 + $0x58] sm:$0xff] }
  0x18   : > { %859 = vmatmul.mubr.msk.f32.gmra.mrb[2].mxu0 %vm269_vm1, %v228_v13  ;;  %883 = vmatmul.mubr.msk.f32.gmra.mrb[2].mxu1 %vm269_vm1, %v244_v14  ;;  %v250_v26 = vld [vmem:[%s1026_s30 + $0xc8] sm:$0xff]  ;;  %v251_v28 = vld [vmem:[%s1026_s30 + $0xd0] sm:$0xff]  ;;  %v252_v30 = vld [vmem:[%s1026_s30 + $0xd8] sm:$0xff] }
  0x19   : > { %861 = vmatprep.mubr.msk.f32.mxu0 %vm269_vm1, %v229_v15  ;;  %885 = vmatprep.mubr.msk.f32.mxu1 %vm269_vm1, %v245_v16  ;;  %v237_v31 = vld [vmem:[%s1026_s30 + $0x60] sm:$0xff]  ;;  %v238_v33 = vld [vmem:[%s1026_s30 + $0x68] sm:$0xff]  ;;  %v239_v35 = vld [vmem:[%s1026_s30 + $0x70] sm:$0xff] }
  0x1a   : > { %v253_v32 = vld [vmem:[%s1026_s30 + $0xe0] sm:$0xff]  ;;  %v254_v34 = vld [vmem:[%s1026_s30 + $0xe8] sm:$0xff]  ;;  %v255_v36 = vld [vmem:[%s1026_s30 + $0xf0] sm:$0xff] }
  0x1b   : > { %v240_v37 = vld [vmem:[%s1026_s30 + $0x78] sm:$0xff] }
  0x1c   : > { %862 = vmatmul.mubr.msk.f32.gmra.mrb[4].mxu0 %vm269_vm1, %v230_v17  ;;  %886 = vmatmul.mubr.msk.f32.gmra.mrb[4].mxu1 %vm269_vm1, %v246_v18  ;;  %v256_v38 = vld [vmem:[%s1026_s30 + $0xf8] sm:$0xff] }
  0x1d   : > { %864 = vmatprep.mubr.msk.f32.mxu0 %vm269_vm1, %v231_v19  ;;  %888 = vmatprep.mubr.msk.f32.mxu1 %vm269_vm1, %v247_v20 }
  0x20   : > { %865 = vmatmul.mubr.msk.f32.gmra.mrb[6].mxu0 %vm269_vm1, %v232_v21  ;;  %889 = vmatmul.mubr.msk.f32.gmra.mrb[6].mxu1 %vm269_vm1, %v248_v22 }
  0x21   : > { %867 = vmatprep.mubr.msk.f32.mxu0 %vm269_vm1, %v233_v23  ;;  %891 = vmatprep.mubr.msk.f32.mxu1 %vm269_vm1, %v249_v24 }
  0x24   : > { %868 = vmatmul.mubr.msk.f32.gmra.mrb[8].mxu0 %vm269_vm1, %v234_v25  ;;  %892 = vmatmul.mubr.msk.f32.gmra.mrb[8].mxu1 %vm269_vm1, %v250_v26 }
  0x25   : > { %870 = vmatprep.mubr.msk.f32.mxu0 %vm269_vm1, %v235_v27  ;;  %894 = vmatprep.mubr.msk.f32.mxu1 %vm269_vm1, %v251_v28 }
  0x28   : > { %871 = vmatmul.mubr.msk.f32.gmra.mrb[10].mxu0 %vm269_vm1, %v236_v29  ;;  %895 = vmatmul.mubr.msk.f32.gmra.mrb[10].mxu1 %vm269_vm1, %v252_v30 }
  0x29   : > { %873 = vmatprep.mubr.msk.f32.mxu0 %vm269_vm1, %v237_v31  ;;  %897 = vmatprep.mubr.msk.f32.mxu1 %vm269_vm1, %v253_v32 }
  0x2c   : > { %874 = vmatmul.mubr.msk.f32.gmra.mrb[12].mxu0 %vm269_vm1, %v238_v33  ;;  %898 = vmatmul.mubr.msk.f32.gmra.mrb[12].mxu1 %vm269_vm1, %v254_v34 }
  0x2d   : > { %876 = vmatprep.mubr.msk.f32.mxu0 %vm269_vm1, %v239_v35  ;;  %900 = vmatprep.mubr.msk.f32.mxu1 %vm269_vm1, %v255_v36 }
  0x30   : > { %877 = vmatmul.mubr.msk.f32.gmra.mrb[14].mxu0 %vm269_vm1, %v240_v37  ;;  %901 = vmatmul.mubr.msk.f32.gmra.mrb[14].mxu1 %vm269_vm1, %v256_v38 }
  0xe7   : > { %v857_v40 = vpop.f32.mrb[0].mxu0  ;;  %v881_v41 = vpop.f32.mrb[0].mxu1 }
  0xe8   : > { %v442_v42 = vadd.f32 %v857_v40, %v1099_v39  ;;  %v522_v43 = vadd.f32 %v881_v41, %v1099_v39  ;;  %v436_v44 = vpop.f32.mrb[1].mxu0  ;;  %v516_v45 = vpop.f32.mrb[1].mxu1 }
  0xe9   : > { %v437_v46 = vadd.f32 %v1099_v39, %v436_v44  ;;  %v517_v47 = vadd.f32 %v1099_v39, %v516_v45 }
  0xea   : > { %v596_v48 = vmax.f32 %v442_v42, 0.0  ;;  %v612_v49 = vmax.f32 %v522_v43, 0.0 }
  0xeb   : > { %v595_v50 = vmax.f32 %v437_v46, 0.0  ;;  %v611_v51 = vmax.f32 %v517_v47, 0.0  ;;  %v860_v52 = vpop.f32.mrb[2].mxu0  ;;  %v884_v53 = vpop.f32.mrb[2].mxu1 }
  0xec   : > { %628 = vst [vmem:[%s1108_s8 + $0x8] sm:$0xff] %v596_v48  ;;  %644 = vst [vmem:[%s1108_s8 + $0x88] sm:$0xff] %v612_v49  ;;  %v452_v54 = vadd.f32 %v860_v52, %v1099_v39  ;;  %v532_v55 = vadd.f32 %v884_v53, %v1099_v39  ;;  %v446_v56 = vpop.f32.mrb[3].mxu0  ;;  %v526_v57 = vpop.f32.mrb[3].mxu1 }
  0xed   : > { %627 = vst [vmem:[%s1108_s8] sm:$0xff] %v595_v50  ;;  %643 = vst [vmem:[%s1108_s8 + $0x80] sm:$0xff] %v611_v51  ;;  %v447_v58 = vadd.f32 %v1099_v39, %v446_v56  ;;  %v527_v59 = vadd.f32 %v1099_v39, %v526_v57 }
  0xee   : > { %v598_v60 = vmax.f32 %v452_v54, 0.0  ;;  %v614_v61 = vmax.f32 %v532_v55, 0.0 }
  0xef   : > { %v597_v62 = vmax.f32 %v447_v58, 0.0  ;;  %v613_v63 = vmax.f32 %v527_v59, 0.0  ;;  %v863_v0 = vpop.f32.mrb[4].mxu0  ;;  %v887_v1 = vpop.f32.mrb[4].mxu1 }
  0xf0   : > { %630 = vst [vmem:[%s1108_s8 + $0x18] sm:$0xff] %v598_v60  ;;  %646 = vst [vmem:[%s1108_s8 + $0x98] sm:$0xff] %v614_v61  ;;  %v462_v2 = vadd.f32 %v863_v0, %v1099_v39  ;;  %v542_v3 = vadd.f32 %v887_v1, %v1099_v39  ;;  %v456_v4 = vpop.f32.mrb[5].mxu0  ;;  %v536_v5 = vpop.f32.mrb[5].mxu1 }
  0xf1   : > { %629 = vst [vmem:[%s1108_s8 + $0x10] sm:$0xff] %v597_v62  ;;  %645 = vst [vmem:[%s1108_s8 + $0x90] sm:$0xff] %v613_v63  ;;  %v457_v6 = vadd.f32 %v1099_v39, %v456_v4  ;;  %v537_v7 = vadd.f32 %v1099_v39, %v536_v5 }
  0xf2   : > { %v600_v8 = vmax.f32 %v462_v2, 0.0  ;;  %v616_v9 = vmax.f32 %v542_v3, 0.0 }
  0xf3   : > { %v599_v10 = vmax.f32 %v457_v6, 0.0  ;;  %v615_v11 = vmax.f32 %v537_v7, 0.0  ;;  %v866_v12 = vpop.f32.mrb[6].mxu0  ;;  %v890_v13 = vpop.f32.mrb[6].mxu1 }
  0xf4   : > { %632 = vst [vmem:[%s1108_s8 + $0x28] sm:$0xff] %v600_v8  ;;  %648 = vst [vmem:[%s1108_s8 + $0xa8] sm:$0xff] %v616_v9  ;;  %v472_v14 = vadd.f32 %v866_v12, %v1099_v39  ;;  %v552_v15 = vadd.f32 %v890_v13, %v1099_v39  ;;  %v466_v16 = vpop.f32.mrb[7].mxu0  ;;  %v546_v17 = vpop.f32.mrb[7].mxu1 }
  0xf5   : > { %631 = vst [vmem:[%s1108_s8 + $0x20] sm:$0xff] %v599_v10  ;;  %647 = vst [vmem:[%s1108_s8 + $0xa0] sm:$0xff] %v615_v11  ;;  %v467_v18 = vadd.f32 %v1099_v39, %v466_v16  ;;  %v547_v19 = vadd.f32 %v1099_v39, %v546_v17 }
  0xf6   : > { %v602_v20 = vmax.f32 %v472_v14, 0.0  ;;  %v618_v21 = vmax.f32 %v552_v15, 0.0 }
  0xf7   : > { %v601_v22 = vmax.f32 %v467_v18, 0.0  ;;  %v617_v23 = vmax.f32 %v547_v19, 0.0  ;;  %v869_v24 = vpop.f32.mrb[8].mxu0  ;;  %v893_v25 = vpop.f32.mrb[8].mxu1 }
  0xf8   : > { %634 = vst [vmem:[%s1108_s8 + $0x38] sm:$0xff] %v602_v20  ;;  %650 = vst [vmem:[%s1108_s8 + $0xb8] sm:$0xff] %v618_v21  ;;  %v482_v26 = vadd.f32 %v869_v24, %v1099_v39  ;;  %v562_v27 = vadd.f32 %v893_v25, %v1099_v39  ;;  %v476_v28 = vpop.f32.mrb[9].mxu0  ;;  %v556_v29 = vpop.f32.mrb[9].mxu1 }
  0xf9   : > { %633 = vst [vmem:[%s1108_s8 + $0x30] sm:$0xff] %v601_v22  ;;  %649 = vst [vmem:[%s1108_s8 + $0xb0] sm:$0xff] %v617_v23  ;;  %v477_v30 = vadd.f32 %v1099_v39, %v476_v28  ;;  %v557_v31 = vadd.f32 %v1099_v39, %v556_v29 }
  0xfa   : > { %v604_v32 = vmax.f32 %v482_v26, 0.0  ;;  %v620_v33 = vmax.f32 %v562_v27, 0.0 }
  0xfb   : > { %v603_v34 = vmax.f32 %v477_v30, 0.0  ;;  %v619_v35 = vmax.f32 %v557_v31, 0.0  ;;  %v872_v36 = vpop.f32.mrb[10].mxu0  ;;  %v896_v37 = vpop.f32.mrb[10].mxu1 }
  0xfc   : > { %636 = vst [vmem:[%s1108_s8 + $0x48] sm:$0xff] %v604_v32  ;;  %652 = vst [vmem:[%s1108_s8 + $0xc8] sm:$0xff] %v620_v33  ;;  %v492_v38 = vadd.f32 %v872_v36, %v1099_v39  ;;  %v572_v40 = vadd.f32 %v896_v37, %v1099_v39  ;;  %v486_v41 = vpop.f32.mrb[11].mxu0  ;;  %v566_v42 = vpop.f32.mrb[11].mxu1 }
  0xfd   : > { %635 = vst [vmem:[%s1108_s8 + $0x40] sm:$0xff] %v603_v34  ;;  %651 = vst [vmem:[%s1108_s8 + $0xc0] sm:$0xff] %v619_v35  ;;  %v487_v43 = vadd.f32 %v1099_v39, %v486_v41  ;;  %v567_v44 = vadd.f32 %v1099_v39, %v566_v42 }
  0xfe   : > { %v606_v45 = vmax.f32 %v492_v38, 0.0  ;;  %v622_v46 = vmax.f32 %v572_v40, 0.0 }
  0xff   : > { %v605_v47 = vmax.f32 %v487_v43, 0.0  ;;  %v621_v48 = vmax.f32 %v567_v44, 0.0  ;;  %v875_v49 = vpop.f32.mrb[12].mxu0  ;;  %v899_v50 = vpop.f32.mrb[12].mxu1 }
 0x100   : > { %638 = vst [vmem:[%s1108_s8 + $0x58] sm:$0xff] %v606_v45  ;;  %654 = vst [vmem:[%s1108_s8 + $0xd8] sm:$0xff] %v622_v46  ;;  %v502_v51 = vadd.f32 %v875_v49, %v1099_v39  ;;  %v582_v52 = vadd.f32 %v899_v50, %v1099_v39  ;;  %v496_v53 = vpop.f32.mrb[13].mxu0  ;;  %v576_v54 = vpop.f32.mrb[13].mxu1 }
 0x101   : > { %637 = vst [vmem:[%s1108_s8 + $0x50] sm:$0xff] %v605_v47  ;;  %653 = vst [vmem:[%s1108_s8 + $0xd0] sm:$0xff] %v621_v48  ;;  %v497_v55 = vadd.f32 %v1099_v39, %v496_v53  ;;  %v577_v56 = vadd.f32 %v1099_v39, %v576_v54 }
 0x102   : > { %v608_v57 = vmax.f32 %v502_v51, 0.0  ;;  %v624_v58 = vmax.f32 %v582_v52, 0.0 }
 0x103   : > { %v607_v59 = vmax.f32 %v497_v55, 0.0  ;;  %v623_v60 = vmax.f32 %v577_v56, 0.0  ;;  %v878_v61 = vpop.f32.mrb[14].mxu0  ;;  %v902_v62 = vpop.f32.mrb[14].mxu1 }
 0x104   : > { %640 = vst [vmem:[%s1108_s8 + $0x68] sm:$0xff] %v608_v57  ;;  %656 = vst [vmem:[%s1108_s8 + $0xe8] sm:$0xff] %v624_v58  ;;  %v512_v63 = vadd.f32 %v878_v61, %v1099_v39  ;;  %v592_v0 = vadd.f32 %v902_v62, %v1099_v39  ;;  %v506_v1 = vpop.f32.mrb[15].mxu0  ;;  %v586_v2 = vpop.f32.mrb[15].mxu1 }
 0x105   : > { %639 = vst [vmem:[%s1108_s8 + $0x60] sm:$0xff] %v607_v59  ;;  %655 = vst [vmem:[%s1108_s8 + $0xe0] sm:$0xff] %v623_v60  ;;  %v507_v3 = vadd.f32 %v1099_v39, %v506_v1  ;;  %v587_v4 = vadd.f32 %v1099_v39, %v586_v2 }
 0x106   : > { %v610_v5 = vmax.f32 %v512_v63, 0.0  ;;  %v626_v6 = vmax.f32 %v592_v0, 0.0 }
 0x107   : > { %v609_v7 = vmax.f32 %v507_v3, 0.0  ;;  %v625_v8 = vmax.f32 %v587_v4, 0.0 }
 0x108   : > { %642 = vst [vmem:[%s1108_s8 + $0x78] sm:$0xff] %v610_v5  ;;  %658 = vst [vmem:[%s1108_s8 + $0xf8] sm:$0xff] %v626_v6 }
 0x109   : > { %641 = vst [vmem:[%s1108_s8 + $0x70] sm:$0xff] %v609_v7  ;;  %657 = vst [vmem:[%s1108_s8 + $0xf0] sm:$0xff] %v625_v8 }
 0x10a PF: > { %s13_s14 = sadd.s32 1, %s963_s14   ;;  %s1185_s12 = smov %s959_s13 }
 0x10b   : > { %p10_p5 = scmp.ge.s32.totalorder %s13_s14, 4   ;;  %s1186_s13 = smov %s1188_s15 }
 0x10d   :  { %12 = sbr.rel (!%p10_p5) target bundleno = 2 (0x2), region = 68 }

// kernel: basic_block_forward.5
= control target key start
LH: loop header
LB: loop body
LE: loop exit
PB: predicated region body
PF: predicated region fallthrough
CT: control target
= control target key end

     0   :  { %s5869_s15 = smov 0   ;;  %s5871_s16 = smov 0   ;;  %s7190_s0 = inlined_call_operand.vmem [shape: f32[2,16,16,128], index: 0, kind: input, shape index: {}]   ;;  %s7191_s1 = inlined_call_operand.vmem [shape: f32[9,128,128], index: 1, kind: input, shape index: {}]   ;;  %s7192_s2 = inlined_call_operand.vmem [shape: f32[1,128], index: 2, kind: input, shape index: {}]   ;;  %s7193_s3 = inlined_call_operand.vmem [shape: f32[2,256,128], index: 3, kind: input, shape index: {}]   ;;  %s7194_s4 = inlined_call_operand.vmem [shape: f32[2,256,128], index: 4, kind: output, shape index: {}]  }
   0x1   :  { %s5873_s17 = smov 0  }
   0x2 LB: > { %s29_s18 = sadd.s32 1, %s5837_s16  ;;  %p3678_p0 = scmp.ge.s32.totalorder %s5841_s17, 1  ;;  %s5841_s17 = sphi %s5873_s17, %s14_s17   ;;  %s5837_s16 = sphi %s5871_s16, %s7235_s16   ;;  %s5833_s15 = sphi %s5869_s15, %s7234_s15  }
   0x3   : > { %p31_p1 = scmp.ge.s32.totalorder %s29_s18, 2  ;;  %p224_p2 = scmp.lt.s32.totalorder %s5841_s17, 3 }
   0x5   : > { %s7237_s18 = smov (%p31_p1, %s29_s18), 0  ;;  %p225_p3 = pnand %p3678_p0, %p224_p2 }
   0x7   : > { %228 = sbr.rel (%p225_p3) target bundleno = 560 (0x230), region = 36 }
   0xe   : > { %v3717_v0 = vld [vmem:[%s7191_s1 + $0x80] sm:$0xff]  ;;  %v3718_v1 = vld [vmem:[%s7191_s1 + $0x88] sm:$0xff]  ;;  %p276_p4 = scmp.lt.s32.totalorder %s5833_s15, 1  ;;  %v3719_v5 = vld [vmem:[%s7191_s1 + $0x90] sm:$0xff]  ;;  %v5843_v7 = vmov 0.0  }
   0xf   : > { %v3861_v2 = vld [vmem:[%s7191_s1 + $0x200] sm:$0xff]  ;;  %v5899_v3 = vpack.c.bf16 %v3718_v1, %v3717_v0  ;;  %v3862_v4 = vld [vmem:[%s7191_s1 + $0x208] sm:$0xff]  ;;  %v3720_v6 = vld [vmem:[%s7191_s1 + $0x98] sm:$0xff]  ;;  %354 = vst [vmem:[#allocation2 + $0x120] sm:$0xff] %v5843_v7  ;;  %4539 = vmatprep.mubr.f32.mxu1 %v5843_v7 }
  0x10   : > { %320 = vst [vmem:[#allocation2 + $0x10] sm:$0xff] %v5843_v7  ;;  %321 = vst [vmem:[#allocation2 + $0x18] sm:$0xff] %v5843_v7  ;;  %v5960_v8 = vpack.c.bf16 %v3862_v4, %v3861_v2  ;;  %v5231_v9 = vpack.c.bf16 %v3720_v6, %v3719_v5  ;;  %v3863_v10 = vld [vmem:[%s7191_s1 + $0x210] sm:$0xff]  ;;  %v3864_v11 = vld [vmem:[%s7191_s1 + $0x218] sm:$0xff]  ;;  %s7239_s15 = smov (!%p276_p4, %s5833_s15), 1 }
  0x11   : > { %322 = vst [vmem:[#allocation2 + $0x20] sm:$0xff] %v5843_v7  ;;  %323 = vst [vmem:[#allocation2 + $0x28] sm:$0xff] %v5843_v7  ;;  %v3721_v12 = vld [vmem:[%s7191_s1 + $0xa0] sm:$0xff]  ;;  %5228 = vmatprep.subr.bf16.mxu1 %v5899_v3  ;;  %v5975_v13 = vpack.c.bf16 %v3864_v11, %v3863_v10  ;;  %v3722_v14 = vld [vmem:[%s7191_s1 + $0xa8] sm:$0xff]  ;;  %s5988_s21 = sshll.u32 %s7239_s15, 8 }
  0x12   : > { %324 = vst [vmem:[#allocation2 + $0x30] sm:$0xff] %v5843_v7  ;;  %325 = vst [vmem:[#allocation2 + $0x38] sm:$0xff] %v5843_v7  ;;  %v3865_v15 = vld [vmem:[%s7191_s1 + $0x220] sm:$0xff]  ;;  %v3866_v16 = vld [vmem:[%s7191_s1 + $0x228] sm:$0xff]  ;;  %5356 = vmatprep.subr.bf16.mxu0 %v5960_v8  ;;  %5230 = vmatpush3.bf16.msra.mxu1 %v5899_v3  ;;  %v5235_v17 = vpack.c.bf16 %v3722_v14, %v3721_v12  ;;  %s6010_s5 = scalar_lea.vmem %s7190_s0, %s5988_s21  ;;  %s7065_s7 = scalar_lea.vmem %s7193_s3, %s5988_s21 }
  0x13   : > { %326 = vst [vmem:[#allocation2 + $0x40] sm:$0xff] %v5843_v7  ;;  %327 = vst [vmem:[#allocation2 + $0x48] sm:$0xff] %v5843_v7  ;;  %5358 = vmatpush3.bf16.msra.mxu0 %v5960_v8  ;;  %5232 = vmatprep.subr.bf16.mxu1 %v5231_v9  ;;  %v5992_v18 = vpack.c.bf16 %v3866_v16, %v3865_v15  ;;  %v3723_v19 = vld [vmem:[%s7191_s1 + $0xb0] sm:$0xff]  ;;  %v3724_v20 = vld [vmem:[%s7191_s1 + $0xb8] sm:$0xff]  ;;  %s7080_s12 = scalar_lea.vmem %s7194_s4, %s5988_s21 }
  0x14   : > { %328 = vst [vmem:[#allocation2 + $0x50] sm:$0xff] %v5843_v7  ;;  %329 = vst [vmem:[#allocation2 + $0x58] sm:$0xff] %v5843_v7  ;;  %5360 = vmatprep.subr.bf16.mxu0 %v5975_v13  ;;  %v3867_v21 = vld [vmem:[%s7191_s1 + $0x230] sm:$0xff]  ;;  %v3868_v22 = vld [vmem:[%s7191_s1 + $0x238] sm:$0xff]  ;;  %v5239_v23 = vpack.c.bf16 %v3724_v20, %v3723_v19 }
  0x15   : > { %330 = vst [vmem:[#allocation2 + $0x60] sm:$0xff] %v5843_v7  ;;  %331 = vst [vmem:[#allocation2 + $0x68] sm:$0xff] %v5843_v7  ;;  %v6014_v24 = vpack.c.bf16 %v3868_v22, %v3867_v21  ;;  %v3725_v25 = vld [vmem:[%s7191_s1 + $0xc0] sm:$0xff]  ;;  %v3726_v26 = vld [vmem:[%s7191_s1 + $0xc8] sm:$0xff] }
  0x16   : > { %332 = vst [vmem:[#allocation2 + $0x70] sm:$0xff] %v5843_v7  ;;  %333 = vst [vmem:[#allocation2 + $0x78] sm:$0xff] %v5843_v7  ;;  %5234 = vmatpush3.bf16.msra.mxu1 %v5231_v9  ;;  %v6023_v27 = vld [vmem:[%s6010_s5] sm:$0xff]  ;;  %v3870_v29 = vld [vmem:[%s7191_s1 + $0x248] sm:$0xff]  ;;  %v5243_v32 = vpack.c.bf16 %v3726_v26, %v3725_v25 }
  0x17   : > { %334 = vst [vmem:[#allocation2 + $0x80] sm:$0xff] %v5843_v7  ;;  %335 = vst [vmem:[#allocation2 + $0x88] sm:$0xff] %v5843_v7  ;;  %5362 = vmatpush3.bf16.msra.mxu0 %v5975_v13  ;;  %5236 = vmatprep.subr.bf16.mxu1 %v5235_v17  ;;  %v3869_v28 = vld [vmem:[%s7191_s1 + $0x240] sm:$0xff]  ;;  %v6033_v30 = vld [vmem:[%s6010_s5 + $0x8] sm:$0xff] }
  0x18   : > { %336 = vst [vmem:[#allocation2 + $0x90] sm:$0xff] %v5843_v7  ;;  %337 = vst [vmem:[#allocation2 + $0x98] sm:$0xff] %v5843_v7  ;;  %5364 = vmatprep.subr.bf16.mxu0 %v5992_v18  ;;  %4859 = vmatprep.mubr.f32.mxu0 %v6023_v27  ;;  %v6037_v31 = vld [vmem:[%s6010_s5 + $0x10] sm:$0xff]  ;;  %v6042_v33 = vld [vmem:[%s6010_s5 + $0x18] sm:$0xff]  ;;  %v6046_v34 = vpack.c.bf16 %v3870_v29, %v3869_v28 }
  0x19   : > { %338 = vst [vmem:[#allocation2 + $0xa0] sm:$0xff] %v5843_v7  ;;  %339 = vst [vmem:[#allocation2 + $0xa8] sm:$0xff] %v5843_v7  ;;  %v3727_v35 = vld [vmem:[%s7191_s1 + $0xd0] sm:$0xff]  ;;  %v3728_v36 = vld [vmem:[%s7191_s1 + $0xd8] sm:$0xff] }
  0x1a   : > { %340 = vst [vmem:[#allocation2 + $0xb0] sm:$0xff] %v5843_v7  ;;  %341 = vst [vmem:[#allocation2 + $0xb8] sm:$0xff] %v5843_v7  ;;  %5238 = vmatpush3.bf16.msra.mxu1 %v5235_v17  ;;  %v6056_v37 = vld [vmem:[%s6010_s5 + $0x20] sm:$0xff]  ;;  %v3871_v38 = vld [vmem:[%s7191_s1 + $0x250] sm:$0xff]  ;;  %v5247_v43 = vpack.c.bf16 %v3728_v36, %v3727_v35 }
  0x1b   : > { %342 = vst [vmem:[#allocation2 + $0xc0] sm:$0xff] %v5843_v7  ;;  %343 = vst [vmem:[#allocation2 + $0xc8] sm:$0xff] %v5843_v7  ;;  %5366 = vmatpush3.bf16.msra.mxu0 %v5992_v18  ;;  %5240 = vmatprep.subr.bf16.mxu1 %v5239_v23  ;;  %v3872_v39 = vld [vmem:[%s7191_s1 + $0x258] sm:$0xff]  ;;  %v6066_v40 = vld [vmem:[%s6010_s5 + $0x28] sm:$0xff] }
  0x1c   : > { %344 = vst [vmem:[#allocation2 + $0xd0] sm:$0xff] %v5843_v7  ;;  %345 = vst [vmem:[#allocation2 + $0xd8] sm:$0xff] %v5843_v7  ;;  %5368 = vmatprep.subr.bf16.mxu0 %v6014_v24  ;;  %v6071_v41 = vld [vmem:[%s6010_s5 + $0x30] sm:$0xff]  ;;  %v6074_v42 = vld [vmem:[%s6010_s5 + $0x38] sm:$0xff]  ;;  %v6087_v46 = vpack.c.bf16 %v3872_v39, %v3871_v38 }
  0x1d   : > { %346 = vst [vmem:[#allocation2 + $0xe0] sm:$0xff] %v5843_v7  ;;  %347 = vst [vmem:[#allocation2 + $0xe8] sm:$0xff] %v5843_v7  ;;  %v3729_v44 = vld [vmem:[%s7191_s1 + $0xe0] sm:$0xff]  ;;  %v3730_v47 = vld [vmem:[%s7191_s1 + $0xe8] sm:$0xff] }
  0x1e   : > { %348 = vst [vmem:[#allocation2 + $0xf0] sm:$0xff] %v5843_v7  ;;  %349 = vst [vmem:[#allocation2 + $0xf8] sm:$0xff] %v5843_v7  ;;  %5242 = vmatpush3.bf16.msra.mxu1 %v5239_v23  ;;  %v6083_v45 = vld [vmem:[%s6010_s5 + $0x40] sm:$0xff]  ;;  %v6097_v49 = vld [vmem:[%s6010_s5 + $0x48] sm:$0xff]  ;;  %v5251_v54 = vpack.c.bf16 %v3730_v47, %v3729_v44 }
  0x1f   : > { %350 = vst [vmem:[#allocation2 + $0x100] sm:$0xff] %v5843_v7  ;;  %351 = vst [vmem:[#allocation2 + $0x108] sm:$0xff] %v5843_v7  ;;  %5370 = vmatpush3.bf16.msra.mxu0 %v6014_v24  ;;  %5244 = vmatprep.subr.bf16.mxu1 %v5243_v32  ;;  %v3873_v48 = vld [vmem:[%s7191_s1 + $0x260] sm:$0xff]  ;;  %v3874_v50 = vld [vmem:[%s7191_s1 + $0x268] sm:$0xff] }
  0x20   : > { %393 = vst [vmem:[#allocation2 + $0x258] sm:$0xff] %v5843_v7  ;;  %395 = vst [vmem:[#allocation2 + $0x268] sm:$0xff] %v5843_v7  ;;  %5372 = vmatprep.subr.bf16.mxu0 %v6046_v34  ;;  %v6105_v51 = vld [vmem:[%s6010_s5 + $0x50] sm:$0xff]  ;;  %v6108_v52 = vld [vmem:[%s6010_s5 + $0x58] sm:$0xff]  ;;  %v6123_v56 = vpack.c.bf16 %v3874_v50, %v3873_v48 }
  0x21   : > { %397 = vst [vmem:[#allocation2 + $0x278] sm:$0xff] %v5843_v7  ;;  %399 = vst [vmem:[#allocation2 + $0x288] sm:$0xff] %v5843_v7  ;;  %v6113_v53 = vld [vmem:[%s6010_s5 + $0x60] sm:$0xff]  ;;  %v6119_v55 = vld [vmem:[%s6010_s5 + $0x68] sm:$0xff] }
  0x22   : > { %401 = vst [vmem:[#allocation2 + $0x298] sm:$0xff] %v5843_v7  ;;  %403 = vst [vmem:[#allocation2 + $0x2a8] sm:$0xff] %v5843_v7  ;;  %5246 = vmatpush3.bf16.msra.mxu1 %v5243_v32  ;;  %v3731_v57 = vld [vmem:[%s7191_s1 + $0xf0] sm:$0xff]  ;;  %v3732_v58 = vld [vmem:[%s7191_s1 + $0xf8] sm:$0xff] }
  0x23   : > { %405 = vst [vmem:[#allocation2 + $0x2b8] sm:$0xff] %v5843_v7  ;;  %407 = vst [vmem:[#allocation2 + $0x2c8] sm:$0xff] %v5843_v7  ;;  %5374 = vmatpush3.bf16.msra.mxu0 %v6046_v34  ;;  %5248 = vmatprep.subr.bf16.mxu1 %v5247_v43  ;;  %v6133_v59 = vld [vmem:[%s6010_s5 + $0x70] sm:$0xff]  ;;  %v3876_v61 = vld [vmem:[%s7191_s1 + $0x278] sm:$0xff]  ;;  %v5255_v2 = vpack.c.bf16 %v3732_v58, %v3731_v57 }
  0x24   : > { %409 = vst [vmem:[#allocation2 + $0x2d8] sm:$0xff] %v5843_v7  ;;  %411 = vst [vmem:[#allocation2 + $0x2e8] sm:$0xff] %v5843_v7  ;;  %5376 = vmatprep.subr.bf16.mxu0 %v6087_v46  ;;  %v3875_v60 = vld [vmem:[%s7191_s1 + $0x270] sm:$0xff]  ;;  %v6143_v62 = vld [vmem:[%s6010_s5 + $0x78] sm:$0xff] }
  0x25   : > { %413 = vst [vmem:[#allocation2 + $0x2f8] sm:$0xff] %v5843_v7  ;;  %415 = vst [vmem:[#allocation2 + $0x308] sm:$0xff] %v5843_v7  ;;  %v656_v63 = vld [vmem:[%s7191_s1] sm:$0xff]  ;;  %v657_v0 = vld [vmem:[%s7191_s1 + $0x8] sm:$0xff]  ;;  %v6166_v6 = vpack.c.bf16 %v3876_v61, %v3875_v60 }
  0x26   : > { %417 = vst [vmem:[#allocation2 + $0x318] sm:$0xff] %v5843_v7  ;;  %419 = vst [vmem:[#allocation2 + $0x328] sm:$0xff] %v5843_v7  ;;  %5250 = vmatpush3.bf16.msra.mxu1 %v5247_v43  ;;  %v6154_v1 = vld [vmem:[%s6010_s5 + $0x1] sm:$0xff]  ;;  %v557_v5 = vld [vmem:[%s6010_s5 + $0x9] sm:$0x7f]  ;;  %v5259_v17 = vpack.c.bf16 %v657_v0, %v656_v63 }
  0x27   : > { %421 = vst [vmem:[#allocation2 + $0x338] sm:$0xff] %v5843_v7  ;;  %423 = vst [vmem:[#allocation2 + $0x348] sm:$0xff] %v5843_v7  ;;  %5378 = vmatpush3.bf16.msra.mxu0 %v6087_v46  ;;  %5252 = vmatprep.subr.bf16.mxu1 %v5251_v54  ;;  %v3909_v3 = vld [vmem:[%s7191_s1 + $0x280] sm:$0xff]  ;;  %v3910_v4 = vld [vmem:[%s7191_s1 + $0x288] sm:$0xff] }
  0x28   : > { %524 = vst [vmem:[#allocation2 + $0x11] sm:$0xff] %v6023_v27  ;;  %461 = vst [vmem:[#allocation2 + $0x140] sm:$0xff] %v6037_v31  ;;  %5380 = vmatprep.subr.bf16.mxu0 %v6123_v56  ;;  %v6169_v9 = vld [vmem:[%s6010_s5 + $0x80] sm:$0xff]  ;;  %v6172_v10 = vld [vmem:[%s6010_s5 + $0x11] sm:$0xff]  ;;  %v5387_v22 = vpack.c.bf16 %v3910_v4, %v3909_v3 }
  0x29   : > { %526 = vst [vmem:[#allocation2 + $0x21] sm:$0xff] %v6037_v31  ;;  %462 = vst [vmem:[#allocation2 + $0x148] sm:$0xff] %v6042_v33  ;;  %v6175_v11 = vld [vmem:[%s6010_s5 + $0x88] sm:$0xff]  ;;  %v559_v12 = vld [vmem:[%s6010_s5 + $0x19] sm:$0x7f] }
  0x2a   : > { %463 = vst [vmem:[#allocation2 + $0x150] sm:$0xff] %v6056_v37  ;;  %528 = vst [vmem:[#allocation2 + $0x31] sm:$0xff] %v6056_v37  ;;  %v6182_v14 = vld [vmem:[%s6010_s5 + $0x90] sm:$0xff]  ;;  %v6185_v15 = vld [vmem:[%s6010_s5 + $0x21] sm:$0xff]  ;;  %5254 = vmatpush3.bf16.msra.mxu1 %v5251_v54 }
  0x2b   : > { %464 = vst [vmem:[#allocation2 + $0x158] sm:$0xff] %v6066_v40  ;;  %465 = vst [vmem:[#allocation2 + $0x160] sm:$0xff] %v6071_v41  ;;  %v6191_v16 = vld [vmem:[%s6010_s5 + $0x98] sm:$0xff]  ;;  %5382 = vmatpush3.bf16.msra.mxu0 %v6123_v56  ;;  %5256 = vmatprep.subr.bf16.mxu1 %v5255_v2  ;;  %v3911_v19 = vld [vmem:[%s7191_s1 + $0x290] sm:$0xff] }
  0x2c   : > { %466 = vst [vmem:[#allocation2 + $0x168] sm:$0xff] %v6074_v42  ;;  %530 = vst [vmem:[#allocation2 + $0x41] sm:$0xff] %v6071_v41  ;;  %v3912_v20 = vld [vmem:[%s7191_s1 + $0x298] sm:$0xff]  ;;  %v561_v21 = vld [vmem:[%s6010_s5 + $0x29] sm:$0x7f]  ;;  %5384 = vmatprep.subr.bf16.mxu0 %v6166_v6 }
  0x2d   : > { %7210 = vst [vmem:[#allocation3_spill] sm:$0xff] %v6087_v46  ;;  %467 = vst [vmem:[#allocation2 + $0x170] sm:$0xff] %v6083_v45  ;;  %v6205_v23 = vld [vmem:[%s6010_s5 + $0xa0] sm:$0xff]  ;;  %v6208_v25 = vld [vmem:[%s6010_s5 + $0x31] sm:$0xff]  ;;  %v5391_v47 = vpack.c.bf16 %v3912_v20, %v3911_v19 }
  0x2e   : > { %532 = vst [vmem:[#allocation2 + $0x51] sm:$0xff] %v6083_v45  ;;  %468 = vst [vmem:[#allocation2 + $0x178] sm:$0xff] %v6097_v49  ;;  %v6211_v26 = vld [vmem:[%s6010_s5 + $0xa8] sm:$0xff]  ;;  %v563_v28 = vld [vmem:[%s6010_s5 + $0x39] sm:$0x7f]  ;;  %5258 = vmatpush3.bf16.msra.mxu1 %v5255_v2 }
  0x2f   : > { %469 = vst [vmem:[#allocation2 + $0x180] sm:$0xff] %v6105_v51  ;;  %470 = vst [vmem:[#allocation2 + $0x188] sm:$0xff] %v6108_v52  ;;  %v6218_v29 = vld [vmem:[%s6010_s5 + $0xb0] sm:$0xff]  ;;  %v6221_v32 = vld [vmem:[%s6010_s5 + $0x41] sm:$0xff]  ;;  %5386 = vmatpush3.bf16.msra.mxu0 %v6166_v6  ;;  %5260 = vmatprep.subr.bf16.mxu1 %v5259_v17 }
  0x30   : > { %534 = vst [vmem:[#allocation2 + $0x61] sm:$0xff] %v6105_v51  ;;  %471 = vst [vmem:[#allocation2 + $0x190] sm:$0xff] %v6113_v53  ;;  %v658_v35 = vld [vmem:[%s7191_s1 + $0x10] sm:$0xff]  ;;  %v659_v36 = vld [vmem:[%s7191_s1 + $0x18] sm:$0xff]  ;;  %5388 = vmatprep.subr.bf16.mxu0 %v5387_v22 }
  0x31   : > { %536 = vst [vmem:[#allocation2 + $0x71] sm:$0xff] %v6113_v53  ;;  %7211 = vst [vmem:[#allocation4_spill] sm:$0xff] %v6123_v56  ;;  %v6233_v38 = vld [vmem:[%s6010_s5 + $0xb8] sm:$0xff]  ;;  %v3913_v39 = vld [vmem:[%s7191_s1 + $0x2a0] sm:$0xff]  ;;  %4540 = vmatmul.mubr.f32.vlgmr.msra.gmra.mrb[0].mxu1 %v5843_v7  ;;  %v5263_v57 = vpack.c.bf16 %v659_v36, %v658_v35 }
  0x32   : > { %472 = vst [vmem:[#allocation2 + $0x198] sm:$0xff] %v6119_v55  ;;  %473 = vst [vmem:[#allocation2 + $0x1a0] sm:$0xff] %v6133_v59  ;;  %v3914_v43 = vld [vmem:[%s7191_s1 + $0x2a8] sm:$0xff]  ;;  %v660_v48 = vld [vmem:[%s7191_s1 + $0x20] sm:$0xff]  ;;  %4860 = vmatmul.mubr.f32.vlgmr.msra.gmra.mrb[0].mxu0 %v6033_v30  ;;  %5262 = vmatpush3.bf16.msra.mxu1 %v5259_v17 }
  0x33   : > { %538 = vst [vmem:[#allocation2 + $0x81] sm:$0xff] %v6133_v59  ;;  %474 = vst [vmem:[#allocation2 + $0x1a8] sm:$0xff] %v6143_v62  ;;  %v565_v44 = vld [vmem:[%s6010_s5 + $0x49] sm:$0x7f]  ;;  %v6249_v50 = vld [vmem:[%s6010_s5 + $0xc0] sm:$0xff]  ;;  %5390 = vmatpush3.bf16.msra.mxu0 %v5387_v22  ;;  %4542 = vmatprep.mubr.f32.mxu1 %v6023_v27  ;;  %v5395_v4 = vpack.c.bf16 %v3914_v43, %v3913_v39 }
  0x34   : > { %589 = vst [vmem:[#allocation2 + $0x250] sm:$0xff] %v6154_v1  ;;  %7212 = vst [vmem:[#allocation5_spill] sm:$0xff] %v6166_v6  ;;  %v6252_v54 = vld [vmem:[%s6010_s5 + $0x51] sm:$0xff]  ;;  %v661_v58 = vld [vmem:[%s7191_s1 + $0x28] sm:$0xff]  ;;  %4862 = vmatprep.mubr.f32.mxu0 %v6037_v31  ;;  %5392 = vmatprep.subr.bf16.mxu0 %v5391_v47 }
  0x35   : > { %590 = vst [vmem:[#allocation2 + $0x258] sm:$0x7f] %v557_v5  ;;  %475 = vst [vmem:[#allocation2 + $0x1b0] sm:$0xff] %v6169_v9  ;;  %v6261_v60 = vld [vmem:[%s6010_s5 + $0xc8] sm:$0xff]  ;;  %v567_v61 = vld [vmem:[%s6010_s5 + $0x59] sm:$0x7f]  ;;  %4543 = vmatmul.mubr.f32.gmra.mrb[2].mxu1 %v6033_v30  ;;  %5264 = vmatprep.subr.bf16.mxu1 %v5263_v57  ;;  %v5267_v17 = vpack.c.bf16 %v661_v58, %v660_v48 }
  0x36   : > { %591 = vst [vmem:[#allocation2 + $0x260] sm:$0xff] %v6172_v10  ;;  %476 = vst [vmem:[#allocation2 + $0x1b8] sm:$0xff] %v6175_v11  ;;  %v6268_v63 = vld [vmem:[%s6010_s5 + $0xd0] sm:$0xff]  ;;  %v6271_v0 = vld [vmem:[%s6010_s5 + $0x61] sm:$0xff]  ;;  %4863 = vmatmul.mubr.f32.gmra.mrb[2].mxu0 %v6042_v33  ;;  %4545 = vmatprep.mubr.f32.mxu1 %v6037_v31 }
  0x37   : > { %540 = vst [vmem:[#allocation2 + $0x91] sm:$0xff] %v6169_v9  ;;  %592 = vst [vmem:[#allocation2 + $0x268] sm:$0x7f] %v559_v12  ;;  %v6274_v2 = vld [vmem:[%s6010_s5 + $0xd8] sm:$0xff]  ;;  %v3915_v3 = vld [vmem:[%s7191_s1 + $0x2b0] sm:$0xff]  ;;  %5394 = vmatpush3.bf16.msra.mxu0 %v5391_v47  ;;  %4865 = vmatprep.mubr.f32.mxu0 %v6056_v37 }
  0x38   : > { %477 = vst [vmem:[#allocation2 + $0x1c0] sm:$0xff] %v6182_v14  ;;  %593 = vst [vmem:[#allocation2 + $0x270] sm:$0xff] %v6185_v15  ;;  %v3916_v27 = vld [vmem:[%s7191_s1 + $0x2b8] sm:$0xff]  ;;  %v662_v5 = vld [vmem:[%s7191_s1 + $0x30] sm:$0xff]  ;;  %5396 = vmatprep.subr.bf16.mxu0 %v5395_v4  ;;  %5266 = vmatpush3.bf16.msra.mxu1 %v5263_v57 }
  0x39   : > { %542 = vst [vmem:[#allocation2 + $0xa1] sm:$0xff] %v6182_v14  ;;  %478 = vst [vmem:[#allocation2 + $0x1c8] sm:$0xff] %v6191_v16  ;;  %v569_v12 = vld [vmem:[%s6010_s5 + $0x69] sm:$0x7f]  ;;  %v663_v19 = vld [vmem:[%s7191_s1 + $0x38] sm:$0xff]  ;;  %v5399_v31 = vpack.c.bf16 %v3916_v27, %v3915_v3  ;;  %4546 = vmatmul.mubr.f32.gmra.mrb[4].mxu1 %v6042_v33  ;;  %5268 = vmatprep.subr.bf16.mxu1 %v5267_v17 }
  0x3a   : > { %594 = vst [vmem:[#allocation2 + $0x278] sm:$0x7f] %v561_v21  ;;  %479 = vst [vmem:[#allocation2 + $0x1d0] sm:$0xff] %v6205_v23  ;;  %v6297_v20 = vld [vmem:[%s6010_s5 + $0xe0] sm:$0xff]  ;;  %v6300_v21 = vld [vmem:[%s6010_s5 + $0x71] sm:$0xff]  ;;  %v5271_v43 = vpack.c.bf16 %v663_v19, %v662_v5  ;;  %4866 = vmatmul.mubr.f32.gmra.mrb[4].mxu0 %v6066_v40  ;;  %4548 = vmatprep.mubr.f32.mxu1 %v6056_v37 }
  0x3b   : > { %595 = vst [vmem:[#allocation2 + $0x280] sm:$0xff] %v6208_v25  ;;  %480 = vst [vmem:[#allocation2 + $0x1d8] sm:$0xff] %v6211_v26  ;;  %v6307_v30 = vld [vmem:[%s6010_s5 + $0xe8] sm:$0xff]  ;;  %v571_v22 = vld [vmem:[%s6010_s5 + $0x79] sm:$0x7f]  ;;  %5398 = vmatpush3.bf16.msra.mxu0 %v5395_v4  ;;  %4868 = vmatprep.mubr.f32.mxu0 %v6071_v41 }
  0x3c   : > { %544 = vst [vmem:[#allocation2 + $0xb1] sm:$0xff] %v6205_v23  ;;  %596 = vst [vmem:[#allocation2 + $0x288] sm:$0x7f] %v563_v28  ;;  %v6311_v28 = vld [vmem:[%s6010_s5 + $0x81] sm:$0xff]  ;;  %v573_v36 = vld [vmem:[%s6010_s5 + $0x89] sm:$0x7f]  ;;  %5400 = vmatprep.subr.bf16.mxu0 %v5399_v31  ;;  %5270 = vmatpush3.bf16.msra.mxu1 %v5267_v17 }
  0x3d   : > { %481 = vst [vmem:[#allocation2 + $0x1e0] sm:$0xff] %v6218_v29  ;;  %597 = vst [vmem:[#allocation2 + $0x290] sm:$0xff] %v6221_v32  ;;  %v3917_v35 = vld [vmem:[%s7191_s1 + $0x2c0] sm:$0xff]  ;;  %v3918_v39 = vld [vmem:[%s7191_s1 + $0x2c8] sm:$0xff]  ;;  %4549 = vmatmul.mubr.f32.gmra.mrb[6].mxu1 %v6066_v40  ;;  %5272 = vmatprep.subr.bf16.mxu1 %v5271_v43 }
  0x3e   : > { %546 = vst [vmem:[#allocation2 + $0xc1] sm:$0xff] %v6218_v29  ;;  %482 = vst [vmem:[#allocation2 + $0x1e8] sm:$0xff] %v6233_v38  ;;  %v6329_v47 = vld [vmem:[%s6010_s5 + $0x91] sm:$0xff]  ;;  %v665_v33 = vld [vmem:[%s7191_s1 + $0x48] sm:$0xff]  ;;  %v5403_v37 = vpack.c.bf16 %v3918_v39, %v3917_v35  ;;  %4869 = vmatmul.mubr.f32.gmra.mrb[6].mxu0 %v6074_v42  ;;  %4551 = vmatprep.mubr.f32.mxu1 %v6071_v41 }
  0x3f   : > { %598 = vst [vmem:[#allocation2 + $0x298] sm:$0x7f] %v565_v44  ;;  %483 = vst [vmem:[#allocation2 + $0x1f0] sm:$0xff] %v6249_v50  ;;  %v664_v44 = vld [vmem:[%s7191_s1 + $0x40] sm:$0xff]  ;;  %v492_v48 = vld [vmem:[%s6010_s5 + $0x8] sm:$0x7f]  ;;  %5402 = vmatpush3.bf16.msra.mxu0 %v5399_v31  ;;  %4871 = vmatprep.mubr.f32.mxu0 %v6083_v45 }
  0x40   : > { %599 = vst [vmem:[#allocation2 + $0x2a0] sm:$0xff] %v6252_v54  ;;  %548 = vst [vmem:[#allocation2 + $0xd1] sm:$0xff] %v6249_v50  ;;  %v575_v57 = vld [vmem:[%s6010_s5 + $0x99] sm:$0x7f]  ;;  %v6341_v58 = vld [vmem:[%s6010_s5 + $0xa1] sm:$0xff]  ;;  %v5275_v5 = vpack.c.bf16 %v665_v33, %v664_v44  ;;  %5404 = vmatprep.subr.bf16.mxu0 %v5403_v37  ;;  %5274 = vmatpush3.bf16.msra.mxu1 %v5271_v43 }
  0x41   : > { %484 = vst [vmem:[#allocation2 + $0x1f8] sm:$0xff] %v6261_v60  ;;  %600 = vst [vmem:[#allocation2 + $0x2a8] sm:$0x7f] %v567_v61  ;;  %v494_v61 = vld [vmem:[%s6010_s5 + $0x18] sm:$0x7f]  ;;  %v3919_v4 = vld [vmem:[%s7191_s1 + $0x2d0] sm:$0xff]  ;;  %4552 = vmatmul.mubr.f32.gmra.mrb[8].mxu1 %v6074_v42 }
  0x42   : > { %485 = vst [vmem:[#allocation2 + $0x200] sm:$0xff] %v6268_v63  ;;  %601 = vst [vmem:[#allocation2 + $0x2b0] sm:$0xff] %v6271_v0  ;;  %v577_v3 = vld [vmem:[%s6010_s5 + $0xa9] sm:$0x7f]  ;;  %v3920_v27 = vld [vmem:[%s7191_s1 + $0x2d8] sm:$0xff]  ;;  %5276 = vmatprep.subr.bf16.mxu1 %v5275_v5  ;;  %4872 = vmatmul.mubr.f32.gmra.mrb[8].mxu0 %v6097_v49 }
  0x43   : > { %486 = vst [vmem:[#allocation2 + $0x208] sm:$0xff] %v6274_v2  ;;  %550 = vst [vmem:[#allocation2 + $0xe1] sm:$0xff] %v6268_v63  ;;  %v667_v40 = vld [vmem:[%s7191_s1 + $0x58] sm:$0xff]  ;;  %v496_v19 = vld [vmem:[%s6010_s5 + $0x28] sm:$0x7f]  ;;  %4554 = vmatprep.mubr.f32.mxu1 %v6083_v45  ;;  %5406 = vmatpush3.bf16.msra.mxu0 %v5403_v37 }
  0x44   : > { %602 = vst [vmem:[#allocation2 + $0x2b8] sm:$0x7f] %v569_v12  ;;  %487 = vst [vmem:[#allocation2 + $0x210] sm:$0xff] %v6297_v20  ;;  %v666_v12 = vld [vmem:[%s7191_s1 + $0x50] sm:$0xff]  ;;  %v6369_v35 = vld [vmem:[%s6010_s5 + $0xc1] sm:$0xff]  ;;  %4874 = vmatprep.mubr.f32.mxu0 %v6105_v51  ;;  %5278 = vmatpush3.bf16.msra.mxu1 %v5275_v5 }
  0x45   : > { %603 = vst [vmem:[#allocation2 + $0x2c0] sm:$0xff] %v6300_v21  ;;  %552 = vst [vmem:[#allocation2 + $0xf1] sm:$0xff] %v6297_v20  ;;  %v6362_v17 = vld [vmem:[%s6010_s5 + $0xb1] sm:$0xff]  ;;  %v3921_v31 = vld [vmem:[%s7191_s1 + $0x2e0] sm:$0xff]  ;;  %v5279_v44 = vpack.c.bf16 %v667_v40, %v666_v12  ;;  %4555 = vmatmul.mubr.f32.gmra.mrb[10].mxu1 %v6097_v49 }
  0x46   : > { %488 = vst [vmem:[#allocation2 + $0x218] sm:$0xff] %v6307_v30  ;;  %604 = vst [vmem:[#allocation2 + $0x2c8] sm:$0x7f] %v571_v22  ;;  %v579_v22 = vld [vmem:[%s6010_s5 + $0xb9] sm:$0x7f]  ;;  %v3922_v39 = vld [vmem:[%s7191_s1 + $0x2e8] sm:$0xff]  ;;  %4875 = vmatmul.mubr.f32.gmra.mrb[10].mxu0 %v6108_v52  ;;  %4557 = vmatprep.mubr.f32.mxu1 %v6105_v51 }
  0x47   : > { %605 = vst [vmem:[#allocation2 + $0x2d0] sm:$0xff] %v6311_v28  ;;  %606 = vst [vmem:[#allocation2 + $0x2d8] sm:$0x7f] %v573_v36  ;;  %v5407_v36 = vpack.c.bf16 %v3920_v27, %v3919_v4  ;;  %v498_v41 = vld [vmem:[%s6010_s5 + $0x38] sm:$0x7f]  ;;  %v668_v42 = vld [vmem:[%s7191_s1 + $0x60] sm:$0xff]  ;;  %5280 = vmatprep.subr.bf16.mxu1 %v5279_v44  ;;  %4877 = vmatprep.mubr.f32.mxu0 %v6113_v53 }
  0x48   : > { %607 = vst [vmem:[#allocation2 + $0x2e0] sm:$0xff] %v6329_v47  ;;  %525 = vst [vmem:[#allocation2 + $0x19] sm:$0x7f] %v492_v48  ;;  %v581_v43 = vld [vmem:[%s6010_s5 + $0xc9] sm:$0x7f]  ;;  %v6391_v48 = vld [vmem:[%s6010_s5 + $0xd1] sm:$0xff]  ;;  %5282 = vmatpush3.bf16.msra.mxu1 %v5279_v44 }
  0x49   : > { %608 = vst [vmem:[#allocation2 + $0x2e8] sm:$0x7f] %v575_v57  ;;  %609 = vst [vmem:[#allocation2 + $0x2f0] sm:$0xff] %v6341_v58  ;;  %v669_v33 = vld [vmem:[%s7191_s1 + $0x68] sm:$0xff]  ;;  %5408 = vmatprep.subr.bf16.mxu0 %v5407_v36  ;;  %v5411_v57 = vpack.c.bf16 %v3922_v39, %v3921_v31  ;;  %v3923_v45 = vld [vmem:[%s7191_s1 + $0x2f0] sm:$0xff]  ;;  %4558 = vmatmul.mubr.f32.gmra.mrb[12].mxu1 %v6108_v52 }
  0x4a   : > { %527 = vst [vmem:[#allocation2 + $0x29] sm:$0x7f] %v494_v61  ;;  %610 = vst [vmem:[#allocation2 + $0x2f8] sm:$0x7f] %v577_v3  ;;  %v500_v61 = vld [vmem:[%s6010_s5 + $0x48] sm:$0x7f]  ;;  %v5283_v4 = vpack.c.bf16 %v669_v33, %v668_v42  ;;  %5410 = vmatpush3.bf16.msra.mxu0 %v5407_v36  ;;  %4560 = vmatprep.mubr.f32.mxu1 %v6113_v53 }
  0x4b   : > { %611 = vst [vmem:[#allocation2 + $0x300] sm:$0xff] %v6362_v17  ;;  %529 = vst [vmem:[#allocation2 + $0x39] sm:$0x7f] %v496_v19  ;;  %v583_v3 = vld [vmem:[%s6010_s5 + $0xd9] sm:$0x7f]  ;;  %v6404_v27 = vld [vmem:[%s6010_s5 + $0xe1] sm:$0xff]  ;;  %5412 = vmatprep.subr.bf16.mxu0 %v5411_v57  ;;  %4878 = vmatmul.mubr.f32.gmra.mrb[12].mxu0 %v6119_v55 }
  0x4c   : > { %612 = vst [vmem:[#allocation2 + $0x308] sm:$0x7f] %v579_v22  ;;  %613 = vst [vmem:[#allocation2 + $0x310] sm:$0xff] %v6369_v35  ;;  %v3924_v37 = vld [vmem:[%s7191_s1 + $0x2f8] sm:$0xff]  ;;  %v670_v49 = vld [vmem:[%s7191_s1 + $0x70] sm:$0xff]  ;;  %5284 = vmatprep.subr.bf16.mxu1 %v5283_v4  ;;  %4880 = vmatprep.mubr.f32.mxu0 %v6133_v59 }
  0x4d   : > { %531 = vst [vmem:[#allocation2 + $0x49] sm:$0x7f] %v498_v41  ;;  %614 = vst [vmem:[#allocation2 + $0x318] sm:$0x7f] %v581_v43  ;;  %v502_v12 = vld [vmem:[%s6010_s5 + $0x58] sm:$0x7f]  ;;  %v5415_v19 = vpack.c.bf16 %v3924_v37, %v3923_v45  ;;  %5286 = vmatpush3.bf16.msra.mxu1 %v5283_v4 }
  0x4e   : > { %615 = vst [vmem:[#allocation2 + $0x320] sm:$0xff] %v6391_v48  ;;  %533 = vst [vmem:[#allocation2 + $0x59] sm:$0x7f] %v500_v61  ;;  %v671_v5 = vld [vmem:[%s7191_s1 + $0x78] sm:$0xff]  ;;  %v585_v40 = vld [vmem:[%s6010_s5 + $0xe9] sm:$0x7f]  ;;  %5414 = vmatpush3.bf16.msra.mxu0 %v5411_v57  ;;  %4561 = vmatmul.mubr.f32.gmra.mrb[14].mxu1 %v6119_v55 }
  0x4f   : > { %616 = vst [vmem:[#allocation2 + $0x328] sm:$0x7f] %v583_v3  ;;  %617 = vst [vmem:[#allocation2 + $0x330] sm:$0xff] %v6404_v27  ;;  %v3957_v51 = vld [vmem:[%s7191_s1 + $0x300] sm:$0xff]  ;;  %v3958_v22 = vld [vmem:[%s7191_s1 + $0x308] sm:$0xff]  ;;  %v5287_v36 = vpack.c.bf16 %v671_v5, %v670_v49  ;;  %5416 = vmatprep.subr.bf16.mxu0 %v5415_v19  ;;  %4881 = vmatmul.mubr.f32.gmra.mrb[14].mxu0 %v6143_v62 }
  0x50   : > { %535 = vst [vmem:[#allocation2 + $0x69] sm:$0x7f] %v502_v12  ;;  %618 = vst [vmem:[#allocation2 + $0x338] sm:$0x7f] %v585_v40  ;;  %v3765_v41 = vld [vmem:[%s7191_s1 + $0x100] sm:$0xff]  ;;  %v6429_v31 = vld [vmem:[%s6010_s5 + $0xf1] sm:$0xff]  ;;  %v5419_v42 = vpack.c.bf16 %v3958_v22, %v3957_v51  ;;  %4563 = vmatprep.mubr.f32.mxu1 %v6133_v59  ;;  %4939 = vmatprep.mubr.f32.mxu0 %v6154_v1 }
  0x51   : > { %v504_v39 = vld [vmem:[%s6010_s5 + $0x68] sm:$0x7f]  ;;  %619 = vst [vmem:[#allocation2 + $0x340] sm:$0xff] %v6429_v31  ;;  %v587_v52 = vld [vmem:[%s6010_s5 + $0xf9] sm:$0x7f]  ;;  %v3959_v53 = vld [vmem:[%s7191_s1 + $0x310] sm:$0xff]  ;;  %5288 = vmatprep.subr.bf16.mxu1 %v5287_v36 }
  0x52   : > { %v3766_v44 = vld [vmem:[%s7191_s1 + $0x108] sm:$0xff]  ;;  %537 = vst [vmem:[#allocation2 + $0x79] sm:$0x7f] %v504_v39  ;;  %v506_v43 = vld [vmem:[%s6010_s5 + $0x78] sm:$0x7f]  ;;  %5418 = vmatpush3.bf16.msra.mxu0 %v5415_v19  ;;  %5290 = vmatpush3.bf16.msra.mxu1 %v5287_v36  ;;  %v3961_v59 = vld [vmem:[%s7191_s1 + $0x320] sm:$0xff] }
  0x53   : > { %620 = vst [vmem:[#allocation2 + $0x348] sm:$0x7f] %v587_v52  ;;  %539 = vst [vmem:[#allocation2 + $0x89] sm:$0x7f] %v506_v43  ;;  %v3960_v33 = vld [vmem:[%s7191_s1 + $0x318] sm:$0xff]  ;;  %v6448_v57 = vpack.c.bf16 %v3766_v44, %v3765_v41  ;;  %5420 = vmatprep.subr.bf16.mxu0 %v5419_v42  ;;  %4564 = vmatmul.mubr.f32.gmra.mrb[16].mxu1 %v6143_v62  ;;  %v3962_v4 = vld [vmem:[%s7191_s1 + $0x328] sm:$0xff] }
  0x54   : > { %v508_v45 = vld [vmem:[%s6010_s5 + $0x88] sm:$0x7f]  ;;  %v510_v55 = vld [vmem:[%s6010_s5 + $0x98] sm:$0x7f]  ;;  %v5423_v3 = vpack.c.bf16 %v3960_v33, %v3959_v53  ;;  %4566 = vmatprep.mubr.f32.mxu1 %v6169_v9  ;;  %v5427_v12 = vpack.c.bf16 %v3962_v4, %v3961_v59  ;;  %v3963_v5 = vld [vmem:[%s7191_s1 + $0x330] sm:$0xff] }
  0x55   : > { %541 = vst [vmem:[#allocation2 + $0x99] sm:$0x7f] %v508_v45  ;;  %v6455_v61 = vld [vmem:[#allocation2 + $0x258] sm:$0xff]  ;;  %543 = vst [vmem:[#allocation2 + $0xa9] sm:$0x7f] %v510_v55  ;;  %5292 = vmatprep.subr.bf16.mxu1 %v6448_v57  ;;  %v6470_v62 = vld [vmem:[#allocation2 + $0x268] sm:$0xff] }
  0x56   : > { %v512_v37 = vld [vmem:[%s6010_s5 + $0xa8] sm:$0x7f]  ;;  %v514_v1 = vld [vmem:[%s6010_s5 + $0xb8] sm:$0x7f]  ;;  %4940 = vmatmul.mubr.f32.vlgmr.msra.gmra.mrb[0].mxu0 %v6455_v61  ;;  %v3965_v51 = vld [vmem:[%s7191_s1 + $0x340] sm:$0xff] }
  0x57   : > { %545 = vst [vmem:[#allocation2 + $0xb9] sm:$0x7f] %v512_v37  ;;  %547 = vst [vmem:[#allocation2 + $0xc9] sm:$0x7f] %v514_v1  ;;  %5422 = vmatpush3.bf16.msra.mxu0 %v5419_v42  ;;  %4942 = vmatprep.mubr.f32.mxu0 %v6172_v10  ;;  %v516_v49 = vld [vmem:[%s6010_s5 + $0xc8] sm:$0x7f] }
  0x58   : > { %5424 = vmatprep.subr.bf16.mxu0 %v5423_v3  ;;  %4567 = vmatmul.mubr.f32.gmra.mrb[18].mxu1 %v6175_v11  ;;  %v3964_v9 = vld [vmem:[%s7191_s1 + $0x338] sm:$0xff]  ;;  %549 = vst [vmem:[#allocation2 + $0xd9] sm:$0x7f] %v516_v49  ;;  %v520_v11 = vld [vmem:[%s6010_s5 + $0xe8] sm:$0x7f]  ;;  %v3967_v22 = vld [vmem:[%s7191_s1 + $0x350] sm:$0xff] }
  0x59   : > { %v518_v40 = vld [vmem:[%s6010_s5 + $0xd8] sm:$0x7f]  ;;  %4569 = vmatprep.mubr.f32.mxu1 %v6182_v14  ;;  %v5431_v19 = vpack.c.bf16 %v3964_v9, %v3963_v5  ;;  %553 = vst [vmem:[#allocation2 + $0xf9] sm:$0x7f] %v520_v11  ;;  %v3966_v14 = vld [vmem:[%s7191_s1 + $0x348] sm:$0xff]  ;;  %v6507_v41 = vld [vmem:[%s6010_s5 + $0xf0] sm:$0xff] }
  0x5a   : > { %4943 = vmatmul.mubr.f32.gmra.mrb[2].mxu0 %v6470_v62  ;;  %551 = vst [vmem:[#allocation2 + $0xe9] sm:$0x7f] %v518_v40  ;;  %v6484_v10 = vld [vmem:[#allocation2 + $0x278] sm:$0xff]  ;;  %7213 = vst [vmem:[#allocation6_spill] sm:$0xff] %v6507_v41  ;;  %v3969_v39 = vld [vmem:[%s7191_s1 + $0x360] sm:$0xff] }
  0x5b   : > { %4945 = vmatprep.mubr.f32.mxu0 %v6185_v15  ;;  %5426 = vmatpush3.bf16.msra.mxu0 %v5423_v3  ;;  %v6497_v15 = vld [vmem:[#allocation2 + $0x288] sm:$0xff]  ;;  %v3968_v36 = vld [vmem:[%s7191_s1 + $0x358] sm:$0xff]  ;;  %554 = vst [vmem:[#allocation2 + $0x101] sm:$0xff] %v6507_v41  ;;  %v6566_v45 = vld [vmem:[#allocation2 + $0x10] sm:$0xff] }
  0x5c   : > { %5428 = vmatprep.subr.bf16.mxu0 %v5427_v12  ;;  %4570 = vmatmul.mubr.f32.gmra.mrb[20].mxu1 %v6191_v16  ;;  %v5435_v16 = vpack.c.bf16 %v3966_v14, %v3965_v51  ;;  %v3972_v52 = vld [vmem:[%s7191_s1 + $0x378] sm:$0xff]  ;;  %v4006_v42 = vld [vmem:[%s7191_s1 + $0x388] sm:$0xff]  ;;  %v6569_v55 = vld [vmem:[#allocation2 + $0x120] sm:$0xff] }
  0x5d   : > { %4572 = vmatprep.mubr.f32.mxu1 %v6205_v23  ;;  %v522_v23 = vld [vmem:[%s6010_s5 + $0xf8] sm:$0x7f]  ;;  %v3769_v3 = vld [vmem:[%s7191_s1 + $0x120] sm:$0xff]  ;;  %v6584_v59 = vld [vmem:[#allocation2 + $0x2e8] sm:$0xff] }
  0x5e   : > { %4946 = vmatmul.mubr.f32.gmra.mrb[4].mxu0 %v6484_v10  ;;  %555 = vst [vmem:[#allocation2 + $0x109] sm:$0x7f] %v522_v23  ;;  %v3768_v33 = vld [vmem:[%s7191_s1 + $0x118] sm:$0xff]  ;;  %v6586_v4 = vld [vmem:[#allocation2 + $0x20] sm:$0xff]  ;;  %v6597_v49 = vld [vmem:[#allocation2 + $0x28] sm:$0xff] }
  0x5f   : > { %4948 = vmatprep.mubr.f32.mxu0 %v6208_v25  ;;  %5430 = vmatpush3.bf16.msra.mxu0 %v5427_v12  ;;  %v6514_v25 = vld [vmem:[#allocation2 + $0x298] sm:$0xff]  ;;  %v3771_v12 = vld [vmem:[%s7191_s1 + $0x130] sm:$0xff]  ;;  %v3773_v11 = vld [vmem:[%s7191_s1 + $0x140] sm:$0xff] }
  0x60   : > { %5432 = vmatprep.subr.bf16.mxu0 %v5431_v19  ;;  %4573 = vmatmul.mubr.f32.gmra.mrb[22].mxu1 %v6211_v26  ;;  %v5439_v26 = vpack.c.bf16 %v3968_v36, %v3967_v22  ;;  %v6580_v37 = vld [vmem:[#allocation2 + $0x18] sm:$0xff]  ;;  %v6602_v9 = vld [vmem:[#allocation2 + $0x30] sm:$0xff]  ;;  %v6616_v14 = vld [vmem:[#allocation2 + $0x308] sm:$0xff] }
  0x61   : > { %4575 = vmatprep.mubr.f32.mxu1 %v6218_v29  ;;  %v3970_v29 = vld [vmem:[%s7191_s1 + $0x368] sm:$0xff]  ;;  %v6600_v5 = vld [vmem:[#allocation2 + $0x2f8] sm:$0xff]  ;;  %v3775_v36 = vld [vmem:[%s7191_s1 + $0x150] sm:$0xff] }
  0x62   : > { %4949 = vmatmul.mubr.f32.gmra.mrb[6].mxu0 %v6497_v15  ;;  %v5443_v44 = vpack.c.bf16 %v3970_v29, %v3969_v39  ;;  %v6613_v51 = vld [vmem:[#allocation2 + $0x38] sm:$0xff]  ;;  %v6634_v29 = vld [vmem:[#allocation2 + $0x50] sm:$0xff]  ;;  %v4014_v6 = vld [vmem:[%s7191_s1 + $0x3c8] sm:$0xff] }
  0x63   : > { %4951 = vmatprep.mubr.f32.mxu0 %v6221_v32  ;;  %5434 = vmatpush3.bf16.msra.mxu0 %v5431_v19  ;;  %v6526_v32 = vld [vmem:[#allocation2 + $0x2a8] sm:$0xff]  ;;  %v3776_v23 = vld [vmem:[%s7191_s1 + $0x158] sm:$0xff] }
  0x64   : > { %5436 = vmatprep.subr.bf16.mxu0 %v5435_v16  ;;  %4576 = vmatmul.mubr.f32.gmra.mrb[24].mxu1 %v6233_v38  ;;  %v3971_v38 = vld [vmem:[%s7191_s1 + $0x370] sm:$0xff]  ;;  %v3774_v19 = vld [vmem:[%s7191_s1 + $0x148] sm:$0xff]  ;;  %v6632_v39 = vld [vmem:[#allocation2 + $0x318] sm:$0xff] }
  0x65   : > { %4578 = vmatprep.mubr.f32.mxu1 %v6249_v50  ;;  %v6538_v50 = vld [vmem:[#allocation2 + $0x2b8] sm:$0xff]  ;;  %v5447_v43 = vpack.c.bf16 %v3972_v52, %v3971_v38  ;;  %v5307_v22 = vpack.c.bf16 %v3774_v19, %v3773_v11  ;;  %v3777_v38 = vld [vmem:[%s7191_s1 + $0x160] sm:$0xff]  ;;  %v3778_v52 = vld [vmem:[%s7191_s1 + $0x168] sm:$0xff] }
  0x66   : > { %4952 = vmatmul.mubr.f32.gmra.mrb[8].mxu0 %v6514_v25  ;;  %v6676_v11 = vld [vmem:[%s6010_s5 + $0xf8] sm:$0xff]  ;;  %v6753_v41 = vld [vmem:[#allocation2 + $0xc8] sm:$0xff] }
  0x67   : > { %4954 = vmatprep.mubr.f32.mxu0 %v6252_v54  ;;  %5438 = vmatpush3.bf16.msra.mxu0 %v5435_v16  ;;  %v6618_v16 = vld [vmem:[#allocation2 + $0x40] sm:$0xff]  ;;  %7217 = vst [vmem:[#allocation10_spill] sm:$0xff] %v6676_v11  ;;  %v6680_v19 = vld [vmem:[#allocation2 + $0x78] sm:$0xff]  ;;  %v4018_v46 = vld [vmem:[%s7191_s1 + $0x3e8] sm:$0xff] }
  0x68   : > { %5440 = vmatprep.subr.bf16.mxu0 %v5439_v26  ;;  %4579 = vmatmul.mubr.f32.gmra.mrb[26].mxu1 %v6261_v60  ;;  %v4005_v60 = vld [vmem:[%s7191_s1 + $0x380] sm:$0xff]  ;;  %7218 = vst [vmem:[#allocation11_spill] sm:$0xff] %v6680_v19  ;;  %v6739_v11 = vld [vmem:[#allocation2 + $0xb8] sm:$0xff] }
  0x69   : > { %4581 = vmatprep.mubr.f32.mxu1 %v6268_v63  ;;  %v6550_v63 = vld [vmem:[#allocation2 + $0x2c8] sm:$0xff]  ;;  %v6552_v53 = vpack.c.bf16 %v4006_v42, %v4005_v60  ;;  %v6650_v42 = vld [vmem:[#allocation2 + $0x60] sm:$0xff]  ;;  %v4016_v56 = vld [vmem:[%s7191_s1 + $0x3d8] sm:$0xff] }
  0x6a   : > { %4955 = vmatmul.mubr.f32.gmra.mrb[10].mxu0 %v6526_v32  ;;  %v6648_v60 = vld [vmem:[#allocation2 + $0x328] sm:$0xff]  ;;  %7214 = vst [vmem:[#allocation7_spill] sm:$0xff] %v6650_v42 }
  0x6b   : > { %4957 = vmatprep.mubr.f32.mxu0 %v6271_v0  ;;  %5442 = vmatpush3.bf16.msra.mxu0 %v5439_v26  ;;  %v6629_v26 = vld [vmem:[#allocation2 + $0x48] sm:$0xff] }
  0x6c   : > { %5444 = vmatprep.subr.bf16.mxu0 %v5443_v44  ;;  %4582 = vmatmul.mubr.f32.gmra.mrb[28].mxu1 %v6274_v2  ;;  %v3767_v2 = vld [vmem:[%s7191_s1 + $0x110] sm:$0xff] }
  0x6d   : > { %4584 = vmatprep.mubr.f32.mxu1 %v6297_v20  ;;  %v6564_v20 = vld [vmem:[#allocation2 + $0x2d8] sm:$0xff] }
  0x6e   : > { %4958 = vmatmul.mubr.f32.gmra.mrb[12].mxu0 %v6538_v50 }
  0x6f   : > { %4960 = vmatprep.mubr.f32.mxu0 %v6300_v21  ;;  %5446 = vmatpush3.bf16.msra.mxu0 %v5443_v44  ;;  %v5311_v44 = vpack.c.bf16 %v3776_v23, %v3775_v36  ;;  %v6683_v36 = vld [vmem:[#allocation2 + $0x80] sm:$0xff] }
  0x70   : > { %5448 = vmatprep.subr.bf16.mxu0 %v5447_v43  ;;  %4585 = vmatmul.mubr.f32.gmra.mrb[30].mxu1 %v6307_v30  ;;  %v5295_v30 = vpack.c.bf16 %v3768_v33, %v3767_v2  ;;  %v5315_v2 = vpack.c.bf16 %v3778_v52, %v3777_v38  ;;  %v3779_v33 = vld [vmem:[%s7191_s1 + $0x170] sm:$0xff]  ;;  %7219 = vst [vmem:[#allocation12_spill] sm:$0xff] %v6683_v36  ;;  %v4008_v38 = vld [vmem:[%s7191_s1 + $0x398] sm:$0xff] }
  0x71   : > { %4619 = vmatprep.mubr.f32.mxu1 %v5843_v7  ;;  %v3770_v7 = vld [vmem:[%s7191_s1 + $0x128] sm:$0xff]  ;;  %v6698_v52 = vld [vmem:[#allocation2 + $0x90] sm:$0xff] }
  0x72   : > { %4961 = vmatmul.mubr.f32.gmra.mrb[14].mxu0 %v6550_v63  ;;  %v5299_v1 = vpack.c.bf16 %v3770_v7, %v3769_v3  ;;  %v6661_v3 = vld [vmem:[#allocation2 + $0x68] sm:$0xff]  ;;  %v6664_v7 = vld [vmem:[#allocation2 + $0x338] sm:$0xff] }
  0x73   : > { %4963 = vmatprep.mubr.f32.mxu0 %v6311_v28  ;;  %5450 = vmatpush3.bf16.msra.mxu0 %v5447_v43  ;;  %v6645_v43 = vld [vmem:[#allocation2 + $0x58] sm:$0xff]  ;;  %7215 = vst [vmem:[#allocation8_spill] sm:$0xff] %v6661_v3 }
  0x74   : > { %5452 = vmatprep.subr.bf16.mxu0 %v6552_v53  ;;  %4620 = vmatmul.mubr.f32.vlgmr.msra.gmra.mrb[0].mxu1 %v6569_v55 }
  0x75   : > { %5294 = vmatpush3.bf16.msra.mxu1 %v6448_v57  ;;  %4622 = vmatprep.mubr.f32.mxu1 %v6566_v45  ;;  %v3772_v57 = vld [vmem:[%s7191_s1 + $0x138] sm:$0xff] }
  0x76   : > { %4964 = vmatmul.mubr.f32.gmra.mrb[16].mxu0 %v6564_v20  ;;  %5296 = vmatprep.subr.bf16.mxu1 %v5295_v30  ;;  %v5303_v40 = vpack.c.bf16 %v3772_v57, %v3771_v12  ;;  %v3813_v57 = vld [vmem:[%s7191_s1 + $0x180] sm:$0xff] }
  0x77   : > { %4966 = vmatprep.mubr.f32.mxu0 %v6329_v47 }
  0x78   : > { %4623 = vmatmul.mubr.f32.gmra.mrb[2].mxu1 %v6580_v37 }
  0x79   : > { %4625 = vmatprep.mubr.f32.mxu1 %v6586_v4  ;;  %5298 = vmatpush3.bf16.msra.mxu1 %v5295_v30  ;;  %v3780_v30 = vld [vmem:[%s7191_s1 + $0x178] sm:$0xff] }
  0x7a   : > { %4967 = vmatmul.mubr.f32.gmra.mrb[18].mxu0 %v6584_v59  ;;  %5300 = vmatprep.subr.bf16.mxu1 %v5299_v1  ;;  %v5319_v12 = vpack.c.bf16 %v3780_v30, %v3779_v33  ;;  %v4009_v33 = vld [vmem:[%s7191_s1 + $0x3a0] sm:$0xff]  ;;  %v4010_v30 = vld [vmem:[%s7191_s1 + $0x3a8] sm:$0xff] }
  0x7b   : > { %4969 = vmatprep.mubr.f32.mxu0 %v6341_v58 }
  0x7c   : > { %4626 = vmatmul.mubr.f32.gmra.mrb[4].mxu1 %v6597_v49 }
  0x7d   : > { %4628 = vmatprep.mubr.f32.mxu1 %v6602_v9  ;;  %5302 = vmatpush3.bf16.msra.mxu1 %v5299_v1  ;;  %v6666_v1 = vld [vmem:[#allocation2 + $0x70] sm:$0xff] }
  0x7e   : > { %4970 = vmatmul.mubr.f32.gmra.mrb[20].mxu0 %v6600_v5  ;;  %5304 = vmatprep.subr.bf16.mxu1 %v5303_v40  ;;  %7216 = vst [vmem:[#allocation9_spill] sm:$0xff] %v6666_v1 }
  0x7f   : > { %4972 = vmatprep.mubr.f32.mxu0 %v6362_v17 }
  0x80   : > { %4629 = vmatmul.mubr.f32.gmra.mrb[6].mxu1 %v6613_v51 }
  0x81   : > { %4631 = vmatprep.mubr.f32.mxu1 %v6618_v16  ;;  %5306 = vmatpush3.bf16.msra.mxu1 %v5303_v40  ;;  %v3814_v40 = vld [vmem:[%s7191_s1 + $0x188] sm:$0xff] }
  0x82   : > { %4973 = vmatmul.mubr.f32.gmra.mrb[22].mxu0 %v6616_v14  ;;  %5308 = vmatprep.subr.bf16.mxu1 %v5307_v22  ;;  %v6685_v23 = vpack.c.bf16 %v3814_v40, %v3813_v57  ;;  %v6710_v57 = vld [vmem:[#allocation2 + $0x98] sm:$0xff]  ;;  %v5459_v40 = vpack.c.bf16 %v4010_v30, %v4009_v33  ;;  %v4013_v30 = vld [vmem:[%s7191_s1 + $0x3c0] sm:$0xff] }
  0x83   : > { %4975 = vmatprep.mubr.f32.mxu0 %v6369_v35  ;;  %7220 = vst [vmem:[#allocation13_spill] sm:$0xff] %v6710_v57 }
  0x84   : > { %4632 = vmatmul.mubr.f32.gmra.mrb[8].mxu1 %v6629_v26 }
  0x85   : > { %4634 = vmatprep.mubr.f32.mxu1 %v6634_v29  ;;  %5310 = vmatpush3.bf16.msra.mxu1 %v5307_v22  ;;  %v3908_v22 = vld [vmem:[#allocation2 + $0x348] sm:$0xff] }
  0x86   : > { %4976 = vmatmul.mubr.f32.gmra.mrb[24].mxu0 %v6632_v39  ;;  %5312 = vmatprep.subr.bf16.mxu1 %v5311_v44 }
  0x87   : > { %4978 = vmatprep.mubr.f32.mxu0 %v6391_v48 }
  0x88   : > { %4635 = vmatmul.mubr.f32.gmra.mrb[10].mxu1 %v6645_v43 }
  0x89   : > { %4637 = vmatprep.mubr.f32.mxu1 %v6650_v42  ;;  %5314 = vmatpush3.bf16.msra.mxu1 %v5311_v44  ;;  %v4007_v44 = vld [vmem:[%s7191_s1 + $0x390] sm:$0xff] }
  0x8a   : > { %4979 = vmatmul.mubr.f32.gmra.mrb[26].mxu0 %v6648_v60  ;;  %5316 = vmatprep.subr.bf16.mxu1 %v5315_v2 }
  0x8b   : > { %4981 = vmatprep.mubr.f32.mxu0 %v6404_v27 }
  0x8c   : > { %4638 = vmatmul.mubr.f32.gmra.mrb[12].mxu1 %v6661_v3 }
  0x8d   : > { %4640 = vmatprep.mubr.f32.mxu1 %v6666_v1  ;;  %5318 = vmatpush3.bf16.msra.mxu1 %v5315_v2  ;;  %v5455_v2 = vpack.c.bf16 %v4008_v38, %v4007_v44  ;;  %v4012_v44 = vld [vmem:[%s7191_s1 + $0x3b8] sm:$0xff]  ;;  %v6728_v38 = vld [vmem:[#allocation2 + $0xb0] sm:$0xff] }
  0x8e   : > { %4982 = vmatmul.mubr.f32.gmra.mrb[28].mxu0 %v6664_v7  ;;  %5320 = vmatprep.subr.bf16.mxu1 %v5319_v12 }
  0x8f   : > { %4984 = vmatprep.mubr.f32.mxu0 %v6429_v31  ;;  %v6695_v31 = vld [vmem:[#allocation2 + $0x88] sm:$0xff] }
  0x90   : > { %4641 = vmatmul.mubr.f32.gmra.mrb[14].mxu1 %v6680_v19 }
  0x91   : > { %4643 = vmatprep.mubr.f32.mxu1 %v6683_v36  ;;  %5322 = vmatpush3.bf16.msra.mxu1 %v5319_v12  ;;  %v6714_v12 = vld [vmem:[#allocation2 + $0xa0] sm:$0xff] }
  0x92   : > { %4985 = vmatmul.mubr.f32.gmra.mrb[30].mxu0 %v3908_v22  ;;  %5324 = vmatprep.subr.bf16.mxu1 %v6685_v23  ;;  %v4011_v22 = vld [vmem:[%s7191_s1 + $0x3b0] sm:$0xff] }
  0x93   : > { %5019 = vmatprep.mubr.f32.mxu0 %v6586_v4  ;;  %v5463_v33 = vpack.c.bf16 %v4012_v44, %v4011_v22  ;;  %v5467_v22 = vpack.c.bf16 %v4014_v6, %v4013_v30  ;;  %v4015_v44 = vld [vmem:[%s7191_s1 + $0x3d0] sm:$0xff]  ;;  %v4017_v30 = vld [vmem:[%s7191_s1 + $0x3e0] sm:$0xff] }
  0x94   : > { %4644 = vmatmul.mubr.f32.gmra.mrb[16].mxu1 %v6695_v31  ;;  %v5471_v6 = vpack.c.bf16 %v4016_v56, %v4015_v44  ;;  %v5475_v56 = vpack.c.bf16 %v4018_v46, %v4017_v30  ;;  %v4019_v44 = vld [vmem:[%s7191_s1 + $0x3f0] sm:$0xff]  ;;  %v4053_v30 = vld [vmem:[%s7191_s1 + $0x400] sm:$0xff] }
  0x95   : > { %4646 = vmatprep.mubr.f32.mxu1 %v6698_v52 }
  0x96   : > { %5020 = vmatmul.mubr.f32.vlgmr.msra.gmra.mrb[0].mxu0 %v6597_v49 }
  0x97   : > { %5454 = vmatpush3.bf16.msra.mxu0 %v6552_v53  ;;  %5022 = vmatprep.mubr.f32.mxu0 %v6602_v9  ;;  %v6725_v53 = vld [vmem:[#allocation2 + $0xa8] sm:$0xff] }
  0x98   : > { %5456 = vmatprep.subr.bf16.mxu0 %v5455_v2  ;;  %4647 = vmatmul.mubr.f32.gmra.mrb[18].mxu1 %v6710_v57  ;;  %7221 = vst [vmem:[#allocation14_spill] sm:$0xff] %v6725_v53 }
  0x99   : > { %4649 = vmatprep.mubr.f32.mxu1 %v6714_v12 }
  0x9a   : > { %5023 = vmatmul.mubr.f32.gmra.mrb[2].mxu0 %v6613_v51 }
  0x9b   : > { %5025 = vmatprep.mubr.f32.mxu0 %v6618_v16  ;;  %5458 = vmatpush3.bf16.msra.mxu0 %v5455_v2  ;;  %v6742_v2 = vld [vmem:[#allocation2 + $0xc0] sm:$0xff] }
  0x9c   : > { %5460 = vmatprep.subr.bf16.mxu0 %v5459_v40  ;;  %4650 = vmatmul.mubr.f32.gmra.mrb[20].mxu1 %v6725_v53 }
  0x9d   : > { %4652 = vmatprep.mubr.f32.mxu1 %v6728_v38 }
  0x9e   : > { %5026 = vmatmul.mubr.f32.gmra.mrb[4].mxu0 %v6629_v26 }
  0x9f   : > { %5028 = vmatprep.mubr.f32.mxu0 %v6634_v29  ;;  %5462 = vmatpush3.bf16.msra.mxu0 %v5459_v40  ;;  %v6756_v40 = vld [vmem:[#allocation2 + $0xd0] sm:$0xff] }
  0xa0   : > { %5464 = vmatprep.subr.bf16.mxu0 %v5463_v33  ;;  %4653 = vmatmul.mubr.f32.gmra.mrb[22].mxu1 %v6739_v11 }
  0xa1   : > { %4655 = vmatprep.mubr.f32.mxu1 %v6742_v2 }
  0xa2   : > { %5029 = vmatmul.mubr.f32.gmra.mrb[6].mxu0 %v6645_v43 }
  0xa3   : > { %5031 = vmatprep.mubr.f32.mxu0 %v6650_v42  ;;  %5466 = vmatpush3.bf16.msra.mxu0 %v5463_v33  ;;  %v6767_v42 = vld [vmem:[#allocation2 + $0xd8] sm:$0xff]  ;;  %v6770_v33 = vld [vmem:[#allocation2 + $0xe0] sm:$0xff] }
  0xa4   : > { %5468 = vmatprep.subr.bf16.mxu0 %v5467_v22  ;;  %4656 = vmatmul.mubr.f32.gmra.mrb[24].mxu1 %v6753_v41 }
  0xa5   : > { %4658 = vmatprep.mubr.f32.mxu1 %v6756_v40 }
  0xa6   : > { %5032 = vmatmul.mubr.f32.gmra.mrb[8].mxu0 %v6661_v3  ;;  %v4020_v3 = vld [vmem:[%s7191_s1 + $0x3f8] sm:$0xff] }
  0xa7   : > { %5034 = vmatprep.mubr.f32.mxu0 %v6666_v1  ;;  %5470 = vmatpush3.bf16.msra.mxu0 %v5467_v22  ;;  %v6781_v1 = vld [vmem:[#allocation2 + $0xe8] sm:$0xff]  ;;  %v6784_v22 = vld [vmem:[#allocation2 + $0xf0] sm:$0xff]  ;;  %v5479_v46 = vpack.c.bf16 %v4020_v3, %v4019_v44  ;;  %v3816_v44 = vld [vmem:[%s7191_s1 + $0x198] sm:$0xff] }
  0xa8   : > { %5472 = vmatprep.subr.bf16.mxu0 %v5471_v6  ;;  %4659 = vmatmul.mubr.f32.gmra.mrb[26].mxu1 %v6767_v42 }
  0xa9   : > { %4661 = vmatprep.mubr.f32.mxu1 %v6770_v33 }
  0xaa   : > { %5035 = vmatmul.mubr.f32.gmra.mrb[10].mxu0 %v6680_v19  ;;  %v4054_v19 = vld [vmem:[%s7191_s1 + $0x408] sm:$0xff] }
  0xab   : > { %5037 = vmatprep.mubr.f32.mxu0 %v6683_v36  ;;  %5474 = vmatpush3.bf16.msra.mxu0 %v5471_v6  ;;  %v6795_v36 = vld [vmem:[#allocation2 + $0xf8] sm:$0xff]  ;;  %v6798_v3 = vpack.c.bf16 %v4054_v19, %v4053_v30  ;;  %v3815_v6 = vld [vmem:[%s7191_s1 + $0x190] sm:$0xff]  ;;  %v3817_v19 = vld [vmem:[%s7191_s1 + $0x1a0] sm:$0xff] }
  0xac   : > { %5476 = vmatprep.subr.bf16.mxu0 %v5475_v56  ;;  %4662 = vmatmul.mubr.f32.gmra.mrb[28].mxu1 %v6781_v1  ;;  %v3818_v30 = vld [vmem:[%s7191_s1 + $0x1a8] sm:$0xff] }
  0xad   : > { %4664 = vmatprep.mubr.f32.mxu1 %v6784_v22 }
  0xae   : > { %5038 = vmatmul.mubr.f32.gmra.mrb[12].mxu0 %v6695_v31 }
  0xaf   : > { %5040 = vmatprep.mubr.f32.mxu0 %v6698_v52  ;;  %5478 = vmatpush3.bf16.msra.mxu0 %v5475_v56  ;;  %v5327_v56 = vpack.c.bf16 %v3816_v44, %v3815_v6  ;;  %v3819_v6 = vld [vmem:[%s7191_s1 + $0x1b0] sm:$0xff]  ;;  %v3820_v44 = vld [vmem:[%s7191_s1 + $0x1b8] sm:$0xff] }
  0xb0   : > { %5480 = vmatprep.subr.bf16.mxu0 %v5479_v46  ;;  %4665 = vmatmul.mubr.f32.gmra.mrb[30].mxu1 %v6795_v36 }
  0xb1   : > { %4699 = vmatprep.mubr.f32.mxu1 %v6569_v55 }
  0xb2   : > { %5041 = vmatmul.mubr.f32.gmra.mrb[14].mxu0 %v6710_v57  ;;  %v5813_v57 = vld [vmem:[#allocation2 + $0x250] sm:$0xff] }
  0xb3   : > { %5043 = vmatprep.mubr.f32.mxu0 %v6714_v12  ;;  %5482 = vmatpush3.bf16.msra.mxu0 %v5479_v46  ;;  %v5331_v46 = vpack.c.bf16 %v3818_v30, %v3817_v19  ;;  %v5815_v19 = vld [vmem:[#allocation2 + $0x270] sm:$0xff]  ;;  %v5816_v30 = vld [vmem:[#allocation2 + $0x280] sm:$0xff] }
  0xb4   : > { %5484 = vmatprep.subr.bf16.mxu0 %v6798_v3  ;;  %4700 = vmatmul.mubr.f32.vlgmr.msra.gmra.mrb[0].mxu1 %v6569_v55 }
  0xb5   : > { %5326 = vmatpush3.bf16.msra.mxu1 %v6685_v23  ;;  %4702 = vmatprep.mubr.f32.mxu1 %v5813_v57  ;;  %v5335_v23 = vpack.c.bf16 %v3820_v44, %v3819_v6  ;;  %v3822_v57 = vld [vmem:[%s7191_s1 + $0x1c8] sm:$0xff]  ;;  %v5817_v44 = vld [vmem:[#allocation2 + $0x290] sm:$0xff] }
  0xb6   : > { %5044 = vmatmul.mubr.f32.gmra.mrb[16].mxu0 %v6725_v53  ;;  %5328 = vmatprep.subr.bf16.mxu1 %v5327_v56  ;;  %v5814_v53 = vld [vmem:[#allocation2 + $0x260] sm:$0xff]  ;;  %v3826_v6 = vld [vmem:[%s7191_s1 + $0x1e8] sm:$0xff] }
  0xb7   : > { %5046 = vmatprep.mubr.f32.mxu0 %v6728_v38 }
  0xb8   : > { %4703 = vmatmul.mubr.f32.gmra.mrb[2].mxu1 %v6455_v61  ;;  %v3821_v61 = vld [vmem:[%s7191_s1 + $0x1c0] sm:$0xff] }
  0xb9   : > { %4705 = vmatprep.mubr.f32.mxu1 %v5814_v53  ;;  %5330 = vmatpush3.bf16.msra.mxu1 %v5327_v56  ;;  %v5339_v53 = vpack.c.bf16 %v3822_v57, %v3821_v61  ;;  %v3824_v56 = vld [vmem:[%s7191_s1 + $0x1d8] sm:$0xff] }
  0xba   : > { %5047 = vmatmul.mubr.f32.gmra.mrb[18].mxu0 %v6739_v11  ;;  %5332 = vmatprep.subr.bf16.mxu1 %v5331_v46  ;;  %v3828_v57 = vld [vmem:[%s7191_s1 + $0x1f8] sm:$0xff] }
  0xbb   : > { %5049 = vmatprep.mubr.f32.mxu0 %v6742_v2 }
  0xbc   : > { %4706 = vmatmul.mubr.f32.gmra.mrb[4].mxu1 %v6470_v62  ;;  %v3823_v62 = vld [vmem:[%s7191_s1 + $0x1d0] sm:$0xff] }
  0xbd   : > { %4708 = vmatprep.mubr.f32.mxu1 %v5815_v19  ;;  %5334 = vmatpush3.bf16.msra.mxu1 %v5331_v46  ;;  %v5343_v46 = vpack.c.bf16 %v3824_v56, %v3823_v62  ;;  %v6869_v19 = vld [vmem:[#allocation2 + $0x108] sm:$0xff]  ;;  %v4056_v62 = vld [vmem:[%s7191_s1 + $0x418] sm:$0xff] }
  0xbe   : > { %5050 = vmatmul.mubr.f32.gmra.mrb[20].mxu0 %v6753_v41  ;;  %5336 = vmatprep.subr.bf16.mxu1 %v5335_v23 }
  0xbf   : > { %5052 = vmatprep.mubr.f32.mxu0 %v6756_v40 }
  0xc0   : > { %4709 = vmatmul.mubr.f32.gmra.mrb[6].mxu1 %v6484_v10  ;;  %v3825_v10 = vld [vmem:[%s7191_s1 + $0x1e0] sm:$0xff] }
  0xc1   : > { %4711 = vmatprep.mubr.f32.mxu1 %v5816_v30  ;;  %5338 = vmatpush3.bf16.msra.mxu1 %v5335_v23  ;;  %v6857_v23 = vld [vmem:[#allocation2 + $0x100] sm:$0xff]  ;;  %v5347_v61 = vpack.c.bf16 %v3826_v6, %v3825_v10  ;;  %v4058_v30 = vld [vmem:[%s7191_s1 + $0x428] sm:$0xff]  ;;  %v4060_v6 = vld [vmem:[%s7191_s1 + $0x438] sm:$0xff] }
  0xc2   : > { %5053 = vmatmul.mubr.f32.gmra.mrb[22].mxu0 %v6767_v42  ;;  %5340 = vmatprep.subr.bf16.mxu1 %v5339_v53 }
  0xc3   : > { %5055 = vmatprep.mubr.f32.mxu0 %v6770_v33 }
  0xc4   : > { %4712 = vmatmul.mubr.f32.gmra.mrb[8].mxu1 %v6497_v15  ;;  %v3827_v15 = vld [vmem:[%s7191_s1 + $0x1f0] sm:$0xff] }
  0xc5   : > { %4714 = vmatprep.mubr.f32.mxu1 %v5817_v44  ;;  %5342 = vmatpush3.bf16.msra.mxu1 %v5339_v53  ;;  %v5351_v53 = vpack.c.bf16 %v3828_v57, %v3827_v15  ;;  %v3981_v15 = vld [vmem:[#allocation2 + $0x180] sm:$0xff] }
  0xc6   : > { %5056 = vmatmul.mubr.f32.gmra.mrb[24].mxu0 %v6781_v1  ;;  %5344 = vmatprep.subr.bf16.mxu1 %v5343_v46 }
  0xc7   : > { %5058 = vmatprep.mubr.f32.mxu0 %v6784_v22 }
  0xc8   : > { %4715 = vmatmul.mubr.f32.gmra.mrb[10].mxu1 %v6514_v25  ;;  %v3973_v25 = vld [vmem:[#allocation2 + $0x140] sm:$0xff] }
  0xc9   : > { %4717 = vmatprep.mubr.f32.mxu1 %v6252_v54  ;;  %5346 = vmatpush3.bf16.msra.mxu1 %v5343_v46  ;;  %v4055_v54 = vld [vmem:[%s7191_s1 + $0x410] sm:$0xff]  ;;  %v3977_v46 = vld [vmem:[#allocation2 + $0x160] sm:$0xff] }
  0xca   : > { %5059 = vmatmul.mubr.f32.gmra.mrb[26].mxu0 %v6795_v36  ;;  %5348 = vmatprep.subr.bf16.mxu1 %v5347_v61  ;;  %v5487_v56 = vpack.c.bf16 %v4056_v62, %v4055_v54  ;;  %v4066_v62 = vld [vmem:[%s7191_s1 + $0x468] sm:$0xff] }
  0xcb   : > { %5061 = vmatprep.mubr.f32.mxu0 %v6857_v23 }
  0xcc   : > { %4718 = vmatmul.mubr.f32.gmra.mrb[12].mxu1 %v6526_v32  ;;  %v3975_v32 = vld [vmem:[#allocation2 + $0x150] sm:$0xff] }
  0xcd   : > { %4720 = vmatprep.mubr.f32.mxu1 %v6271_v0  ;;  %5350 = vmatpush3.bf16.msra.mxu1 %v5347_v61  ;;  %v3974_v0 = vld [vmem:[#allocation2 + $0x148] sm:$0xff] }
  0xce   : > { %5062 = vmatmul.mubr.f32.gmra.mrb[28].mxu0 %v6869_v19  ;;  %5352 = vmatprep.subr.bf16.mxu1 %v5351_v53  ;;  %v4062_v61 = vld [vmem:[%s7191_s1 + $0x448] sm:$0xff] }
  0xcf   : > { %5064 = vmatprep.mubr.f32.mxu0 %v6569_v55 }
  0xd0   : > { %4721 = vmatmul.mubr.f32.gmra.mrb[14].mxu1 %v6538_v50  ;;  %v4057_v50 = vld [vmem:[%s7191_s1 + $0x420] sm:$0xff] }
  0xd1   : > { %4723 = vmatprep.mubr.f32.mxu1 %v6300_v21  ;;  %5354 = vmatpush3.bf16.msra.mxu1 %v5351_v53  ;;  %v3976_v21 = vld [vmem:[#allocation2 + $0x158] sm:$0xff]  ;;  %v5491_v10 = vpack.c.bf16 %v4058_v30, %v4057_v50  ;;  %v6934_v50 = vld [vmem:[#allocation2 + $0x1b0] sm:$0xff] }
  0xd2   : > { %5065 = vmatmul.mubr.f32.gmra.mrb[30].mxu0 %v6569_v55  ;;  %5515 = vmatprep.subr.bf16.mxu1 %v5960_v8  ;;  %v4064_v53 = vld [vmem:[%s7191_s1 + $0x458] sm:$0xff] }
  0xd3   : > { %5099 = vmatprep.mubr.f32.mxu0 %v3973_v25  ;;  %v3983_v25 = vld [vmem:[#allocation2 + $0x190] sm:$0xff] }
  0xd4   : > { %4724 = vmatmul.mubr.f32.gmra.mrb[16].mxu1 %v6550_v63  ;;  %v4059_v63 = vld [vmem:[%s7191_s1 + $0x430] sm:$0xff] }
  0xd5   : > { %4726 = vmatprep.mubr.f32.mxu1 %v6311_v28  ;;  %v3978_v28 = vld [vmem:[#allocation2 + $0x168] sm:$0xff]  ;;  %v5495_v44 = vpack.c.bf16 %v4060_v6, %v4059_v63  ;;  %v7231_v63 = vld [vmem:[#allocation5_spill] sm:$0xff] }
  0xd6   : > { %5100 = vmatmul.mubr.f32.vlgmr.msra.gmra.mrb[0].mxu0 %v3974_v0  ;;  %v3985_v0 = vld [vmem:[#allocation2 + $0x1a0] sm:$0xff]  ;;  %v4022_v6 = vld [vmem:[#allocation2 + $0x268] sm:$0xff] }
  0xd7   : > { %5486 = vmatpush3.bf16.msra.mxu0 %v6798_v3  ;;  %5102 = vmatprep.mubr.f32.mxu0 %v3975_v32  ;;  %v3979_v3 = vld [vmem:[#allocation2 + $0x170] sm:$0xff] }
  0xd8   : > { %5488 = vmatprep.subr.bf16.mxu0 %v5487_v56  ;;  %4727 = vmatmul.mubr.f32.gmra.mrb[18].mxu1 %v6564_v20  ;;  %v4061_v20 = vld [vmem:[%s7191_s1 + $0x440] sm:$0xff] }
  0xd9   : > { %4729 = vmatprep.mubr.f32.mxu1 %v6329_v47  ;;  %v3980_v47 = vld [vmem:[#allocation2 + $0x178] sm:$0xff]  ;;  %v5499_v57 = vpack.c.bf16 %v4062_v61, %v4061_v20  ;;  %v4025_v20 = vld [vmem:[#allocation2 + $0x280] sm:$0xff] }
  0xda   : > { %5103 = vmatmul.mubr.f32.gmra.mrb[2].mxu0 %v3976_v21  ;;  %v6941_v21 = vld [vmem:[#allocation2 + $0x1c0] sm:$0xff]  ;;  %v7233_v61 = vld [vmem:[#allocation14_spill] sm:$0xff] }
  0xdb   : > { %5105 = vmatprep.mubr.f32.mxu0 %v3977_v46  ;;  %5490 = vmatpush3.bf16.msra.mxu0 %v5487_v56  ;;  %v4068_v56 = vld [vmem:[%s7191_s1 + $0x478] sm:$0xff] }
  0xdc   : > { %5492 = vmatprep.subr.bf16.mxu0 %v5491_v10  ;;  %4730 = vmatmul.mubr.f32.gmra.mrb[20].mxu1 %v6584_v59  ;;  %v4063_v59 = vld [vmem:[%s7191_s1 + $0x450] sm:$0xff]  ;;  %v7229_v46 = vld [vmem:[#allocation10_spill] sm:$0xff] }
  0xdd   : > { %4732 = vmatprep.mubr.f32.mxu1 %v6341_v58  ;;  %v3982_v58 = vld [vmem:[#allocation2 + $0x188] sm:$0xff]  ;;  %v5503_v54 = vpack.c.bf16 %v4064_v53, %v4063_v59  ;;  %v4044_v59 = vld [vmem:[#allocation2 + $0x318] sm:$0xff]  ;;  %v4045_v53 = vld [vmem:[#allocation2 + $0x320] sm:$0xff] }
  0xde   : > { %5106 = vmatmul.mubr.f32.gmra.mrb[4].mxu0 %v3978_v28  ;;  %v4023_v28 = vld [vmem:[#allocation2 + $0x270] sm:$0xff] }
  0xdf   : > { %5108 = vmatprep.mubr.f32.mxu0 %v3979_v3  ;;  %5494 = vmatpush3.bf16.msra.mxu0 %v5491_v10  ;;  %v7230_v10 = vld [vmem:[#allocation12_spill] sm:$0xff]  ;;  %v7232_v3 = vld [vmem:[#allocation13_spill] sm:$0xff] }
  0xe0   : > { %5496 = vmatprep.subr.bf16.mxu0 %v5495_v44  ;;  %4733 = vmatmul.mubr.f32.gmra.mrb[22].mxu1 %v6600_v5  ;;  %v4065_v5 = vld [vmem:[%s7191_s1 + $0x460] sm:$0xff] }
  0xe1   : > { %4735 = vmatprep.mubr.f32.mxu1 %v6362_v17  ;;  %v3984_v17 = vld [vmem:[#allocation2 + $0x198] sm:$0xff]  ;;  %v5507_v32 = vpack.c.bf16 %v4066_v62, %v4065_v5  ;;  %v4049_v5 = vld [vmem:[#allocation2 + $0x340] sm:$0xff]  ;;  %v4050_v62 = vld [vmem:[#allocation2 + $0x348] sm:$0xff] }
  0xe2   : > { %5109 = vmatmul.mubr.f32.gmra.mrb[6].mxu0 %v3980_v47  ;;  %v4028_v47 = vld [vmem:[#allocation2 + $0x298] sm:$0xff] }
  0xe3   : > { %5111 = vmatprep.mubr.f32.mxu0 %v3981_v15  ;;  %5498 = vmatpush3.bf16.msra.mxu0 %v5495_v44  ;;  %v4024_v44 = vld [vmem:[#allocation2 + $0x278] sm:$0xff]  ;;  %v4029_v15 = vld [vmem:[#allocation2 + $0x2a0] sm:$0xff] }
  0xe4   : > { %5500 = vmatprep.subr.bf16.mxu0 %v5499_v57  ;;  %4736 = vmatmul.mubr.f32.gmra.mrb[24].mxu1 %v6616_v14  ;;  %v4067_v14 = vld [vmem:[%s7191_s1 + $0x470] sm:$0xff] }
  0xe5   : > { %4738 = vmatprep.mubr.f32.mxu1 %v6369_v35  ;;  %v3986_v35 = vld [vmem:[#allocation2 + $0x1a8] sm:$0xff]  ;;  %v5511_v30 = vpack.c.bf16 %v4068_v56, %v4067_v14 }
  0xe6   : > { %5112 = vmatmul.mubr.f32.gmra.mrb[8].mxu0 %v3982_v58  ;;  %v4046_v58 = vld [vmem:[#allocation2 + $0x328] sm:$0xff] }
  0xe7   : > { %5114 = vmatprep.mubr.f32.mxu0 %v3983_v25  ;;  %5502 = vmatpush3.bf16.msra.mxu0 %v5499_v57  ;;  %v4031_v57 = vld [vmem:[#allocation2 + $0x2b0] sm:$0xff] }
  0xe8   : > { %5504 = vmatprep.subr.bf16.mxu0 %v5503_v54  ;;  %4739 = vmatmul.mubr.f32.gmra.mrb[26].mxu1 %v6632_v39  ;;  %v6939_v39 = vld [vmem:[#allocation2 + $0x1b8] sm:$0xff]  ;;  %v4047_v25 = vld [vmem:[#allocation2 + $0x330] sm:$0xff] }
  0xe9   : > { %4741 = vmatprep.mubr.f32.mxu1 %v6391_v48  ;;  %v6947_v48 = vld [vmem:[#allocation2 + $0x1c8] sm:$0xff] }
  0xea   : > { %5115 = vmatmul.mubr.f32.gmra.mrb[10].mxu0 %v3984_v17  ;;  %v5818_v17 = vld [vmem:[#allocation2 + $0x101] sm:$0xff] }
  0xeb   : > { %5117 = vmatprep.mubr.f32.mxu0 %v3985_v0  ;;  %5506 = vmatpush3.bf16.msra.mxu0 %v5503_v54  ;;  %v4048_v54 = vld [vmem:[#allocation2 + $0x338] sm:$0xff] }
  0xec   : > { %5508 = vmatprep.subr.bf16.mxu0 %v5507_v32  ;;  %4742 = vmatmul.mubr.f32.gmra.mrb[28].mxu1 %v6648_v60  ;;  %v6956_v60 = vld [vmem:[#allocation2 + $0x1d8] sm:$0xff] }
  0xed   : > { %4744 = vmatprep.mubr.f32.mxu1 %v6404_v27  ;;  %v6949_v27 = vld [vmem:[#allocation2 + $0x1d0] sm:$0xff] }
  0xee   : > { %5118 = vmatmul.mubr.f32.gmra.mrb[12].mxu0 %v3986_v35 }
  0xef   : > { %5120 = vmatprep.mubr.f32.mxu0 %v6934_v50  ;;  %5510 = vmatpush3.bf16.msra.mxu0 %v5507_v32 }
  0xf0   : > { %5512 = vmatprep.subr.bf16.mxu0 %v5511_v30  ;;  %4745 = vmatmul.mubr.f32.gmra.mrb[30].mxu1 %v6664_v7  ;;  %v7228_v7 = vld [vmem:[#allocation11_spill] sm:$0xff] }
  0xf1   : > { %4779 = vmatprep.mubr.f32.mxu1 %v6566_v45  ;;  %v6958_v45 = vld [vmem:[#allocation2 + $0x1e0] sm:$0xff] }
  0xf2   : > { %5121 = vmatmul.mubr.f32.gmra.mrb[14].mxu0 %v6939_v39 }
  0xf3   : > { %5123 = vmatprep.mubr.f32.mxu0 %v6941_v21  ;;  %5514 = vmatpush3.bf16.msra.mxu0 %v5511_v30 }
  0xf4   : > { %4780 = vmatmul.mubr.f32.vlgmr.msra.gmra.mrb[0].mxu1 %v6580_v37  ;;  %v6965_v37 = vld [vmem:[#allocation2 + $0x1e8] sm:$0xff] }
  0xf5   : > { %5523 = vmatpush3.bf16.msra.mxu1 %v5960_v8  ;;  %4782 = vmatprep.mubr.f32.mxu1 %v6586_v4  ;;  %v6968_v8 = vld [vmem:[#allocation2 + $0x1f0] sm:$0xff]  ;;  %v6975_v4 = vld [vmem:[#allocation2 + $0x1f8] sm:$0xff] }
  0xf6   : > { %5124 = vmatmul.mubr.f32.gmra.mrb[16].mxu0 %v6947_v48  ;;  %5516 = vmatprep.subr.bf16.mxu1 %v5975_v13 }
  0xf7   : > { %5126 = vmatprep.mubr.f32.mxu0 %v6949_v27 }
  0xf8   : > { %4783 = vmatmul.mubr.f32.gmra.mrb[2].mxu1 %v6597_v49  ;;  %v6978_v49 = vld [vmem:[#allocation2 + $0x200] sm:$0xff] }
  0xf9   : > { %4785 = vmatprep.mubr.f32.mxu1 %v6602_v9  ;;  %5524 = vmatpush3.bf16.msra.mxu1 %v5975_v13  ;;  %v6985_v13 = vld [vmem:[#allocation2 + $0x208] sm:$0xff]  ;;  %v6988_v9 = vld [vmem:[#allocation2 + $0x210] sm:$0xff] }
  0xfa   : > { %5127 = vmatmul.mubr.f32.gmra.mrb[18].mxu0 %v6956_v60  ;;  %5517 = vmatprep.subr.bf16.mxu1 %v5992_v18 }
  0xfb   : > { %5129 = vmatprep.mubr.f32.mxu0 %v6958_v45 }
  0xfc   : > { %4786 = vmatmul.mubr.f32.gmra.mrb[4].mxu1 %v6613_v51  ;;  %v6995_v51 = vld [vmem:[#allocation2 + $0x218] sm:$0xff] }
  0xfd   : > { %4788 = vmatprep.mubr.f32.mxu1 %v6618_v16  ;;  %5525 = vmatpush3.bf16.msra.mxu1 %v5992_v18  ;;  %v7222_v18 = vld [vmem:[#allocation7_spill] sm:$0xff] }
  0xfe   : > { %5130 = vmatmul.mubr.f32.gmra.mrb[20].mxu0 %v6965_v37  ;;  %5518 = vmatprep.subr.bf16.mxu1 %v6014_v24  ;;  %v7223_v16 = vld [vmem:[#allocation3_spill] sm:$0xff] }
  0xff   : > { %5132 = vmatprep.mubr.f32.mxu0 %v6968_v8 }
 0x100   : > { %4789 = vmatmul.mubr.f32.gmra.mrb[6].mxu1 %v6629_v26  ;;  %v7224_v26 = vld [vmem:[#allocation8_spill] sm:$0xff] }
 0x101   : > { %4791 = vmatprep.mubr.f32.mxu1 %v6634_v29  ;;  %5526 = vmatpush3.bf16.msra.mxu1 %v6014_v24  ;;  %v7225_v24 = vld [vmem:[#allocation9_spill] sm:$0xff]  ;;  %v7226_v29 = vld [vmem:[#allocation6_spill] sm:$0xff] }
 0x102   : > { %5133 = vmatmul.mubr.f32.gmra.mrb[22].mxu0 %v6975_v4  ;;  %5519 = vmatprep.subr.bf16.mxu1 %v6046_v34 }
 0x103   : > { %5135 = vmatprep.mubr.f32.mxu0 %v6978_v49 }
 0x104   : > { %4792 = vmatmul.mubr.f32.gmra.mrb[8].mxu1 %v6645_v43  ;;  %v7227_v43 = vld [vmem:[#allocation4_spill] sm:$0xff] }
 0x105   : > { %4794 = vmatprep.mubr.f32.mxu1 %v7222_v18  ;;  %5527 = vmatpush3.bf16.msra.mxu1 %v6046_v34  ;;  %v4021_v34 = vld [vmem:[#allocation2 + $0x260] sm:$0xff]  ;;  %v3371_v18 = vld [vmem:[%s7065_s7 + $0x8] sm:$0xff] }
 0x106   : > { %5136 = vmatmul.mubr.f32.gmra.mrb[24].mxu0 %v6985_v13  ;;  %5520 = vmatprep.subr.bf16.mxu1 %v7223_v16 }
 0x107   : > { %5138 = vmatprep.mubr.f32.mxu0 %v6988_v9 }
 0x108   : > { %4795 = vmatmul.mubr.f32.gmra.mrb[10].mxu1 %v7224_v26  ;;  %v3370_v26 = vld [vmem:[%s7065_s7] sm:$0xff] }
 0x109   : > { %4797 = vmatprep.mubr.f32.mxu1 %v7225_v24  ;;  %5528 = vmatpush3.bf16.msra.mxu1 %v7223_v16 }
 0x10a   : > { %5139 = vmatmul.mubr.f32.gmra.mrb[26].mxu0 %v6995_v51  ;;  %5521 = vmatprep.subr.bf16.mxu1 %v7227_v43 }
 0x10b   : > { %5141 = vmatprep.mubr.f32.mxu0 %v7226_v29 }
 0x10c   : > { %4798 = vmatmul.mubr.f32.gmra.mrb[12].mxu1 %v7228_v7 }
 0x10d   : > { %4800 = vmatprep.mubr.f32.mxu1 %v7230_v10  ;;  %5529 = vmatpush3.bf16.msra.mxu1 %v7227_v43 }
 0x10e   : > { %5142 = vmatmul.mubr.f32.gmra.mrb[28].mxu0 %v7229_v46  ;;  %5522 = vmatprep.subr.bf16.mxu1 %v7231_v63 }
 0x10f   : > { %5144 = vmatprep.mubr.f32.mxu0 %v6569_v55 }
 0x110   : > { %4801 = vmatmul.mubr.f32.gmra.mrb[14].mxu1 %v6695_v31  ;;  %v4026_v31 = vld [vmem:[#allocation2 + $0x288] sm:$0xff] }
 0x111   : > { %4803 = vmatprep.mubr.f32.mxu1 %v6698_v52  ;;  %5530 = vmatpush3.bf16.msra.mxu1 %v7231_v63  ;;  %v4027_v52 = vld [vmem:[#allocation2 + $0x290] sm:$0xff] }
 0x112   : > { %5145 = vmatmul.mubr.f32.gmra.mrb[30].mxu0 %v6569_v55 }
 0x113   : > { %5179 = vmatprep.mubr.f32.mxu0 %v4021_v34  ;;  %v3373_v34 = vld [vmem:[%s7065_s7 + $0x18] sm:$0xff] }
 0x114   : > { %4804 = vmatmul.mubr.f32.gmra.mrb[16].mxu1 %v7232_v3  ;;  %v3372_v3 = vld [vmem:[%s7065_s7 + $0x10] sm:$0xff] }
 0x115   : > { %4806 = vmatprep.mubr.f32.mxu1 %v6714_v12  ;;  %v4030_v12 = vld [vmem:[#allocation2 + $0x2a8] sm:$0xff] }
 0x116   : > { %5180 = vmatmul.mubr.f32.vlgmr.msra.gmra.mrb[0].mxu0 %v4022_v6 }
 0x117   : > { %5182 = vmatprep.mubr.f32.mxu0 %v4023_v28 }
 0x118   : > { %4807 = vmatmul.mubr.f32.gmra.mrb[18].mxu1 %v7233_v61 }
 0x119   : > { %4809 = vmatprep.mubr.f32.mxu1 %v6728_v38  ;;  %v4033_v38 = vld [vmem:[#allocation2 + $0x2c0] sm:$0xff] }
 0x11a   : > { %5183 = vmatmul.mubr.f32.gmra.mrb[2].mxu0 %v4024_v44 }
 0x11b   : > { %5185 = vmatprep.mubr.f32.mxu0 %v4025_v20 }
 0x11c   : > { %4810 = vmatmul.mubr.f32.gmra.mrb[20].mxu1 %v6739_v11  ;;  %v4032_v11 = vld [vmem:[#allocation2 + $0x2b8] sm:$0xff] }
 0x11d   : > { %4812 = vmatprep.mubr.f32.mxu1 %v6742_v2  ;;  %v4035_v2 = vld [vmem:[#allocation2 + $0x2d0] sm:$0xff] }
 0x11e   : > { %5186 = vmatmul.mubr.f32.gmra.mrb[4].mxu0 %v4026_v31 }
 0x11f   : > { %5188 = vmatprep.mubr.f32.mxu0 %v4027_v52 }
 0x120   : > { %4813 = vmatmul.mubr.f32.gmra.mrb[22].mxu1 %v6753_v41  ;;  %v4034_v41 = vld [vmem:[#allocation2 + $0x2c8] sm:$0xff] }
 0x121   : > { %4815 = vmatprep.mubr.f32.mxu1 %v6756_v40  ;;  %v4037_v40 = vld [vmem:[#allocation2 + $0x2e0] sm:$0xff] }
 0x122   : > { %5189 = vmatmul.mubr.f32.gmra.mrb[6].mxu0 %v4028_v47 }
 0x123   : > { %5191 = vmatprep.mubr.f32.mxu0 %v4029_v15 }
 0x124   : > { %4816 = vmatmul.mubr.f32.gmra.mrb[24].mxu1 %v6767_v42  ;;  %v4036_v42 = vld [vmem:[#allocation2 + $0x2d8] sm:$0xff] }
 0x125   : > { %4818 = vmatprep.mubr.f32.mxu1 %v6770_v33  ;;  %v4039_v33 = vld [vmem:[#allocation2 + $0x2f0] sm:$0xff] }
 0x126   : > { %5192 = vmatmul.mubr.f32.gmra.mrb[8].mxu0 %v4030_v12  ;;  %v3375_v12 = vld [vmem:[%s7065_s7 + $0x28] sm:$0xff] }
 0x127   : > { %5194 = vmatprep.mubr.f32.mxu0 %v4031_v57 }
 0x128   : > { %4819 = vmatmul.mubr.f32.gmra.mrb[26].mxu1 %v6781_v1  ;;  %v4038_v1 = vld [vmem:[#allocation2 + $0x2e8] sm:$0xff] }
 0x129   : > { %4821 = vmatprep.mubr.f32.mxu1 %v6784_v22  ;;  %v4041_v22 = vld [vmem:[#allocation2 + $0x300] sm:$0xff] }
 0x12a   : > { %5195 = vmatmul.mubr.f32.gmra.mrb[10].mxu0 %v4032_v11 }
 0x12b   : > { %5197 = vmatprep.mubr.f32.mxu0 %v4033_v38 }
 0x12c   : > { %4822 = vmatmul.mubr.f32.gmra.mrb[28].mxu1 %v6795_v36  ;;  %v4040_v36 = vld [vmem:[#allocation2 + $0x2f8] sm:$0xff] }
 0x12d   : > { %4824 = vmatprep.mubr.f32.mxu1 %v6857_v23  ;;  %v4042_v23 = vld [vmem:[#allocation2 + $0x308] sm:$0xff] }
 0x12e   : > { %5198 = vmatmul.mubr.f32.gmra.mrb[12].mxu0 %v4034_v41  ;;  %v3374_v41 = vld [vmem:[%s7065_s7 + $0x20] sm:$0xff] }
 0x12f   : > { %5200 = vmatprep.mubr.f32.mxu0 %v4035_v2 }
 0x130   : > { %4825 = vmatmul.mubr.f32.gmra.mrb[30].mxu1 %v6869_v19  ;;  %v4043_v19 = vld [vmem:[#allocation2 + $0x310] sm:$0xff] }
 0x131   : > { %4883 = vmatprep.mubr.f32.mxu1 %v6934_v50 }
 0x132   : > { %5201 = vmatmul.mubr.f32.gmra.mrb[14].mxu0 %v4036_v42 }
 0x133   : > { %5203 = vmatprep.mubr.f32.mxu0 %v4037_v40 }
 0x134   : > { %4884 = vmatmul.mubr.f32.vlgmr.msra.gmra.mrb[16].mxu1 %v6939_v39 }
 0x135   : > { %4886 = vmatprep.mubr.f32.mxu1 %v6941_v21 }
 0x136   : > { %5204 = vmatmul.mubr.f32.gmra.mrb[16].mxu0 %v4038_v1 }
 0x137   : > { %5206 = vmatprep.mubr.f32.mxu0 %v4039_v33 }
 0x138   : > { %4887 = vmatmul.mubr.f32.gmra.mrb[18].mxu1 %v6947_v48 }
 0x139   : > { %4889 = vmatprep.mubr.f32.mxu1 %v6949_v27 }
 0x13a   : > { %5207 = vmatmul.mubr.f32.gmra.mrb[18].mxu0 %v4040_v36 }
 0x13b   : > { %5209 = vmatprep.mubr.f32.mxu0 %v4041_v22 }
 0x13c   : > { %4890 = vmatmul.mubr.f32.gmra.mrb[20].mxu1 %v6956_v60 }
 0x13d   : > { %4892 = vmatprep.mubr.f32.mxu1 %v6958_v45 }
 0x13e   : > { %5210 = vmatmul.mubr.f32.gmra.mrb[20].mxu0 %v4042_v23  ;;  %v3377_v23 = vld [vmem:[%s7065_s7 + $0x38] sm:$0xff] }
 0x13f   : > { %5212 = vmatprep.mubr.f32.mxu0 %v4043_v19 }
 0x140   : > { %4893 = vmatmul.mubr.f32.gmra.mrb[22].mxu1 %v6965_v37 }
 0x141   : > { %4895 = vmatprep.mubr.f32.mxu1 %v6968_v8 }
 0x142   : > { %5213 = vmatmul.mubr.f32.gmra.mrb[22].mxu0 %v4044_v59 }
 0x143   : > { %5215 = vmatprep.mubr.f32.mxu0 %v4045_v53 }
 0x144   : > { %4896 = vmatmul.mubr.f32.gmra.mrb[24].mxu1 %v6975_v4 }
 0x145   : > { %4898 = vmatprep.mubr.f32.mxu1 %v6978_v49  ;;  %v7070_v49 = vld [vmem:[%s7192_s2] ss:$0 sm:$0xff] }
 0x146   : > { %5216 = vmatmul.mubr.f32.gmra.mrb[24].mxu0 %v4046_v58  ;;  %v3376_v58 = vld [vmem:[%s7065_s7 + $0x30] sm:$0xff] }
 0x147   : > { %5218 = vmatprep.mubr.f32.mxu0 %v4047_v25 }
 0x148   : > { %4899 = vmatmul.mubr.f32.gmra.mrb[26].mxu1 %v6985_v13 }
 0x149   : > { %4901 = vmatprep.mubr.f32.mxu1 %v6988_v9 }
 0x14a   : > { %5219 = vmatmul.mubr.f32.gmra.mrb[26].mxu0 %v4048_v54 }
 0x14b   : > { %5221 = vmatprep.mubr.f32.mxu0 %v4049_v5 }
 0x14c   : > { %4902 = vmatmul.mubr.f32.gmra.mrb[28].mxu1 %v6995_v51 }
 0x14d   : > { %4904 = vmatprep.mubr.f32.mxu1 %v5818_v17 }
 0x14e   : > { %5222 = vmatmul.mubr.f32.gmra.mrb[28].mxu0 %v4050_v62 }
 0x14f   : > { %5224 = vmatprep.mubr.f32.mxu0 %v6569_v55 }
 0x150   : > { %4905 = vmatmul.mubr.f32.gmra.mrb[30].mxu1 %v7229_v46 }
 0x152   : > { %5225 = vmatmul.mubr.f32.gmra.mrb[30].mxu0 %v6569_v55 }
 0x1c7   : > { %v4781_v0 = vpop.f32.mrb[0].mxu1 }
 0x1c8   : > { %v1599_v32 = vpop.f32.mrb[1].mxu1 }
 0x1cb   : > { %v4784_v14 = vpop.f32.mrb[2].mxu1 }
 0x1cc   : > { %v1609_v56 = vpop.f32.mrb[3].mxu1 }
 0x1cf   : > { %v4787_v35 = vpop.f32.mrb[4].mxu1 }
 0x1d0   : > { %v1619_v50 = vpop.f32.mrb[5].mxu1 }
 0x1d3   : > { %v4790_v30 = vpop.f32.mrb[6].mxu1 }
 0x1d4   : > { %v1629_v39 = vpop.f32.mrb[7].mxu1 }
 0x1d7   : > { %v4793_v21 = vpop.f32.mrb[8].mxu1 }
 0x1d8   : > { %v7047_v48 = vpop.f32.mrb[9].mxu1 }
 0x1db   : > { %v7049_v27 = vpop.f32.mrb[10].mxu1 }
 0x1dc   : > { %v7051_v60 = vpop.f32.mrb[11].mxu1 }
 0x1df   : > { %v7053_v45 = vpop.f32.mrb[12].mxu1 }
 0x1e0   : > { %v7055_v37 = vpop.f32.mrb[13].mxu1 }
 0x1e3   : > { %v7057_v55 = vpop.f32.mrb[14].mxu1 }
 0x1e4   : > { %v7059_v8 = vpop.f32.mrb[15].mxu1 }
 0x1e9   : > { %v5181_v4 = vpop.f32.mrb[0].mxu0 }
 0x1ea   : > { %v5531_v13 = vadd.f32 %v5181_v4, %v4781_v0  ;;  %v3140_v9 = vpop.f32.mrb[1].mxu0 }
 0x1eb   : > { %v5532_v51 = vadd.f32 %v3140_v9, %v1599_v32 }
 0x1ec   : > { %v3339_v16 = vadd.f32 %v5531_v13, %v7070_v49 }
 0x1ed   : > { %v3338_v24 = vadd.f32 %v5532_v51, %v7070_v49  ;;  %v5184_v29 = vpop.f32.mrb[2].mxu0 }
 0x1ee   : > { %v3403_v43 = vadd.f32 %v3371_v18, %v3339_v16  ;;  %v5533_v7 = vadd.f32 %v5184_v29, %v4784_v14  ;;  %v3150_v46 = vpop.f32.mrb[3].mxu0  ;;  %v3379_v14 = vld [vmem:[%s7065_s7 + $0x48] sm:$0xff]  ;;  %v3380_v29 = vld [vmem:[%s7065_s7 + $0x50] sm:$0xff] }
 0x1ef   : > { %v3402_v10 = vadd.f32 %v3370_v26, %v3338_v24  ;;  %v5534_v63 = vadd.f32 %v3150_v46, %v1609_v56 }
 0x1f0   : > { %v3435_v6 = vmax.f32 %v3403_v43, 0.0  ;;  %v3341_v28 = vadd.f32 %v5533_v7, %v7070_v49 }
 0x1f1   : > { %v3434_v44 = vmax.f32 %v3402_v10, 0.0  ;;  %v3340_v20 = vadd.f32 %v5534_v63, %v7070_v49  ;;  %v5187_v61 = vpop.f32.mrb[4].mxu0 }
 0x1f2   : > { %3467 = vst [vmem:[%s7080_s12 + $0x8] sm:$0xff] %v3435_v6  ;;  %v3405_v31 = vadd.f32 %v3373_v34, %v3341_v28  ;;  %v5535_v52 = vadd.f32 %v5187_v61, %v4787_v35  ;;  %v3160_v47 = vpop.f32.mrb[5].mxu0 }
 0x1f3   : > { %3466 = vst [vmem:[%s7080_s12] sm:$0xff] %v3434_v44  ;;  %v3404_v15 = vadd.f32 %v3372_v3, %v3340_v20  ;;  %v5536_v57 = vadd.f32 %v3160_v47, %v1619_v50  ;;  %v3382_v44 = vld [vmem:[%s7065_s7 + $0x60] sm:$0xff] }
 0x1f4   : > { %v3437_v11 = vmax.f32 %v3405_v31, 0.0  ;;  %v3343_v38 = vadd.f32 %v5535_v52, %v7070_v49 }
 0x1f5   : > { %v3436_v2 = vmax.f32 %v3404_v15, 0.0  ;;  %v3342_v42 = vadd.f32 %v5536_v57, %v7070_v49  ;;  %v5190_v40 = vpop.f32.mrb[6].mxu0 }
 0x1f6   : > { %3469 = vst [vmem:[%s7080_s12 + $0x18] sm:$0xff] %v3437_v11  ;;  %v3407_v1 = vadd.f32 %v3375_v12, %v3343_v38  ;;  %v5537_v33 = vadd.f32 %v5190_v40, %v4790_v30  ;;  %v3170_v36 = vpop.f32.mrb[7].mxu0  ;;  %v3378_v30 = vld [vmem:[%s7065_s7 + $0x40] sm:$0xff]  ;;  %v3385_v12 = vld [vmem:[%s7065_s7 + $0x78] sm:$0xff]  ;;  %v3384_v38 = vld [vmem:[%s7065_s7 + $0x70] sm:$0xff] }
 0x1f7   : > { %3468 = vst [vmem:[%s7080_s12 + $0x10] sm:$0xff] %v3436_v2  ;;  %v3406_v22 = vadd.f32 %v3374_v41, %v3342_v42  ;;  %v5538_v19 = vadd.f32 %v3170_v36, %v1629_v39 }
 0x1f8   : > { %v3439_v59 = vmax.f32 %v3407_v1, 0.0  ;;  %v3345_v53 = vadd.f32 %v5537_v33, %v7070_v49 }
 0x1f9   : > { %v3438_v25 = vmax.f32 %v3406_v22, 0.0  ;;  %v3344_v54 = vadd.f32 %v5538_v19, %v7070_v49  ;;  %v5193_v5 = vpop.f32.mrb[8].mxu0 }
 0x1fa   : > { %3471 = vst [vmem:[%s7080_s12 + $0x28] sm:$0xff] %v3439_v59  ;;  %v3409_v62 = vadd.f32 %v3377_v23, %v3345_v53  ;;  %v5539_v17 = vadd.f32 %v5193_v5, %v4793_v21  ;;  %v3180_v0 = vpop.f32.mrb[9].mxu0  ;;  %v3386_v53 = vld [vmem:[%s7065_s7 + $0x80] sm:$0xff] }
 0x1fb   : > { %3470 = vst [vmem:[%s7080_s12 + $0x20] sm:$0xff] %v3438_v25  ;;  %v3408_v32 = vadd.f32 %v3376_v58, %v3344_v54  ;;  %v5540_v56 = vadd.f32 %v3180_v0, %v7047_v48  ;;  %v3381_v48 = vld [vmem:[%s7065_s7 + $0x58] sm:$0xff] }
 0x1fc   : > { %v3441_v35 = vmax.f32 %v3409_v62, 0.0  ;;  %v3347_v50 = vadd.f32 %v5539_v17, %v7070_v49 }
 0x1fd   : > { %v3440_v39 = vmax.f32 %v3408_v32, 0.0  ;;  %v3346_v4 = vadd.f32 %v5540_v56, %v7070_v49  ;;  %v5196_v13 = vpop.f32.mrb[10].mxu0  ;;  %v3389_v56 = vld [vmem:[%s7065_s7 + $0x98] sm:$0xff] }
 0x1fe   : > { %3473 = vst [vmem:[%s7080_s12 + $0x38] sm:$0xff] %v3441_v35  ;;  %v3411_v21 = vadd.f32 %v3379_v14, %v3347_v50  ;;  %v5541_v9 = vadd.f32 %v5196_v13, %v7049_v27  ;;  %v3190_v18 = vpop.f32.mrb[11].mxu0 }
 0x1ff   : > { %3472 = vst [vmem:[%s7080_s12 + $0x30] sm:$0xff] %v3440_v39  ;;  %v3410_v51 = vadd.f32 %v3378_v30, %v3346_v4  ;;  %v5542_v16 = vadd.f32 %v3190_v18, %v7051_v60  ;;  %v3383_v60 = vld [vmem:[%s7065_s7 + $0x68] sm:$0xff]  ;;  %v3388_v39 = vld [vmem:[%s7065_s7 + $0x90] sm:$0xff] }
 0x200   : > { %v3443_v26 = vmax.f32 %v3411_v21, 0.0  ;;  %v3349_v24 = vadd.f32 %v5541_v9, %v7070_v49 }
 0x201   : > { %v3442_v43 = vmax.f32 %v3410_v51, 0.0  ;;  %v3348_v7 = vadd.f32 %v5542_v16, %v7070_v49  ;;  %v5199_v46 = vpop.f32.mrb[12].mxu0 }
 0x202   : > { %3475 = vst [vmem:[%s7080_s12 + $0x48] sm:$0xff] %v3443_v26  ;;  %v3413_v27 = vadd.f32 %v3381_v48, %v3349_v24  ;;  %v5543_v10 = vadd.f32 %v5199_v46, %v7053_v45  ;;  %v3200_v34 = vpop.f32.mrb[13].mxu0  ;;  %v3391_v24 = vld [vmem:[%s7065_s7 + $0xa8] sm:$0xff]  ;;  %v3390_v46 = vld [vmem:[%s7065_s7 + $0xa0] sm:$0xff] }
 0x203   : > { %3474 = vst [vmem:[%s7080_s12 + $0x40] sm:$0xff] %v3442_v43  ;;  %v3412_v63 = vadd.f32 %v3380_v29, %v3348_v7  ;;  %v5544_v6 = vadd.f32 %v3200_v34, %v7055_v37 }
 0x204   : > { %v3445_v28 = vmax.f32 %v3413_v27, 0.0  ;;  %v3351_v3 = vadd.f32 %v5543_v10, %v7070_v49 }
 0x205   : > { %v3444_v20 = vmax.f32 %v3412_v63, 0.0  ;;  %v3350_v61 = vadd.f32 %v5544_v6, %v7070_v49  ;;  %v5202_v31 = vpop.f32.mrb[14].mxu0 }
 0x206   : > { %3477 = vst [vmem:[%s7080_s12 + $0x58] sm:$0xff] %v3445_v28  ;;  %v3415_v45 = vadd.f32 %v3383_v60, %v3351_v3  ;;  %v5545_v52 = vadd.f32 %v5202_v31, %v7057_v55  ;;  %v3210_v47 = vpop.f32.mrb[15].mxu0 }
 0x207   : > { %3476 = vst [vmem:[%s7080_s12 + $0x50] sm:$0xff] %v3444_v20  ;;  %v3414_v15 = vadd.f32 %v3382_v44, %v3350_v61  ;;  %v5546_v37 = vadd.f32 %v3210_v47, %v7059_v8  ;;  %v4885_v41 = vpop.f32.mrb[16].mxu1  ;;  %v3387_v8 = vld [vmem:[%s7065_s7 + $0x88] sm:$0xff]  ;;  %v3393_v20 = vld [vmem:[%s7065_s7 + $0xb8] sm:$0xff] }
 0x208   : > { %v3447_v57 = vmax.f32 %v3415_v45, 0.0  ;;  %v3353_v11 = vadd.f32 %v5545_v52, %v7070_v49  ;;  %v1987_v1 = vpop.f32.mrb[17].mxu1  ;;  %v3392_v52 = vld [vmem:[%s7065_s7 + $0xb0] sm:$0xff] }
 0x209   : > { %v3446_v2 = vmax.f32 %v3414_v15, 0.0  ;;  %v3352_v42 = vadd.f32 %v5546_v37, %v7070_v49  ;;  %v5205_v40 = vpop.f32.mrb[16].mxu0 }
 0x20a   : > { %3479 = vst [vmem:[%s7080_s12 + $0x68] sm:$0xff] %v3447_v57  ;;  %v3417_v55 = vadd.f32 %v3385_v12, %v3353_v11  ;;  %v5547_v33 = vadd.f32 %v5205_v40, %v4885_v41  ;;  %v3220_v36 = vpop.f32.mrb[17].mxu0 }
 0x20b   : > { %3478 = vst [vmem:[%s7080_s12 + $0x60] sm:$0xff] %v3446_v2  ;;  %v3416_v22 = vadd.f32 %v3384_v38, %v3352_v42  ;;  %v5548_v23 = vadd.f32 %v3220_v36, %v1987_v1  ;;  %v4888_v58 = vpop.f32.mrb[18].mxu1  ;;  %v3395_v42 = vld [vmem:[%s7065_s7 + $0xc8] sm:$0xff] }
 0x20c   : > { %v3449_v19 = vmax.f32 %v3417_v55, 0.0  ;;  %v3355_v59 = vadd.f32 %v5547_v33, %v7070_v49  ;;  %v1997_v62 = vpop.f32.mrb[19].mxu1  ;;  %v3394_v33 = vld [vmem:[%s7065_s7 + $0xc0] sm:$0xff] }
 0x20d   : > { %v3448_v25 = vmax.f32 %v3416_v22, 0.0  ;;  %v3354_v54 = vadd.f32 %v5548_v23, %v7070_v49  ;;  %v5208_v5 = vpop.f32.mrb[18].mxu0 }
 0x20e   : > { %3481 = vst [vmem:[%s7080_s12 + $0x78] sm:$0xff] %v3449_v19  ;;  %v3419_v17 = vadd.f32 %v3387_v8, %v3355_v59  ;;  %v5549_v0 = vadd.f32 %v5208_v5, %v4888_v58  ;;  %v3230_v32 = vpop.f32.mrb[19].mxu0 }
 0x20f   : > { %3480 = vst [vmem:[%s7080_s12 + $0x70] sm:$0xff] %v3448_v25  ;;  %v3418_v14 = vadd.f32 %v3386_v53, %v3354_v54  ;;  %v5550_v35 = vadd.f32 %v3230_v32, %v1997_v62  ;;  %v4891_v4 = vpop.f32.mrb[20].mxu1  ;;  %v3397_v54 = vld [vmem:[%s7065_s7 + $0xd8] sm:$0xff] }
 0x210   : > { %v3451_v50 = vmax.f32 %v3419_v17, 0.0  ;;  %v3357_v30 = vadd.f32 %v5549_v0, %v7070_v49  ;;  %v2007_v18 = vpop.f32.mrb[21].mxu1  ;;  %v3396_v0 = vld [vmem:[%s7065_s7 + $0xd0] sm:$0xff] }
 0x211   : > { %v3450_v13 = vmax.f32 %v3418_v14, 0.0  ;;  %v3356_v21 = vadd.f32 %v5550_v35, %v7070_v49  ;;  %v5211_v9 = vpop.f32.mrb[20].mxu0 }
 0x212   : > { %3483 = vst [vmem:[%s7080_s12 + $0x88] sm:$0xff] %v3451_v50  ;;  %v3421_v51 = vadd.f32 %v3389_v56, %v3357_v30  ;;  %v5551_v48 = vadd.f32 %v5211_v9, %v4891_v4  ;;  %v3240_v16 = vpop.f32.mrb[21].mxu0 }
 0x213   : > { %3482 = vst [vmem:[%s7080_s12 + $0x80] sm:$0xff] %v3450_v13  ;;  %v3420_v26 = vadd.f32 %v3388_v39, %v3356_v21  ;;  %v5552_v29 = vadd.f32 %v3240_v16, %v2007_v18  ;;  %v4894_v27 = vpop.f32.mrb[22].mxu1  ;;  %v3399_v21 = vld [vmem:[%s7065_s7 + $0xe8] sm:$0xff] }
 0x214   : > { %v3453_v43 = vmax.f32 %v3421_v51, 0.0  ;;  %v3359_v7 = vadd.f32 %v5551_v48, %v7070_v49  ;;  %v2017_v60 = vpop.f32.mrb[23].mxu1  ;;  %v3398_v48 = vld [vmem:[%s7065_s7 + $0xe0] sm:$0xff] }
 0x215   : > { %v3452_v10 = vmax.f32 %v3420_v26, 0.0  ;;  %v3358_v34 = vadd.f32 %v5552_v29, %v7070_v49  ;;  %v5214_v63 = vpop.f32.mrb[22].mxu0 }
 0x216   : > { %3485 = vst [vmem:[%s7080_s12 + $0x98] sm:$0xff] %v3453_v43  ;;  %v3423_v6 = vadd.f32 %v3391_v24, %v3359_v7  ;;  %v5553_v28 = vadd.f32 %v5214_v63, %v4894_v27  ;;  %v3250_v3 = vpop.f32.mrb[23].mxu0 }
 0x217   : > { %3484 = vst [vmem:[%s7080_s12 + $0x90] sm:$0xff] %v3452_v10  ;;  %v3422_v44 = vadd.f32 %v3390_v46, %v3358_v34  ;;  %v5554_v61 = vadd.f32 %v3250_v3, %v2017_v60  ;;  %v4897_v47 = vpop.f32.mrb[24].mxu1  ;;  %v3401_v34 = vld [vmem:[%s7065_s7 + $0xf8] sm:$0xff] }
 0x218   : > { %v3455_v31 = vmax.f32 %v3423_v6, 0.0  ;;  %v3361_v45 = vadd.f32 %v5553_v28, %v7070_v49  ;;  %v2027_v57 = vpop.f32.mrb[25].mxu1  ;;  %v3400_v28 = vld [vmem:[%s7065_s7 + $0xf0] sm:$0xff] }
 0x219   : > { %v3454_v15 = vmax.f32 %v3422_v44, 0.0  ;;  %v3360_v12 = vadd.f32 %v5554_v61, %v7070_v49  ;;  %v5217_v37 = vpop.f32.mrb[24].mxu0 }
 0x21a   : > { %3487 = vst [vmem:[%s7080_s12 + $0xa8] sm:$0xff] %v3455_v31  ;;  %v3425_v11 = vadd.f32 %v3393_v20, %v3361_v45  ;;  %v5555_v38 = vadd.f32 %v5217_v37, %v4897_v47  ;;  %v3260_v41 = vpop.f32.mrb[25].mxu0 }
 0x21b   : > { %3486 = vst [vmem:[%s7080_s12 + $0xa0] sm:$0xff] %v3454_v15  ;;  %v3424_v2 = vadd.f32 %v3392_v52, %v3360_v12  ;;  %v5556_v40 = vadd.f32 %v3260_v41, %v2027_v57  ;;  %v4900_v36 = vpop.f32.mrb[26].mxu1 }
 0x21c   : > { %v3457_v1 = vmax.f32 %v3425_v11, 0.0  ;;  %v3363_v55 = vadd.f32 %v5555_v38, %v7070_v49  ;;  %v2037_v19 = vpop.f32.mrb[27].mxu1 }
 0x21d   : > { %v3456_v22 = vmax.f32 %v3424_v2, 0.0  ;;  %v3362_v8 = vadd.f32 %v5556_v40, %v7070_v49  ;;  %v5220_v23 = vpop.f32.mrb[26].mxu0 }
 0x21e   : > { %3489 = vst [vmem:[%s7080_s12 + $0xb8] sm:$0xff] %v3457_v1  ;;  %v3427_v59 = vadd.f32 %v3395_v42, %v3363_v55  ;;  %v5557_v53 = vadd.f32 %v5220_v23, %v4900_v36  ;;  %v3270_v58 = vpop.f32.mrb[27].mxu0 }
 0x21f   : > { %3488 = vst [vmem:[%s7080_s12 + $0xb0] sm:$0xff] %v3456_v22  ;;  %v3426_v25 = vadd.f32 %v3394_v33, %v3362_v8  ;;  %v5558_v5 = vadd.f32 %v3270_v58, %v2037_v19  ;;  %v4903_v32 = vpop.f32.mrb[28].mxu1 }
 0x220   : > { %v3459_v62 = vmax.f32 %v3427_v59, 0.0  ;;  %v3365_v17 = vadd.f32 %v5557_v53, %v7070_v49  ;;  %v2047_v50 = vpop.f32.mrb[29].mxu1 }
 0x221   : > { %v3458_v14 = vmax.f32 %v3426_v25, 0.0  ;;  %v3364_v56 = vadd.f32 %v5558_v5, %v7070_v49  ;;  %v5223_v35 = vpop.f32.mrb[28].mxu0 }
 0x222   : > { %3491 = vst [vmem:[%s7080_s12 + $0xc8] sm:$0xff] %v3459_v62  ;;  %v3429_v30 = vadd.f32 %v3397_v54, %v3365_v17  ;;  %v5559_v39 = vadd.f32 %v5223_v35, %v4903_v32  ;;  %v3280_v4 = vpop.f32.mrb[29].mxu0 }
 0x223   : > { %3490 = vst [vmem:[%s7080_s12 + $0xc0] sm:$0xff] %v3458_v14  ;;  %v3428_v13 = vadd.f32 %v3396_v0, %v3364_v56  ;;  %v5560_v9 = vadd.f32 %v3280_v4, %v2047_v50  ;;  %v4906_v16 = vpop.f32.mrb[30].mxu1 }
 0x224   : > { %v3461_v18 = vmax.f32 %v3429_v30, 0.0  ;;  %v3367_v51 = vadd.f32 %v5559_v39, %v7070_v49  ;;  %v2057_v43 = vpop.f32.mrb[31].mxu1 }
 0x225   : > { %v3460_v26 = vmax.f32 %v3428_v13, 0.0  ;;  %v3366_v24 = vadd.f32 %v5560_v9, %v7070_v49  ;;  %v5226_v29 = vpop.f32.mrb[30].mxu0 }
 0x226   : > { %3493 = vst [vmem:[%s7080_s12 + $0xd8] sm:$0xff] %v3461_v18  ;;  %v3431_v7 = vadd.f32 %v3399_v21, %v3367_v51  ;;  %v5561_v46 = vadd.f32 %v5226_v29, %v4906_v16  ;;  %v3290_v27 = vpop.f32.mrb[31].mxu0 }
 0x227   : > { %3492 = vst [vmem:[%s7080_s12 + $0xd0] sm:$0xff] %v3460_v26  ;;  %v3430_v10 = vadd.f32 %v3398_v48, %v3366_v24  ;;  %v5562_v63 = vadd.f32 %v3290_v27, %v2057_v43 }
 0x228   : > { %v3463_v60 = vmax.f32 %v3431_v7, 0.0  ;;  %v3369_v6 = vadd.f32 %v5561_v46, %v7070_v49 }
 0x229   : > { %v3462_v3 = vmax.f32 %v3430_v10, 0.0  ;;  %v3368_v44 = vadd.f32 %v5562_v63, %v7070_v49 }
 0x22a   : > { %3495 = vst [vmem:[%s7080_s12 + $0xe8] sm:$0xff] %v3463_v60  ;;  %v3433_v20 = vadd.f32 %v3401_v34, %v3369_v6 }
 0x22b   : > { %3494 = vst [vmem:[%s7080_s12 + $0xe0] sm:$0xff] %v3462_v3  ;;  %v3432_v61 = vadd.f32 %v3400_v28, %v3368_v44 }
 0x22c   : > { %v3465_v31 = vmax.f32 %v3433_v20, 0.0 }
 0x22d   : > { %v3464_v45 = vmax.f32 %v3432_v61, 0.0 }
 0x22e   : > { %3497 = vst [vmem:[%s7080_s12 + $0xf8] sm:$0xff] %v3465_v31 }
 0x22f   : > { %3496 = vst [vmem:[%s7080_s12 + $0xf0] sm:$0xff] %v3464_v45 }
 0x230 PF: > { %s14_s17 = sadd.s32 1, %s5841_s17   ;;  %s7234_s15 = smov %s5837_s16 }
 0x231   : > { %p11_p5 = scmp.ge.s32.totalorder %s14_s17, 4   ;;  %s7235_s16 = smov %s7237_s18 }
 0x233   :  { %13 = sbr.rel (!%p11_p5) target bundleno = 2 (0x2), region = 99 }

</bundles_post_ra>
